<compile_context>
chip_gen: v7x
topology: tpu7x:2x2x1
jax: 0.10.0
libtpu: 0.0.40
codegen_flags: <defaults>
</compile_context>

<pallas_src>
import jax
import jax.numpy as jnp
from jax import lax
from jax.experimental import pallas as pl
from jax.experimental.pallas import tpu as pltpu

_UNROLL_T = 16  # fully unroll the time loops up to this length


def _round_up(v, m):
    return ((v + m - 1) // m) * m


def _pick_batch_tile(B, max_tile=128):
    """Pick a batch tile: big MXU row fill, but >=2 grid steps (v7x: one per
    TensorCore) when that does not drop the tile below ~64 rows."""
    BP = _round_up(max(B, 1), 8)
    if BP <= max_tile:
        half = _round_up((BP + 1) // 2, 8)
        tile = half if half >= 64 else BP
    else:
        tile = max_tile
    return tile, _round_up(BP, tile)


# --------------------------------- kernel -----------------------------------
def lstm_autoencoder_kernel(gx_ref,     # (T, Bt, 4*HP) f32  precomputed x@W_ih + b
                            ew_hh_ref,  # (HP, 4*HP)    bf16 encoder recurrent weights
                            dw_ih_ref,  # (HP, 4*FP)    bf16 decoder input weights
                            dw_hh_ref,  # (FP, 4*FP)    bf16 decoder recurrent weights
                            db_ref,     # (1,  4*FP)    f32  decoder fused bias
                            out_ref):   # (T, Bt, FP)   f32
    T, Bt, _ = gx_ref.shape
    HP = ew_hh_ref.shape[0]   # padded encoder hidden size (multiple of 128)
    FP = dw_hh_ref.shape[0]   # padded decoder hidden size (multiple of 128)

    def step(gx_t, h, c, w_hh_ref, hsz):
        # per-gate 128-lane-wide matmul; each (Bt, hsz) result is consumed
        # immediately so no (Bt, 4*hsz) value stays live -> fewer spills.
        hb = h.astype(jnp.bfloat16)

        def gate(k, act):
            pre = gx_t[:, k * hsz:(k + 1) * hsz] + jnp.dot(
                hb, w_hh_ref[:, k * hsz:(k + 1) * hsz],
                preferred_element_type=jnp.float32)
            return act(pre)

        i = gate(0, jax.nn.sigmoid)
        f = gate(1, jax.nn.sigmoid)
        g = gate(2, jnp.tanh)
        o = gate(3, jax.nn.sigmoid)
        c_new = f * c + i * g
        h_new = o * jnp.tanh(c_new)
        return h_new, c_new

    # ---- encoder recurrence (only h @ W_hh is on the serial chain) ---------
    h = jnp.zeros((Bt, HP), jnp.float32)
    c = jnp.zeros((Bt, HP), jnp.float32)

    def enc_body(t, carry):
        h, c = carry
        return step(gx_ref[t], h, c, ew_hh_ref, HP)

    if T <= _UNROLL_T:
        for t in range(T):
            h, c = enc_body(t, (h, c))
    else:
        h, c = lax.fori_loop(0, T, enc_body, (h, c), unroll=4)

    # decoder input is the SAME latent h at every step -> hoist its projection
    gx_dec = jnp.dot(h.astype(jnp.bfloat16), dw_ih_ref[...],
                     preferred_element_type=jnp.float32) + db_ref[...]

    # ---- decoder recurrence -------------------------------------------------
    hd = jnp.zeros((Bt, FP), jnp.float32)
    cd = jnp.zeros((Bt, FP), jnp.float32)

    def dec_body(t, carry):
        hd, cd = carry
        hd, cd = step(gx_dec, hd, cd, dw_hh_ref, FP)
        out_ref[t] = hd.astype(out_ref.dtype)   # lane-dense (Bt, FP) store
        return hd, cd

    if T <= _UNROLL_T:
        for t in range(T):
            hd, cd = dec_body(t, (hd, cd))
    else:
        hd, cd = lax.fori_loop(0, T, dec_body, (hd, cd), unroll=4)


# ------------------------------ wrapper --------------------------------------
def _pad_gate_cols(w_t, in_pad, h, h_pad):
    """w_t: (in_dim, 4*h), columns ordered [i|f|g|o] each h wide.
    Zero-pad each gate block to h_pad columns and the input dim to in_pad rows."""
    in_dim = w_t.shape[0]
    out = jnp.zeros((in_pad, 4 * h_pad), jnp.float32)
    for k in range(4):
        out = out.at[:in_dim, k * h_pad:k * h_pad + h].set(
            w_t[:, k * h:(k + 1) * h])
    return out


def _pad_gate_bias(b, h, h_pad):
    out = jnp.zeros((1, 4 * h_pad), jnp.float32)
    for k in range(4):
        out = out.at[0, k * h_pad:k * h_pad + h].set(b[k * h:(k + 1) * h])
    return out


def lstm_autoencoder(x, params, *, batch_tile=None):
    """x: (B, T, F) float, batch-first — same contract as the PyTorch module."""
    B, T, F = x.shape
    H = params["enc_w_hh"].shape[1]

    HP = _round_up(H, 128)   # lane-aligned encoder hidden size
    FP = _round_up(F, 128)   # lane-aligned decoder hidden (= n_features)

    if batch_tile is None:
        batch_tile, BP = _pick_batch_tile(B)
    else:
        BP = _round_up(B, batch_tile)

    # PyTorch fused weights are (4*hid, in); transpose so the kernel does
    # x @ W, fold the two bias vectors, zero-pad per gate block (padded
    # hidden units provably stay exactly 0 through the recurrence), and cast
    # the MXU-side weights to bf16 (accumulation stays f32 in the kernel).
    ew_ih = _pad_gate_cols(jnp.transpose(params["enc_w_ih"]), F, H, HP)   # f32
    eb    = _pad_gate_bias(params["enc_b_ih"] + params["enc_b_hh"], H, HP)
    ew_hh = _pad_gate_cols(jnp.transpose(params["enc_w_hh"]), HP, H, HP
                           ).astype(jnp.bfloat16)
    dw_ih = _pad_gate_cols(jnp.transpose(params["dec_w_ih"]), HP, F, FP
                           ).astype(jnp.bfloat16)
    dw_hh = _pad_gate_cols(jnp.transpose(params["dec_w_hh"]), FP, F, FP
                           ).astype(jnp.bfloat16)
    db    = _pad_gate_bias(params["dec_b_ih"] + params["dec_b_hh"], F, FP)

    # pad batch, go time-major, and do the encoder input projection here with
    # one big XLA GEMM; the result streams into the kernel as a pipelined input.
    x_p = jnp.zeros((BP, T, F), jnp.float32).at[:B].set(x.astype(jnp.float32))
    x_tm = jnp.transpose(x_p, (1, 0, 2))                           # (T, BP, F)
    gx_tm = jnp.einsum("tbf,fg->tbg", x_tm, ew_ih,
                       preferred_element_type=jnp.float32) + eb    # (T, BP, 4HP)

    # VMEM budget: double-buffered gx/out blocks + weights (+ headroom).
    blk_bytes = (T * batch_tile * 4 * HP * 4) + (T * batch_tile * FP * 4)
    w_bytes = (HP * 4 * HP + HP * 4 * FP + FP * 4 * FP) * 2 + 4 * FP * 4
    est = 2 * (blk_bytes + w_bytes) + (8 << 20)
    vmem_limit = int(min(max(est, 32 << 20), 64 << 20))

    grid = (BP // batch_tile,)
    out_tm = pl.pallas_call(
        lstm_autoencoder_kernel,
        out_shape=jax.ShapeDtypeStruct((T, BP, FP), jnp.float32),
        grid=grid,
        in_specs=[
            pl.BlockSpec((T, batch_tile, 4 * HP), lambda b: (0, b, 0)),
            pl.BlockSpec((HP, 4 * HP), lambda b: (0, 0)),
            pl.BlockSpec((HP, 4 * FP), lambda b: (0, 0)),
            pl.BlockSpec((FP, 4 * FP), lambda b: (0, 0)),
            pl.BlockSpec((1, 4 * FP), lambda b: (0, 0)),
        ],
        out_specs=pl.BlockSpec((T, batch_tile, FP), lambda b: (0, b, 0)),
        compiler_params=pltpu.CompilerParams(
            dimension_semantics=("parallel",),      # batch tiles -> both TCs on v7x
            vmem_limit_bytes=vmem_limit),
    )(gx_tm, ew_hh, dw_ih, dw_hh, db)

    # back to batch-first and strip batch / feature padding
    return jnp.transpose(out_tm, (1, 0, 2))[:B, :, :F]


# ----------------------- deterministic parameter init ------------------------
def init_params(key, n_features, hidden_size):
    ks = jax.random.split(key, 8)
    kh = 1.0 / float(hidden_size) ** 0.5
    kf = 1.0 / float(n_features) ** 0.5
    u = lambda k, shape, s: jax.random.uniform(k, shape, jnp.float32, -s, s)
    return {
        "enc_w_ih": u(ks[0], (4 * hidden_size, n_features), kh),
        "enc_w_hh": u(ks[1], (4 * hidden_size, hidden_size), kh),
        "enc_b_ih": u(ks[2], (4 * hidden_size,), kh),
        "enc_b_hh": u(ks[3], (4 * hidden_size,), kh),
        "dec_w_ih": u(ks[4], (4 * n_features, hidden_size), kf),
        "dec_w_hh": u(ks[5], (4 * n_features, n_features), kf),
        "dec_b_ih": u(ks[6], (4 * n_features,), kf),
        "dec_b_hh": u(ks[7], (4 * n_features,), kf),
    }


# ----------------------------- pure-JAX reference ----------------------------
def lstm_autoencoder_ref(x, p):
    def lstm(xs, w_ih, w_hh, b_ih, b_hh, hid):
        B, T, _ = xs.shape
        h = jnp.zeros((B, hid), jnp.float32)
        c = jnp.zeros((B, hid), jnp.float32)
        outs = []
        for t in range(T):
            g = xs[:, t, :] @ w_ih.T + h @ w_hh.T + b_ih + b_hh
            i = jax.nn.sigmoid(g[:, 0 * hid:1 * hid])
            f = jax.nn.sigmoid(g[:, 1 * hid:2 * hid])
            gg = jnp.tanh(g[:, 2 * hid:3 * hid])
            o = jax.nn.sigmoid(g[:, 3 * hid:4 * hid])
            c = f * c + i * gg
            h = o * jnp.tanh(c)
            outs.append(h)
        return jnp.stack(outs, axis=1), h

    B, T, F = x.shape
    H = p["enc_w_hh"].shape[1]
    _, h_enc = lstm(x, p["enc_w_ih"], p["enc_w_hh"], p["enc_b_ih"], p["enc_b_hh"], H)
    h_rep = jnp.repeat(h_enc[:, None, :], T, axis=1)          # (B, T, H)
    out, _ = lstm(h_rep, p["dec_w_ih"], p["dec_w_hh"], p["dec_b_ih"], p["dec_b_hh"], F)
    return out


if __name__ == "__main__":
    B, T, F, H = 2, 8, 4, 32
    key = jax.random.PRNGKey(0)
    kx, kp = jax.random.split(key)
    params = init_params(kp, n_features=F, hidden_size=H)

    # case 1: tiny batch, single grid step (auto batch tile)
    x = jax.random.normal(kx, (B, T, F), jnp.float32)
    out = jax.block_until_ready(lstm_autoencoder(x, params))
    ref = lstm_autoencoder_ref(x, params)
    assert out.shape == (B, T, F)
    # bf16 MXU operands (f32 accumulation) -> slightly relaxed tolerance
    assert bool(jnp.allclose(out, ref, rtol=2e-2, atol=2e-2))

    # case 2: multiple batch tiles (grid > 1) against the same reference
    B2 = 20
    x2 = jax.random.normal(jax.random.PRNGKey(1), (B2, T, F), jnp.float32)
    out2 = jax.block_until_ready(lstm_autoencoder(x2, params, batch_tile=8))
    ref2 = lstm_autoencoder_ref(x2, params)
    assert out2.shape == (B2, T, F)
    assert bool(jnp.allclose(out2, ref2, rtol=2e-2, atol=2e-2))

    print("KERNEL_OK")
</pallas_src>

<mosaic_0001>
module attributes {stable_mosaic.version = 11 : i64} {
  func.func @lstm_autoencoder_kernel(%arg0: i32, %arg1: memref<8x8x512xf32, #tpu.memory_space<vmem>>, %arg2: memref<128x512xbf16, #tpu.memory_space<vmem>>, %arg3: memref<128x512xbf16, #tpu.memory_space<vmem>>, %arg4: memref<128x512xbf16, #tpu.memory_space<vmem>>, %arg5: memref<1x512xf32, #tpu.memory_space<vmem>>, %arg6: memref<8x8x128xf32, #tpu.memory_space<vmem>>) attributes {dimension_semantics = [#tpu.dimension_semantics<parallel>], iteration_bounds = array<i64: 1>, scalar_prefetch = 0 : i64, scratch_operands = 0 : i64, tpu.core_type = #tpu.core_type<tc>, window_params = [{transform_indices = @transform_0, window_bounds = array<i64: 8, 8, 512>}, {pipeline_mode = #tpu.pipeline_mode<synchronous>, transform_indices = @transform_1, window_bounds = array<i64: 128, 512>}, {pipeline_mode = #tpu.pipeline_mode<synchronous>, transform_indices = @transform_2, window_bounds = array<i64: 128, 512>}, {pipeline_mode = #tpu.pipeline_mode<synchronous>, transform_indices = @transform_3, window_bounds = array<i64: 128, 512>}, {pipeline_mode = #tpu.pipeline_mode<synchronous>, transform_indices = @transform_4, window_bounds = array<i64: 1, 512>}, {transform_indices = @transform_5, window_bounds = array<i64: 8, 8, 128>}]} {
    %cst = arith.constant 0.000000e+00 : f32
    %0 = vector.broadcast %cst : f32 to vector<8x128xf32>
    %cst_0 = arith.constant 0.000000e+00 : f32
    %1 = vector.broadcast %cst_0 : f32 to vector<8x128xf32>
    %c0 = arith.constant 0 : index
    %c0_1 = arith.constant 0 : index
    %c0_2 = arith.constant 0 : index
    %2 = vector.load %arg1[%c0, %c0_1, %c0_2] : memref<8x8x512xf32, #tpu.memory_space<vmem>>, vector<1x8x512xf32>
    %3 = vector.shape_cast %2 : vector<1x8x512xf32> to vector<8x512xf32>
    %4 = arith.truncf %0 : vector<8x128xf32> to vector<8x128xbf16>
    %5 = vector.extract_strided_slice %3 {offsets = [0, 0], sizes = [8, 128], strides = [1, 1]} : vector<8x512xf32> to vector<8x128xf32>
    %c0_3 = arith.constant 0 : index
    %c0_4 = arith.constant 0 : index
    %6 = vector.load %arg2[%c0_3, %c0_4] : memref<128x512xbf16, #tpu.memory_space<vmem>>, vector<128x128xbf16>
    %cst_5 = arith.constant dense<0.000000e+00> : vector<8x128xf32>
    %7 = tpu.matmul %4, %6, %cst_5 {dimension_numbers = #tpu.dot_dimension_numbers<[1], [0], [0], [1], [0, 0, 1, 1], [], []>} : vector<8x128xbf16>, vector<128x128xbf16>, vector<8x128xf32> -> vector<8x128xf32>
    %8 = arith.addf %5, %7 : vector<8x128xf32>
    %9 = arith.negf %8 : vector<8x128xf32>
    %10 = math.exp %9 : vector<8x128xf32>
    %cst_6 = arith.constant 1.000000e+00 : f32
    %11 = vector.broadcast %cst_6 : f32 to vector<8x128xf32>
    %12 = arith.addf %11, %10 : vector<8x128xf32>
    %13 = arith.divf %11, %12 : vector<8x128xf32>
    %14 = vector.extract_strided_slice %3 {offsets = [0, 128], sizes = [8, 128], strides = [1, 1]} : vector<8x512xf32> to vector<8x128xf32>
    %c0_7 = arith.constant 0 : index
    %c128 = arith.constant 128 : index
    %15 = vector.load %arg2[%c0_7, %c128] : memref<128x512xbf16, #tpu.memory_space<vmem>>, vector<128x128xbf16>
    %cst_8 = arith.constant dense<0.000000e+00> : vector<8x128xf32>
    %16 = tpu.matmul %4, %15, %cst_8 {dimension_numbers = #tpu.dot_dimension_numbers<[1], [0], [0], [1], [0, 0, 1, 1], [], []>} : vector<8x128xbf16>, vector<128x128xbf16>, vector<8x128xf32> -> vector<8x128xf32>
    %17 = arith.addf %14, %16 : vector<8x128xf32>
    %18 = arith.negf %17 : vector<8x128xf32>
    %19 = math.exp %18 : vector<8x128xf32>
    %cst_9 = arith.constant 1.000000e+00 : f32
    %20 = vector.broadcast %cst_9 : f32 to vector<8x128xf32>
    %21 = arith.addf %20, %19 : vector<8x128xf32>
    %22 = arith.divf %20, %21 : vector<8x128xf32>
    %23 = vector.extract_strided_slice %3 {offsets = [0, 256], sizes = [8, 128], strides = [1, 1]} : vector<8x512xf32> to vector<8x128xf32>
    %c0_10 = arith.constant 0 : index
    %c256 = arith.constant 256 : index
    %24 = vector.load %arg2[%c0_10, %c256] : memref<128x512xbf16, #tpu.memory_space<vmem>>, vector<128x128xbf16>
    %cst_11 = arith.constant dense<0.000000e+00> : vector<8x128xf32>
    %25 = tpu.matmul %4, %24, %cst_11 {dimension_numbers = #tpu.dot_dimension_numbers<[1], [0], [0], [1], [0, 0, 1, 1], [], []>} : vector<8x128xbf16>, vector<128x128xbf16>, vector<8x128xf32> -> vector<8x128xf32>
    %26 = arith.addf %23, %25 : vector<8x128xf32>
    %27 = math.tanh %26 : vector<8x128xf32>
    %28 = vector.extract_strided_slice %3 {offsets = [0, 384], sizes = [8, 128], strides = [1, 1]} : vector<8x512xf32> to vector<8x128xf32>
    %c0_12 = arith.constant 0 : index
    %c384 = arith.constant 384 : index
    %29 = vector.load %arg2[%c0_12, %c384] : memref<128x512xbf16, #tpu.memory_space<vmem>>, vector<128x128xbf16>
    %cst_13 = arith.constant dense<0.000000e+00> : vector<8x128xf32>
    %30 = tpu.matmul %4, %29, %cst_13 {dimension_numbers = #tpu.dot_dimension_numbers<[1], [0], [0], [1], [0, 0, 1, 1], [], []>} : vector<8x128xbf16>, vector<128x128xbf16>, vector<8x128xf32> -> vector<8x128xf32>
    %31 = arith.addf %28, %30 : vector<8x128xf32>
    %32 = arith.negf %31 : vector<8x128xf32>
    %33 = math.exp %32 : vector<8x128xf32>
    %cst_14 = arith.constant 1.000000e+00 : f32
    %34 = vector.broadcast %cst_14 : f32 to vector<8x128xf32>
    %35 = arith.addf %34, %33 : vector<8x128xf32>
    %36 = arith.divf %34, %35 : vector<8x128xf32>
    %37 = arith.mulf %22, %1 : vector<8x128xf32>
    %38 = arith.mulf %13, %27 : vector<8x128xf32>
    %39 = arith.addf %37, %38 : vector<8x128xf32>
    %40 = math.tanh %39 : vector<8x128xf32>
    %41 = arith.mulf %36, %40 : vector<8x128xf32>
    %c1 = arith.constant 1 : index
    %c0_15 = arith.constant 0 : index
    %c0_16 = arith.constant 0 : index
    %42 = vector.load %arg1[%c1, %c0_15, %c0_16] : memref<8x8x512xf32, #tpu.memory_space<vmem>>, vector<1x8x512xf32>
    %43 = vector.shape_cast %42 : vector<1x8x512xf32> to vector<8x512xf32>
    %44 = arith.truncf %41 : vector<8x128xf32> to vector<8x128xbf16>
    %45 = vector.extract_strided_slice %43 {offsets = [0, 0], sizes = [8, 128], strides = [1, 1]} : vector<8x512xf32> to vector<8x128xf32>
    %c0_17 = arith.constant 0 : index
    %c0_18 = arith.constant 0 : index
    %46 = vector.load %arg2[%c0_17, %c0_18] : memref<128x512xbf16, #tpu.memory_space<vmem>>, vector<128x128xbf16>
    %cst_19 = arith.constant dense<0.000000e+00> : vector<8x128xf32>
    %47 = tpu.matmul %44, %46, %cst_19 {dimension_numbers = #tpu.dot_dimension_numbers<[1], [0], [0], [1], [0, 0, 1, 1], [], []>} : vector<8x128xbf16>, vector<128x128xbf16>, vector<8x128xf32> -> vector<8x128xf32>
    %48 = arith.addf %45, %47 : vector<8x128xf32>
    %49 = arith.negf %48 : vector<8x128xf32>
    %50 = math.exp %49 : vector<8x128xf32>
    %cst_20 = arith.constant 1.000000e+00 : f32
    %51 = vector.broadcast %cst_20 : f32 to vector<8x128xf32>
    %52 = arith.addf %51, %50 : vector<8x128xf32>
    %53 = arith.divf %51, %52 : vector<8x128xf32>
    %54 = vector.extract_strided_slice %43 {offsets = [0, 128], sizes = [8, 128], strides = [1, 1]} : vector<8x512xf32> to vector<8x128xf32>
    %c0_21 = arith.constant 0 : index
    %c128_22 = arith.constant 128 : index
    %55 = vector.load %arg2[%c0_21, %c128_22] : memref<128x512xbf16, #tpu.memory_space<vmem>>, vector<128x128xbf16>
    %cst_23 = arith.constant dense<0.000000e+00> : vector<8x128xf32>
    %56 = tpu.matmul %44, %55, %cst_23 {dimension_numbers = #tpu.dot_dimension_numbers<[1], [0], [0], [1], [0, 0, 1, 1], [], []>} : vector<8x128xbf16>, vector<128x128xbf16>, vector<8x128xf32> -> vector<8x128xf32>
    %57 = arith.addf %54, %56 : vector<8x128xf32>
    %58 = arith.negf %57 : vector<8x128xf32>
    %59 = math.exp %58 : vector<8x128xf32>
    %cst_24 = arith.constant 1.000000e+00 : f32
    %60 = vector.broadcast %cst_24 : f32 to vector<8x128xf32>
    %61 = arith.addf %60, %59 : vector<8x128xf32>
    %62 = arith.divf %60, %61 : vector<8x128xf32>
    %63 = vector.extract_strided_slice %43 {offsets = [0, 256], sizes = [8, 128], strides = [1, 1]} : vector<8x512xf32> to vector<8x128xf32>
    %c0_25 = arith.constant 0 : index
    %c256_26 = arith.constant 256 : index
    %64 = vector.load %arg2[%c0_25, %c256_26] : memref<128x512xbf16, #tpu.memory_space<vmem>>, vector<128x128xbf16>
    %cst_27 = arith.constant dense<0.000000e+00> : vector<8x128xf32>
    %65 = tpu.matmul %44, %64, %cst_27 {dimension_numbers = #tpu.dot_dimension_numbers<[1], [0], [0], [1], [0, 0, 1, 1], [], []>} : vector<8x128xbf16>, vector<128x128xbf16>, vector<8x128xf32> -> vector<8x128xf32>
    %66 = arith.addf %63, %65 : vector<8x128xf32>
    %67 = math.tanh %66 : vector<8x128xf32>
    %68 = vector.extract_strided_slice %43 {offsets = [0, 384], sizes = [8, 128], strides = [1, 1]} : vector<8x512xf32> to vector<8x128xf32>
    %c0_28 = arith.constant 0 : index
    %c384_29 = arith.constant 384 : index
    %69 = vector.load %arg2[%c0_28, %c384_29] : memref<128x512xbf16, #tpu.memory_space<vmem>>, vector<128x128xbf16>
    %cst_30 = arith.constant dense<0.000000e+00> : vector<8x128xf32>
    %70 = tpu.matmul %44, %69, %cst_30 {dimension_numbers = #tpu.dot_dimension_numbers<[1], [0], [0], [1], [0, 0, 1, 1], [], []>} : vector<8x128xbf16>, vector<128x128xbf16>, vector<8x128xf32> -> vector<8x128xf32>
    %71 = arith.addf %68, %70 : vector<8x128xf32>
    %72 = arith.negf %71 : vector<8x128xf32>
    %73 = math.exp %72 : vector<8x128xf32>
    %cst_31 = arith.constant 1.000000e+00 : f32
    %74 = vector.broadcast %cst_31 : f32 to vector<8x128xf32>
    %75 = arith.addf %74, %73 : vector<8x128xf32>
    %76 = arith.divf %74, %75 : vector<8x128xf32>
    %77 = arith.mulf %62, %39 : vector<8x128xf32>
    %78 = arith.mulf %53, %67 : vector<8x128xf32>
    %79 = arith.addf %77, %78 : vector<8x128xf32>
    %80 = math.tanh %79 : vector<8x128xf32>
    %81 = arith.mulf %76, %80 : vector<8x128xf32>
    %c2 = arith.constant 2 : index
    %c0_32 = arith.constant 0 : index
    %c0_33 = arith.constant 0 : index
    %82 = vector.load %arg1[%c2, %c0_32, %c0_33] : memref<8x8x512xf32, #tpu.memory_space<vmem>>, vector<1x8x512xf32>
    %83 = vector.shape_cast %82 : vector<1x8x512xf32> to vector<8x512xf32>
    %84 = arith.truncf %81 : vector<8x128xf32> to vector<8x128xbf16>
    %85 = vector.extract_strided_slice %83 {offsets = [0, 0], sizes = [8, 128], strides = [1, 1]} : vector<8x512xf32> to vector<8x128xf32>
    %c0_34 = arith.constant 0 : index
    %c0_35 = arith.constant 0 : index
    %86 = vector.load %arg2[%c0_34, %c0_35] : memref<128x512xbf16, #tpu.memory_space<vmem>>, vector<128x128xbf16>
    %cst_36 = arith.constant dense<0.000000e+00> : vector<8x128xf32>
    %87 = tpu.matmul %84, %86, %cst_36 {dimension_numbers = #tpu.dot_dimension_numbers<[1], [0], [0], [1], [0, 0, 1, 1], [], []>} : vector<8x128xbf16>, vector<128x128xbf16>, vector<8x128xf32> -> vector<8x128xf32>
    %88 = arith.addf %85, %87 : vector<8x128xf32>
    %89 = arith.negf %88 : vector<8x128xf32>
    %90 = math.exp %89 : vector<8x128xf32>
    %cst_37 = arith.constant 1.000000e+00 : f32
    %91 = vector.broadcast %cst_37 : f32 to vector<8x128xf32>
    %92 = arith.addf %91, %90 : vector<8x128xf32>
    %93 = arith.divf %91, %92 : vector<8x128xf32>
    %94 = vector.extract_strided_slice %83 {offsets = [0, 128], sizes = [8, 128], strides = [1, 1]} : vector<8x512xf32> to vector<8x128xf32>
    %c0_38 = arith.constant 0 : index
    %c128_39 = arith.constant 128 : index
    %95 = vector.load %arg2[%c0_38, %c128_39] : memref<128x512xbf16, #tpu.memory_space<vmem>>, vector<128x128xbf16>
    %cst_40 = arith.constant dense<0.000000e+00> : vector<8x128xf32>
    %96 = tpu.matmul %84, %95, %cst_40 {dimension_numbers = #tpu.dot_dimension_numbers<[1], [0], [0], [1], [0, 0, 1, 1], [], []>} : vector<8x128xbf16>, vector<128x128xbf16>, vector<8x128xf32> -> vector<8x128xf32>
    %97 = arith.addf %94, %96 : vector<8x128xf32>
    %98 = arith.negf %97 : vector<8x128xf32>
    %99 = math.exp %98 : vector<8x128xf32>
    %cst_41 = arith.constant 1.000000e+00 : f32
    %100 = vector.broadcast %cst_41 : f32 to vector<8x128xf32>
    %101 = arith.addf %100, %99 : vector<8x128xf32>
    %102 = arith.divf %100, %101 : vector<8x128xf32>
    %103 = vector.extract_strided_slice %83 {offsets = [0, 256], sizes = [8, 128], strides = [1, 1]} : vector<8x512xf32> to vector<8x128xf32>
    %c0_42 = arith.constant 0 : index
    %c256_43 = arith.constant 256 : index
    %104 = vector.load %arg2[%c0_42, %c256_43] : memref<128x512xbf16, #tpu.memory_space<vmem>>, vector<128x128xbf16>
    %cst_44 = arith.constant dense<0.000000e+00> : vector<8x128xf32>
    %105 = tpu.matmul %84, %104, %cst_44 {dimension_numbers = #tpu.dot_dimension_numbers<[1], [0], [0], [1], [0, 0, 1, 1], [], []>} : vector<8x128xbf16>, vector<128x128xbf16>, vector<8x128xf32> -> vector<8x128xf32>
    %106 = arith.addf %103, %105 : vector<8x128xf32>
    %107 = math.tanh %106 : vector<8x128xf32>
    %108 = vector.extract_strided_slice %83 {offsets = [0, 384], sizes = [8, 128], strides = [1, 1]} : vector<8x512xf32> to vector<8x128xf32>
    %c0_45 = arith.constant 0 : index
    %c384_46 = arith.constant 384 : index
    %109 = vector.load %arg2[%c0_45, %c384_46] : memref<128x512xbf16, #tpu.memory_space<vmem>>, vector<128x128xbf16>
    %cst_47 = arith.constant dense<0.000000e+00> : vector<8x128xf32>
    %110 = tpu.matmul %84, %109, %cst_47 {dimension_numbers = #tpu.dot_dimension_numbers<[1], [0], [0], [1], [0, 0, 1, 1], [], []>} : vector<8x128xbf16>, vector<128x128xbf16>, vector<8x128xf32> -> vector<8x128xf32>
    %111 = arith.addf %108, %110 : vector<8x128xf32>
    %112 = arith.negf %111 : vector<8x128xf32>
    %113 = math.exp %112 : vector<8x128xf32>
    %cst_48 = arith.constant 1.000000e+00 : f32
    %114 = vector.broadcast %cst_48 : f32 to vector<8x128xf32>
    %115 = arith.addf %114, %113 : vector<8x128xf32>
    %116 = arith.divf %114, %115 : vector<8x128xf32>
    %117 = arith.mulf %102, %79 : vector<8x128xf32>
    %118 = arith.mulf %93, %107 : vector<8x128xf32>
    %119 = arith.addf %117, %118 : vector<8x128xf32>
    %120 = math.tanh %119 : vector<8x128xf32>
    %121 = arith.mulf %116, %120 : vector<8x128xf32>
    %c3 = arith.constant 3 : index
    %c0_49 = arith.constant 0 : index
    %c0_50 = arith.constant 0 : index
    %122 = vector.load %arg1[%c3, %c0_49, %c0_50] : memref<8x8x512xf32, #tpu.memory_space<vmem>>, vector<1x8x512xf32>
    %123 = vector.shape_cast %122 : vector<1x8x512xf32> to vector<8x512xf32>
    %124 = arith.truncf %121 : vector<8x128xf32> to vector<8x128xbf16>
    %125 = vector.extract_strided_slice %123 {offsets = [0, 0], sizes = [8, 128], strides = [1, 1]} : vector<8x512xf32> to vector<8x128xf32>
    %c0_51 = arith.constant 0 : index
    %c0_52 = arith.constant 0 : index
    %126 = vector.load %arg2[%c0_51, %c0_52] : memref<128x512xbf16, #tpu.memory_space<vmem>>, vector<128x128xbf16>
    %cst_53 = arith.constant dense<0.000000e+00> : vector<8x128xf32>
    %127 = tpu.matmul %124, %126, %cst_53 {dimension_numbers = #tpu.dot_dimension_numbers<[1], [0], [0], [1], [0, 0, 1, 1], [], []>} : vector<8x128xbf16>, vector<128x128xbf16>, vector<8x128xf32> -> vector<8x128xf32>
    %128 = arith.addf %125, %127 : vector<8x128xf32>
    %129 = arith.negf %128 : vector<8x128xf32>
    %130 = math.exp %129 : vector<8x128xf32>
    %cst_54 = arith.constant 1.000000e+00 : f32
    %131 = vector.broadcast %cst_54 : f32 to vector<8x128xf32>
    %132 = arith.addf %131, %130 : vector<8x128xf32>
    %133 = arith.divf %131, %132 : vector<8x128xf32>
    %134 = vector.extract_strided_slice %123 {offsets = [0, 128], sizes = [8, 128], strides = [1, 1]} : vector<8x512xf32> to vector<8x128xf32>
    %c0_55 = arith.constant 0 : index
    %c128_56 = arith.constant 128 : index
    %135 = vector.load %arg2[%c0_55, %c128_56] : memref<128x512xbf16, #tpu.memory_space<vmem>>, vector<128x128xbf16>
    %cst_57 = arith.constant dense<0.000000e+00> : vector<8x128xf32>
    %136 = tpu.matmul %124, %135, %cst_57 {dimension_numbers = #tpu.dot_dimension_numbers<[1], [0], [0], [1], [0, 0, 1, 1], [], []>} : vector<8x128xbf16>, vector<128x128xbf16>, vector<8x128xf32> -> vector<8x128xf32>
    %137 = arith.addf %134, %136 : vector<8x128xf32>
    %138 = arith.negf %137 : vector<8x128xf32>
    %139 = math.exp %138 : vector<8x128xf32>
    %cst_58 = arith.constant 1.000000e+00 : f32
    %140 = vector.broadcast %cst_58 : f32 to vector<8x128xf32>
    %141 = arith.addf %140, %139 : vector<8x128xf32>
    %142 = arith.divf %140, %141 : vector<8x128xf32>
    %143 = vector.extract_strided_slice %123 {offsets = [0, 256], sizes = [8, 128], strides = [1, 1]} : vector<8x512xf32> to vector<8x128xf32>
    %c0_59 = arith.constant 0 : index
    %c256_60 = arith.constant 256 : index
    %144 = vector.load %arg2[%c0_59, %c256_60] : memref<128x512xbf16, #tpu.memory_space<vmem>>, vector<128x128xbf16>
    %cst_61 = arith.constant dense<0.000000e+00> : vector<8x128xf32>
    %145 = tpu.matmul %124, %144, %cst_61 {dimension_numbers = #tpu.dot_dimension_numbers<[1], [0], [0], [1], [0, 0, 1, 1], [], []>} : vector<8x128xbf16>, vector<128x128xbf16>, vector<8x128xf32> -> vector<8x128xf32>
    %146 = arith.addf %143, %145 : vector<8x128xf32>
    %147 = math.tanh %146 : vector<8x128xf32>
    %148 = vector.extract_strided_slice %123 {offsets = [0, 384], sizes = [8, 128], strides = [1, 1]} : vector<8x512xf32> to vector<8x128xf32>
    %c0_62 = arith.constant 0 : index
    %c384_63 = arith.constant 384 : index
    %149 = vector.load %arg2[%c0_62, %c384_63] : memref<128x512xbf16, #tpu.memory_space<vmem>>, vector<128x128xbf16>
    %cst_64 = arith.constant dense<0.000000e+00> : vector<8x128xf32>
    %150 = tpu.matmul %124, %149, %cst_64 {dimension_numbers = #tpu.dot_dimension_numbers<[1], [0], [0], [1], [0, 0, 1, 1], [], []>} : vector<8x128xbf16>, vector<128x128xbf16>, vector<8x128xf32> -> vector<8x128xf32>
    %151 = arith.addf %148, %150 : vector<8x128xf32>
    %152 = arith.negf %151 : vector<8x128xf32>
    %153 = math.exp %152 : vector<8x128xf32>
    %cst_65 = arith.constant 1.000000e+00 : f32
    %154 = vector.broadcast %cst_65 : f32 to vector<8x128xf32>
    %155 = arith.addf %154, %153 : vector<8x128xf32>
    %156 = arith.divf %154, %155 : vector<8x128xf32>
    %157 = arith.mulf %142, %119 : vector<8x128xf32>
    %158 = arith.mulf %133, %147 : vector<8x128xf32>
    %159 = arith.addf %157, %158 : vector<8x128xf32>
    %160 = math.tanh %159 : vector<8x128xf32>
    %161 = arith.mulf %156, %160 : vector<8x128xf32>
    %c4 = arith.constant 4 : index
    %c0_66 = arith.constant 0 : index
    %c0_67 = arith.constant 0 : index
    %162 = vector.load %arg1[%c4, %c0_66, %c0_67] : memref<8x8x512xf32, #tpu.memory_space<vmem>>, vector<1x8x512xf32>
    %163 = vector.shape_cast %162 : vector<1x8x512xf32> to vector<8x512xf32>
    %164 = arith.truncf %161 : vector<8x128xf32> to vector<8x128xbf16>
    %165 = vector.extract_strided_slice %163 {offsets = [0, 0], sizes = [8, 128], strides = [1, 1]} : vector<8x512xf32> to vector<8x128xf32>
    %c0_68 = arith.constant 0 : index
    %c0_69 = arith.constant 0 : index
    %166 = vector.load %arg2[%c0_68, %c0_69] : memref<128x512xbf16, #tpu.memory_space<vmem>>, vector<128x128xbf16>
    %cst_70 = arith.constant dense<0.000000e+00> : vector<8x128xf32>
    %167 = tpu.matmul %164, %166, %cst_70 {dimension_numbers = #tpu.dot_dimension_numbers<[1], [0], [0], [1], [0, 0, 1, 1], [], []>} : vector<8x128xbf16>, vector<128x128xbf16>, vector<8x128xf32> -> vector<8x128xf32>
    %168 = arith.addf %165, %167 : vector<8x128xf32>
    %169 = arith.negf %168 : vector<8x128xf32>
    %170 = math.exp %169 : vector<8x128xf32>
    %cst_71 = arith.constant 1.000000e+00 : f32
    %171 = vector.broadcast %cst_71 : f32 to vector<8x128xf32>
    %172 = arith.addf %171, %170 : vector<8x128xf32>
    %173 = arith.divf %171, %172 : vector<8x128xf32>
    %174 = vector.extract_strided_slice %163 {offsets = [0, 128], sizes = [8, 128], strides = [1, 1]} : vector<8x512xf32> to vector<8x128xf32>
    %c0_72 = arith.constant 0 : index
    %c128_73 = arith.constant 128 : index
    %175 = vector.load %arg2[%c0_72, %c128_73] : memref<128x512xbf16, #tpu.memory_space<vmem>>, vector<128x128xbf16>
    %cst_74 = arith.constant dense<0.000000e+00> : vector<8x128xf32>
    %176 = tpu.matmul %164, %175, %cst_74 {dimension_numbers = #tpu.dot_dimension_numbers<[1], [0], [0], [1], [0, 0, 1, 1], [], []>} : vector<8x128xbf16>, vector<128x128xbf16>, vector<8x128xf32> -> vector<8x128xf32>
    %177 = arith.addf %174, %176 : vector<8x128xf32>
    %178 = arith.negf %177 : vector<8x128xf32>
    %179 = math.exp %178 : vector<8x128xf32>
    %cst_75 = arith.constant 1.000000e+00 : f32
    %180 = vector.broadcast %cst_75 : f32 to vector<8x128xf32>
    %181 = arith.addf %180, %179 : vector<8x128xf32>
    %182 = arith.divf %180, %181 : vector<8x128xf32>
    %183 = vector.extract_strided_slice %163 {offsets = [0, 256], sizes = [8, 128], strides = [1, 1]} : vector<8x512xf32> to vector<8x128xf32>
    %c0_76 = arith.constant 0 : index
    %c256_77 = arith.constant 256 : index
    %184 = vector.load %arg2[%c0_76, %c256_77] : memref<128x512xbf16, #tpu.memory_space<vmem>>, vector<128x128xbf16>
    %cst_78 = arith.constant dense<0.000000e+00> : vector<8x128xf32>
    %185 = tpu.matmul %164, %184, %cst_78 {dimension_numbers = #tpu.dot_dimension_numbers<[1], [0], [0], [1], [0, 0, 1, 1], [], []>} : vector<8x128xbf16>, vector<128x128xbf16>, vector<8x128xf32> -> vector<8x128xf32>
    %186 = arith.addf %183, %185 : vector<8x128xf32>
    %187 = math.tanh %186 : vector<8x128xf32>
    %188 = vector.extract_strided_slice %163 {offsets = [0, 384], sizes = [8, 128], strides = [1, 1]} : vector<8x512xf32> to vector<8x128xf32>
    %c0_79 = arith.constant 0 : index
    %c384_80 = arith.constant 384 : index
    %189 = vector.load %arg2[%c0_79, %c384_80] : memref<128x512xbf16, #tpu.memory_space<vmem>>, vector<128x128xbf16>
    %cst_81 = arith.constant dense<0.000000e+00> : vector<8x128xf32>
    %190 = tpu.matmul %164, %189, %cst_81 {dimension_numbers = #tpu.dot_dimension_numbers<[1], [0], [0], [1], [0, 0, 1, 1], [], []>} : vector<8x128xbf16>, vector<128x128xbf16>, vector<8x128xf32> -> vector<8x128xf32>
    %191 = arith.addf %188, %190 : vector<8x128xf32>
    %192 = arith.negf %191 : vector<8x128xf32>
    %193 = math.exp %192 : vector<8x128xf32>
    %cst_82 = arith.constant 1.000000e+00 : f32
    %194 = vector.broadcast %cst_82 : f32 to vector<8x128xf32>
    %195 = arith.addf %194, %193 : vector<8x128xf32>
    %196 = arith.divf %194, %195 : vector<8x128xf32>
    %197 = arith.mulf %182, %159 : vector<8x128xf32>
    %198 = arith.mulf %173, %187 : vector<8x128xf32>
    %199 = arith.addf %197, %198 : vector<8x128xf32>
    %200 = math.tanh %199 : vector<8x128xf32>
    %201 = arith.mulf %196, %200 : vector<8x128xf32>
    %c5 = arith.constant 5 : index
    %c0_83 = arith.constant 0 : index
    %c0_84 = arith.constant 0 : index
    %202 = vector.load %arg1[%c5, %c0_83, %c0_84] : memref<8x8x512xf32, #tpu.memory_space<vmem>>, vector<1x8x512xf32>
    %203 = vector.shape_cast %202 : vector<1x8x512xf32> to vector<8x512xf32>
    %204 = arith.truncf %201 : vector<8x128xf32> to vector<8x128xbf16>
    %205 = vector.extract_strided_slice %203 {offsets = [0, 0], sizes = [8, 128], strides = [1, 1]} : vector<8x512xf32> to vector<8x128xf32>
    %c0_85 = arith.constant 0 : index
    %c0_86 = arith.constant 0 : index
    %206 = vector.load %arg2[%c0_85, %c0_86] : memref<128x512xbf16, #tpu.memory_space<vmem>>, vector<128x128xbf16>
    %cst_87 = arith.constant dense<0.000000e+00> : vector<8x128xf32>
    %207 = tpu.matmul %204, %206, %cst_87 {dimension_numbers = #tpu.dot_dimension_numbers<[1], [0], [0], [1], [0, 0, 1, 1], [], []>} : vector<8x128xbf16>, vector<128x128xbf16>, vector<8x128xf32> -> vector<8x128xf32>
    %208 = arith.addf %205, %207 : vector<8x128xf32>
    %209 = arith.negf %208 : vector<8x128xf32>
    %210 = math.exp %209 : vector<8x128xf32>
    %cst_88 = arith.constant 1.000000e+00 : f32
    %211 = vector.broadcast %cst_88 : f32 to vector<8x128xf32>
    %212 = arith.addf %211, %210 : vector<8x128xf32>
    %213 = arith.divf %211, %212 : vector<8x128xf32>
    %214 = vector.extract_strided_slice %203 {offsets = [0, 128], sizes = [8, 128], strides = [1, 1]} : vector<8x512xf32> to vector<8x128xf32>
    %c0_89 = arith.constant 0 : index
    %c128_90 = arith.constant 128 : index
    %215 = vector.load %arg2[%c0_89, %c128_90] : memref<128x512xbf16, #tpu.memory_space<vmem>>, vector<128x128xbf16>
    %cst_91 = arith.constant dense<0.000000e+00> : vector<8x128xf32>
    %216 = tpu.matmul %204, %215, %cst_91 {dimension_numbers = #tpu.dot_dimension_numbers<[1], [0], [0], [1], [0, 0, 1, 1], [], []>} : vector<8x128xbf16>, vector<128x128xbf16>, vector<8x128xf32> -> vector<8x128xf32>
    %217 = arith.addf %214, %216 : vector<8x128xf32>
    %218 = arith.negf %217 : vector<8x128xf32>
    %219 = math.exp %218 : vector<8x128xf32>
    %cst_92 = arith.constant 1.000000e+00 : f32
    %220 = vector.broadcast %cst_92 : f32 to vector<8x128xf32>
    %221 = arith.addf %220, %219 : vector<8x128xf32>
    %222 = arith.divf %220, %221 : vector<8x128xf32>
    %223 = vector.extract_strided_slice %203 {offsets = [0, 256], sizes = [8, 128], strides = [1, 1]} : vector<8x512xf32> to vector<8x128xf32>
    %c0_93 = arith.constant 0 : index
    %c256_94 = arith.constant 256 : index
    %224 = vector.load %arg2[%c0_93, %c256_94] : memref<128x512xbf16, #tpu.memory_space<vmem>>, vector<128x128xbf16>
    %cst_95 = arith.constant dense<0.000000e+00> : vector<8x128xf32>
    %225 = tpu.matmul %204, %224, %cst_95 {dimension_numbers = #tpu.dot_dimension_numbers<[1], [0], [0], [1], [0, 0, 1, 1], [], []>} : vector<8x128xbf16>, vector<128x128xbf16>, vector<8x128xf32> -> vector<8x128xf32>
    %226 = arith.addf %223, %225 : vector<8x128xf32>
    %227 = math.tanh %226 : vector<8x128xf32>
    %228 = vector.extract_strided_slice %203 {offsets = [0, 384], sizes = [8, 128], strides = [1, 1]} : vector<8x512xf32> to vector<8x128xf32>
    %c0_96 = arith.constant 0 : index
    %c384_97 = arith.constant 384 : index
    %229 = vector.load %arg2[%c0_96, %c384_97] : memref<128x512xbf16, #tpu.memory_space<vmem>>, vector<128x128xbf16>
    %cst_98 = arith.constant dense<0.000000e+00> : vector<8x128xf32>
    %230 = tpu.matmul %204, %229, %cst_98 {dimension_numbers = #tpu.dot_dimension_numbers<[1], [0], [0], [1], [0, 0, 1, 1], [], []>} : vector<8x128xbf16>, vector<128x128xbf16>, vector<8x128xf32> -> vector<8x128xf32>
    %231 = arith.addf %228, %230 : vector<8x128xf32>
    %232 = arith.negf %231 : vector<8x128xf32>
    %233 = math.exp %232 : vector<8x128xf32>
    %cst_99 = arith.constant 1.000000e+00 : f32
    %234 = vector.broadcast %cst_99 : f32 to vector<8x128xf32>
    %235 = arith.addf %234, %233 : vector<8x128xf32>
    %236 = arith.divf %234, %235 : vector<8x128xf32>
    %237 = arith.mulf %222, %199 : vector<8x128xf32>
    %238 = arith.mulf %213, %227 : vector<8x128xf32>
    %239 = arith.addf %237, %238 : vector<8x128xf32>
    %240 = math.tanh %239 : vector<8x128xf32>
    %241 = arith.mulf %236, %240 : vector<8x128xf32>
    %c6 = arith.constant 6 : index
    %c0_100 = arith.constant 0 : index
    %c0_101 = arith.constant 0 : index
    %242 = vector.load %arg1[%c6, %c0_100, %c0_101] : memref<8x8x512xf32, #tpu.memory_space<vmem>>, vector<1x8x512xf32>
    %243 = vector.shape_cast %242 : vector<1x8x512xf32> to vector<8x512xf32>
    %244 = arith.truncf %241 : vector<8x128xf32> to vector<8x128xbf16>
    %245 = vector.extract_strided_slice %243 {offsets = [0, 0], sizes = [8, 128], strides = [1, 1]} : vector<8x512xf32> to vector<8x128xf32>
    %c0_102 = arith.constant 0 : index
    %c0_103 = arith.constant 0 : index
    %246 = vector.load %arg2[%c0_102, %c0_103] : memref<128x512xbf16, #tpu.memory_space<vmem>>, vector<128x128xbf16>
    %cst_104 = arith.constant dense<0.000000e+00> : vector<8x128xf32>
    %247 = tpu.matmul %244, %246, %cst_104 {dimension_numbers = #tpu.dot_dimension_numbers<[1], [0], [0], [1], [0, 0, 1, 1], [], []>} : vector<8x128xbf16>, vector<128x128xbf16>, vector<8x128xf32> -> vector<8x128xf32>
    %248 = arith.addf %245, %247 : vector<8x128xf32>
    %249 = arith.negf %248 : vector<8x128xf32>
    %250 = math.exp %249 : vector<8x128xf32>
    %cst_105 = arith.constant 1.000000e+00 : f32
    %251 = vector.broadcast %cst_105 : f32 to vector<8x128xf32>
    %252 = arith.addf %251, %250 : vector<8x128xf32>
    %253 = arith.divf %251, %252 : vector<8x128xf32>
    %254 = vector.extract_strided_slice %243 {offsets = [0, 128], sizes = [8, 128], strides = [1, 1]} : vector<8x512xf32> to vector<8x128xf32>
    %c0_106 = arith.constant 0 : index
    %c128_107 = arith.constant 128 : index
    %255 = vector.load %arg2[%c0_106, %c128_107] : memref<128x512xbf16, #tpu.memory_space<vmem>>, vector<128x128xbf16>
    %cst_108 = arith.constant dense<0.000000e+00> : vector<8x128xf32>
    %256 = tpu.matmul %244, %255, %cst_108 {dimension_numbers = #tpu.dot_dimension_numbers<[1], [0], [0], [1], [0, 0, 1, 1], [], []>} : vector<8x128xbf16>, vector<128x128xbf16>, vector<8x128xf32> -> vector<8x128xf32>
    %257 = arith.addf %254, %256 : vector<8x128xf32>
    %258 = arith.negf %257 : vector<8x128xf32>
    %259 = math.exp %258 : vector<8x128xf32>
    %cst_109 = arith.constant 1.000000e+00 : f32
    %260 = vector.broadcast %cst_109 : f32 to vector<8x128xf32>
    %261 = arith.addf %260, %259 : vector<8x128xf32>
    %262 = arith.divf %260, %261 : vector<8x128xf32>
    %263 = vector.extract_strided_slice %243 {offsets = [0, 256], sizes = [8, 128], strides = [1, 1]} : vector<8x512xf32> to vector<8x128xf32>
    %c0_110 = arith.constant 0 : index
    %c256_111 = arith.constant 256 : index
    %264 = vector.load %arg2[%c0_110, %c256_111] : memref<128x512xbf16, #tpu.memory_space<vmem>>, vector<128x128xbf16>
    %cst_112 = arith.constant dense<0.000000e+00> : vector<8x128xf32>
    %265 = tpu.matmul %244, %264, %cst_112 {dimension_numbers = #tpu.dot_dimension_numbers<[1], [0], [0], [1], [0, 0, 1, 1], [], []>} : vector<8x128xbf16>, vector<128x128xbf16>, vector<8x128xf32> -> vector<8x128xf32>
    %266 = arith.addf %263, %265 : vector<8x128xf32>
    %267 = math.tanh %266 : vector<8x128xf32>
    %268 = vector.extract_strided_slice %243 {offsets = [0, 384], sizes = [8, 128], strides = [1, 1]} : vector<8x512xf32> to vector<8x128xf32>
    %c0_113 = arith.constant 0 : index
    %c384_114 = arith.constant 384 : index
    %269 = vector.load %arg2[%c0_113, %c384_114] : memref<128x512xbf16, #tpu.memory_space<vmem>>, vector<128x128xbf16>
    %cst_115 = arith.constant dense<0.000000e+00> : vector<8x128xf32>
    %270 = tpu.matmul %244, %269, %cst_115 {dimension_numbers = #tpu.dot_dimension_numbers<[1], [0], [0], [1], [0, 0, 1, 1], [], []>} : vector<8x128xbf16>, vector<128x128xbf16>, vector<8x128xf32> -> vector<8x128xf32>
    %271 = arith.addf %268, %270 : vector<8x128xf32>
    %272 = arith.negf %271 : vector<8x128xf32>
    %273 = math.exp %272 : vector<8x128xf32>
    %cst_116 = arith.constant 1.000000e+00 : f32
    %274 = vector.broadcast %cst_116 : f32 to vector<8x128xf32>
    %275 = arith.addf %274, %273 : vector<8x128xf32>
    %276 = arith.divf %274, %275 : vector<8x128xf32>
    %277 = arith.mulf %262, %239 : vector<8x128xf32>
    %278 = arith.mulf %253, %267 : vector<8x128xf32>
    %279 = arith.addf %277, %278 : vector<8x128xf32>
    %280 = math.tanh %279 : vector<8x128xf32>
    %281 = arith.mulf %276, %280 : vector<8x128xf32>
    %c7 = arith.constant 7 : index
    %c0_117 = arith.constant 0 : index
    %c0_118 = arith.constant 0 : index
    %282 = vector.load %arg1[%c7, %c0_117, %c0_118] : memref<8x8x512xf32, #tpu.memory_space<vmem>>, vector<1x8x512xf32>
    %283 = vector.shape_cast %282 : vector<1x8x512xf32> to vector<8x512xf32>
    %284 = arith.truncf %281 : vector<8x128xf32> to vector<8x128xbf16>
    %285 = vector.extract_strided_slice %283 {offsets = [0, 0], sizes = [8, 128], strides = [1, 1]} : vector<8x512xf32> to vector<8x128xf32>
    %c0_119 = arith.constant 0 : index
    %c0_120 = arith.constant 0 : index
    %286 = vector.load %arg2[%c0_119, %c0_120] : memref<128x512xbf16, #tpu.memory_space<vmem>>, vector<128x128xbf16>
    %cst_121 = arith.constant dense<0.000000e+00> : vector<8x128xf32>
    %287 = tpu.matmul %284, %286, %cst_121 {dimension_numbers = #tpu.dot_dimension_numbers<[1], [0], [0], [1], [0, 0, 1, 1], [], []>} : vector<8x128xbf16>, vector<128x128xbf16>, vector<8x128xf32> -> vector<8x128xf32>
    %288 = arith.addf %285, %287 : vector<8x128xf32>
    %289 = arith.negf %288 : vector<8x128xf32>
    %290 = math.exp %289 : vector<8x128xf32>
    %cst_122 = arith.constant 1.000000e+00 : f32
    %291 = vector.broadcast %cst_122 : f32 to vector<8x128xf32>
    %292 = arith.addf %291, %290 : vector<8x128xf32>
    %293 = arith.divf %291, %292 : vector<8x128xf32>
    %294 = vector.extract_strided_slice %283 {offsets = [0, 128], sizes = [8, 128], strides = [1, 1]} : vector<8x512xf32> to vector<8x128xf32>
    %c0_123 = arith.constant 0 : index
    %c128_124 = arith.constant 128 : index
    %295 = vector.load %arg2[%c0_123, %c128_124] : memref<128x512xbf16, #tpu.memory_space<vmem>>, vector<128x128xbf16>
    %cst_125 = arith.constant dense<0.000000e+00> : vector<8x128xf32>
    %296 = tpu.matmul %284, %295, %cst_125 {dimension_numbers = #tpu.dot_dimension_numbers<[1], [0], [0], [1], [0, 0, 1, 1], [], []>} : vector<8x128xbf16>, vector<128x128xbf16>, vector<8x128xf32> -> vector<8x128xf32>
    %297 = arith.addf %294, %296 : vector<8x128xf32>
    %298 = arith.negf %297 : vector<8x128xf32>
    %299 = math.exp %298 : vector<8x128xf32>
    %cst_126 = arith.constant 1.000000e+00 : f32
    %300 = vector.broadcast %cst_126 : f32 to vector<8x128xf32>
    %301 = arith.addf %300, %299 : vector<8x128xf32>
    %302 = arith.divf %300, %301 : vector<8x128xf32>
    %303 = vector.extract_strided_slice %283 {offsets = [0, 256], sizes = [8, 128], strides = [1, 1]} : vector<8x512xf32> to vector<8x128xf32>
    %c0_127 = arith.constant 0 : index
    %c256_128 = arith.constant 256 : index
    %304 = vector.load %arg2[%c0_127, %c256_128] : memref<128x512xbf16, #tpu.memory_space<vmem>>, vector<128x128xbf16>
    %cst_129 = arith.constant dense<0.000000e+00> : vector<8x128xf32>
    %305 = tpu.matmul %284, %304, %cst_129 {dimension_numbers = #tpu.dot_dimension_numbers<[1], [0], [0], [1], [0, 0, 1, 1], [], []>} : vector<8x128xbf16>, vector<128x128xbf16>, vector<8x128xf32> -> vector<8x128xf32>
    %306 = arith.addf %303, %305 : vector<8x128xf32>
    %307 = math.tanh %306 : vector<8x128xf32>
    %308 = vector.extract_strided_slice %283 {offsets = [0, 384], sizes = [8, 128], strides = [1, 1]} : vector<8x512xf32> to vector<8x128xf32>
    %c0_130 = arith.constant 0 : index
    %c384_131 = arith.constant 384 : index
    %309 = vector.load %arg2[%c0_130, %c384_131] : memref<128x512xbf16, #tpu.memory_space<vmem>>, vector<128x128xbf16>
    %cst_132 = arith.constant dense<0.000000e+00> : vector<8x128xf32>
    %310 = tpu.matmul %284, %309, %cst_132 {dimension_numbers = #tpu.dot_dimension_numbers<[1], [0], [0], [1], [0, 0, 1, 1], [], []>} : vector<8x128xbf16>, vector<128x128xbf16>, vector<8x128xf32> -> vector<8x128xf32>
    %311 = arith.addf %308, %310 : vector<8x128xf32>
    %312 = arith.negf %311 : vector<8x128xf32>
    %313 = math.exp %312 : vector<8x128xf32>
    %cst_133 = arith.constant 1.000000e+00 : f32
    %314 = vector.broadcast %cst_133 : f32 to vector<8x128xf32>
    %315 = arith.addf %314, %313 : vector<8x128xf32>
    %316 = arith.divf %314, %315 : vector<8x128xf32>
    %317 = arith.mulf %302, %279 : vector<8x128xf32>
    %318 = arith.mulf %293, %307 : vector<8x128xf32>
    %319 = arith.addf %317, %318 : vector<8x128xf32>
    %320 = math.tanh %319 : vector<8x128xf32>
    %321 = arith.mulf %316, %320 : vector<8x128xf32>
    %322 = arith.truncf %321 : vector<8x128xf32> to vector<8x128xbf16>
    %c0_134 = arith.constant 0 : index
    %c0_135 = arith.constant 0 : index
    %323 = vector.load %arg3[%c0_134, %c0_135] : memref<128x512xbf16, #tpu.memory_space<vmem>>, vector<128x512xbf16>
    %cst_136 = arith.constant dense<0.000000e+00> : vector<8x512xf32>
    %324 = tpu.matmul %322, %323, %cst_136 {dimension_numbers = #tpu.dot_dimension_numbers<[1], [0], [0], [1], [0, 0, 1, 1], [], []>} : vector<8x128xbf16>, vector<128x512xbf16>, vector<8x512xf32> -> vector<8x512xf32>
    %c0_137 = arith.constant 0 : index
    %c0_138 = arith.constant 0 : index
    %325 = vector.load %arg5[%c0_137, %c0_138] : memref<1x512xf32, #tpu.memory_space<vmem>>, vector<1x512xf32>
    %326 = vector.broadcast %325 : vector<1x512xf32> to vector<8x512xf32>
    %327 = arith.addf %324, %326 : vector<8x512xf32>
    %cst_139 = arith.constant 0.000000e+00 : f32
    %328 = vector.broadcast %cst_139 : f32 to vector<8x128xf32>
    %cst_140 = arith.constant 0.000000e+00 : f32
    %329 = vector.broadcast %cst_140 : f32 to vector<8x128xf32>
    %330 = arith.truncf %328 : vector<8x128xf32> to vector<8x128xbf16>
    %331 = vector.extract_strided_slice %327 {offsets = [0, 0], sizes = [8, 128], strides = [1, 1]} : vector<8x512xf32> to vector<8x128xf32>
    %c0_141 = arith.constant 0 : index
    %c0_142 = arith.constant 0 : index
    %332 = vector.load %arg4[%c0_141, %c0_142] : memref<128x512xbf16, #tpu.memory_space<vmem>>, vector<128x128xbf16>
    %cst_143 = arith.constant dense<0.000000e+00> : vector<8x128xf32>
    %333 = tpu.matmul %330, %332, %cst_143 {dimension_numbers = #tpu.dot_dimension_numbers<[1], [0], [0], [1], [0, 0, 1, 1], [], []>} : vector<8x128xbf16>, vector<128x128xbf16>, vector<8x128xf32> -> vector<8x128xf32>
    %334 = arith.addf %331, %333 : vector<8x128xf32>
    %335 = arith.negf %334 : vector<8x128xf32>
    %336 = math.exp %335 : vector<8x128xf32>
    %cst_144 = arith.constant 1.000000e+00 : f32
    %337 = vector.broadcast %cst_144 : f32 to vector<8x128xf32>
    %338 = arith.addf %337, %336 : vector<8x128xf32>
    %339 = arith.divf %337, %338 : vector<8x128xf32>
    %340 = vector.extract_strided_slice %327 {offsets = [0, 128], sizes = [8, 128], strides = [1, 1]} : vector<8x512xf32> to vector<8x128xf32>
    %c0_145 = arith.constant 0 : index
    %c128_146 = arith.constant 128 : index
    %341 = vector.load %arg4[%c0_145, %c128_146] : memref<128x512xbf16, #tpu.memory_space<vmem>>, vector<128x128xbf16>
    %cst_147 = arith.constant dense<0.000000e+00> : vector<8x128xf32>
    %342 = tpu.matmul %330, %341, %cst_147 {dimension_numbers = #tpu.dot_dimension_numbers<[1], [0], [0], [1], [0, 0, 1, 1], [], []>} : vector<8x128xbf16>, vector<128x128xbf16>, vector<8x128xf32> -> vector<8x128xf32>
    %343 = arith.addf %340, %342 : vector<8x128xf32>
    %344 = arith.negf %343 : vector<8x128xf32>
    %345 = math.exp %344 : vector<8x128xf32>
    %cst_148 = arith.constant 1.000000e+00 : f32
    %346 = vector.broadcast %cst_148 : f32 to vector<8x128xf32>
    %347 = arith.addf %346, %345 : vector<8x128xf32>
    %348 = arith.divf %346, %347 : vector<8x128xf32>
    %349 = vector.extract_strided_slice %327 {offsets = [0, 256], sizes = [8, 128], strides = [1, 1]} : vector<8x512xf32> to vector<8x128xf32>
    %c0_149 = arith.constant 0 : index
    %c256_150 = arith.constant 256 : index
    %350 = vector.load %arg4[%c0_149, %c256_150] : memref<128x512xbf16, #tpu.memory_space<vmem>>, vector<128x128xbf16>
    %cst_151 = arith.constant dense<0.000000e+00> : vector<8x128xf32>
    %351 = tpu.matmul %330, %350, %cst_151 {dimension_numbers = #tpu.dot_dimension_numbers<[1], [0], [0], [1], [0, 0, 1, 1], [], []>} : vector<8x128xbf16>, vector<128x128xbf16>, vector<8x128xf32> -> vector<8x128xf32>
    %352 = arith.addf %349, %351 : vector<8x128xf32>
    %353 = math.tanh %352 : vector<8x128xf32>
    %354 = vector.extract_strided_slice %327 {offsets = [0, 384], sizes = [8, 128], strides = [1, 1]} : vector<8x512xf32> to vector<8x128xf32>
    %c0_152 = arith.constant 0 : index
    %c384_153 = arith.constant 384 : index
    %355 = vector.load %arg4[%c0_152, %c384_153] : memref<128x512xbf16, #tpu.memory_space<vmem>>, vector<128x128xbf16>
    %cst_154 = arith.constant dense<0.000000e+00> : vector<8x128xf32>
    %356 = tpu.matmul %330, %355, %cst_154 {dimension_numbers = #tpu.dot_dimension_numbers<[1], [0], [0], [1], [0, 0, 1, 1], [], []>} : vector<8x128xbf16>, vector<128x128xbf16>, vector<8x128xf32> -> vector<8x128xf32>
    %357 = arith.addf %354, %356 : vector<8x128xf32>
    %358 = arith.negf %357 : vector<8x128xf32>
    %359 = math.exp %358 : vector<8x128xf32>
    %cst_155 = arith.constant 1.000000e+00 : f32
    %360 = vector.broadcast %cst_155 : f32 to vector<8x128xf32>
    %361 = arith.addf %360, %359 : vector<8x128xf32>
    %362 = arith.divf %360, %361 : vector<8x128xf32>
    %363 = arith.mulf %348, %329 : vector<8x128xf32>
    %364 = arith.mulf %339, %353 : vector<8x128xf32>
    %365 = arith.addf %363, %364 : vector<8x128xf32>
    %366 = math.tanh %365 : vector<8x128xf32>
    %367 = arith.mulf %362, %366 : vector<8x128xf32>
    %c0_156 = arith.constant 0 : index
    %c0_157 = arith.constant 0 : index
    %c0_158 = arith.constant 0 : index
    %368 = vector.load %arg6[%c0_156, %c0_157, %c0_158] : memref<8x8x128xf32, #tpu.memory_space<vmem>>, vector<1x8x128xf32>
    %369 = vector.shape_cast %368 : vector<1x8x128xf32> to vector<8x128xf32>
    %370 = vector.shape_cast %367 : vector<8x128xf32> to vector<1x8x128xf32>
    tpu.vector_store %arg6[%c0_156, %c0_157, %c0_158], %370 {strides = array<i32>} : memref<8x8x128xf32, #tpu.memory_space<vmem>>, vector<1x8x128xf32>,
    %371 = arith.truncf %367 : vector<8x128xf32> to vector<8x128xbf16>
    %372 = vector.extract_strided_slice %327 {offsets = [0, 0], sizes = [8, 128], strides = [1, 1]} : vector<8x512xf32> to vector<8x128xf32>
    %c0_159 = arith.constant 0 : index
    %c0_160 = arith.constant 0 : index
    %373 = vector.load %arg4[%c0_159, %c0_160] : memref<128x512xbf16, #tpu.memory_space<vmem>>, vector<128x128xbf16>
    %cst_161 = arith.constant dense<0.000000e+00> : vector<8x128xf32>
    %374 = tpu.matmul %371, %373, %cst_161 {dimension_numbers = #tpu.dot_dimension_numbers<[1], [0], [0], [1], [0, 0, 1, 1], [], []>} : vector<8x128xbf16>, vector<128x128xbf16>, vector<8x128xf32> -> vector<8x128xf32>
    %375 = arith.addf %372, %374 : vector<8x128xf32>
    %376 = arith.negf %375 : vector<8x128xf32>
    %377 = math.exp %376 : vector<8x128xf32>
    %cst_162 = arith.constant 1.000000e+00 : f32
    %378 = vector.broadcast %cst_162 : f32 to vector<8x128xf32>
    %379 = arith.addf %378, %377 : vector<8x128xf32>
    %380 = arith.divf %378, %379 : vector<8x128xf32>
    %381 = vector.extract_strided_slice %327 {offsets = [0, 128], sizes = [8, 128], strides = [1, 1]} : vector<8x512xf32> to vector<8x128xf32>
    %c0_163 = arith.constant 0 : index
    %c128_164 = arith.constant 128 : index
    %382 = vector.load %arg4[%c0_163, %c128_164] : memref<128x512xbf16, #tpu.memory_space<vmem>>, vector<128x128xbf16>
    %cst_165 = arith.constant dense<0.000000e+00> : vector<8x128xf32>
    %383 = tpu.matmul %371, %382, %cst_165 {dimension_numbers = #tpu.dot_dimension_numbers<[1], [0], [0], [1], [0, 0, 1, 1], [], []>} : vector<8x128xbf16>, vector<128x128xbf16>, vector<8x128xf32> -> vector<8x128xf32>
    %384 = arith.addf %381, %383 : vector<8x128xf32>
    %385 = arith.negf %384 : vector<8x128xf32>
    %386 = math.exp %385 : vector<8x128xf32>
    %cst_166 = arith.constant 1.000000e+00 : f32
    %387 = vector.broadcast %cst_166 : f32 to vector<8x128xf32>
    %388 = arith.addf %387, %386 : vector<8x128xf32>
    %389 = arith.divf %387, %388 : vector<8x128xf32>
    %390 = vector.extract_strided_slice %327 {offsets = [0, 256], sizes = [8, 128], strides = [1, 1]} : vector<8x512xf32> to vector<8x128xf32>
    %c0_167 = arith.constant 0 : index
    %c256_168 = arith.constant 256 : index
    %391 = vector.load %arg4[%c0_167, %c256_168] : memref<128x512xbf16, #tpu.memory_space<vmem>>, vector<128x128xbf16>
    %cst_169 = arith.constant dense<0.000000e+00> : vector<8x128xf32>
    %392 = tpu.matmul %371, %391, %cst_169 {dimension_numbers = #tpu.dot_dimension_numbers<[1], [0], [0], [1], [0, 0, 1, 1], [], []>} : vector<8x128xbf16>, vector<128x128xbf16>, vector<8x128xf32> -> vector<8x128xf32>
    %393 = arith.addf %390, %392 : vector<8x128xf32>
    %394 = math.tanh %393 : vector<8x128xf32>
    %395 = vector.extract_strided_slice %327 {offsets = [0, 384], sizes = [8, 128], strides = [1, 1]} : vector<8x512xf32> to vector<8x128xf32>
    %c0_170 = arith.constant 0 : index
    %c384_171 = arith.constant 384 : index
    %396 = vector.load %arg4[%c0_170, %c384_171] : memref<128x512xbf16, #tpu.memory_space<vmem>>, vector<128x128xbf16>
    %cst_172 = arith.constant dense<0.000000e+00> : vector<8x128xf32>
    %397 = tpu.matmul %371, %396, %cst_172 {dimension_numbers = #tpu.dot_dimension_numbers<[1], [0], [0], [1], [0, 0, 1, 1], [], []>} : vector<8x128xbf16>, vector<128x128xbf16>, vector<8x128xf32> -> vector<8x128xf32>
    %398 = arith.addf %395, %397 : vector<8x128xf32>
    %399 = arith.negf %398 : vector<8x128xf32>
    %400 = math.exp %399 : vector<8x128xf32>
    %cst_173 = arith.constant 1.000000e+00 : f32
    %401 = vector.broadcast %cst_173 : f32 to vector<8x128xf32>
    %402 = arith.addf %401, %400 : vector<8x128xf32>
    %403 = arith.divf %401, %402 : vector<8x128xf32>
    %404 = arith.mulf %389, %365 : vector<8x128xf32>
    %405 = arith.mulf %380, %394 : vector<8x128xf32>
    %406 = arith.addf %404, %405 : vector<8x128xf32>
    %407 = math.tanh %406 : vector<8x128xf32>
    %408 = arith.mulf %403, %407 : vector<8x128xf32>
    %c1_174 = arith.constant 1 : index
    %c0_175 = arith.constant 0 : index
    %c0_176 = arith.constant 0 : index
    %409 = vector.load %arg6[%c1_174, %c0_175, %c0_176] : memref<8x8x128xf32, #tpu.memory_space<vmem>>, vector<1x8x128xf32>
    %410 = vector.shape_cast %409 : vector<1x8x128xf32> to vector<8x128xf32>
    %411 = vector.shape_cast %408 : vector<8x128xf32> to vector<1x8x128xf32>
    tpu.vector_store %arg6[%c1_174, %c0_175, %c0_176], %411 {strides = array<i32>} : memref<8x8x128xf32, #tpu.memory_space<vmem>>, vector<1x8x128xf32>,
    %412 = arith.truncf %408 : vector<8x128xf32> to vector<8x128xbf16>
    %413 = vector.extract_strided_slice %327 {offsets = [0, 0], sizes = [8, 128], strides = [1, 1]} : vector<8x512xf32> to vector<8x128xf32>
    %c0_177 = arith.constant 0 : index
    %c0_178 = arith.constant 0 : index
    %414 = vector.load %arg4[%c0_177, %c0_178] : memref<128x512xbf16, #tpu.memory_space<vmem>>, vector<128x128xbf16>
    %cst_179 = arith.constant dense<0.000000e+00> : vector<8x128xf32>
    %415 = tpu.matmul %412, %414, %cst_179 {dimension_numbers = #tpu.dot_dimension_numbers<[1], [0], [0], [1], [0, 0, 1, 1], [], []>} : vector<8x128xbf16>, vector<128x128xbf16>, vector<8x128xf32> -> vector<8x128xf32>
    %416 = arith.addf %413, %415 : vector<8x128xf32>
    %417 = arith.negf %416 : vector<8x128xf32>
    %418 = math.exp %417 : vector<8x128xf32>
    %cst_180 = arith.constant 1.000000e+00 : f32
    %419 = vector.broadcast %cst_180 : f32 to vector<8x128xf32>
    %420 = arith.addf %419, %418 : vector<8x128xf32>
    %421 = arith.divf %419, %420 : vector<8x128xf32>
    %422 = vector.extract_strided_slice %327 {offsets = [0, 128], sizes = [8, 128], strides = [1, 1]} : vector<8x512xf32> to vector<8x128xf32>
    %c0_181 = arith.constant 0 : index
    %c128_182 = arith.constant 128 : index
    %423 = vector.load %arg4[%c0_181, %c128_182] : memref<128x512xbf16, #tpu.memory_space<vmem>>, vector<128x128xbf16>
    %cst_183 = arith.constant dense<0.000000e+00> : vector<8x128xf32>
    %424 = tpu.matmul %412, %423, %cst_183 {dimension_numbers = #tpu.dot_dimension_numbers<[1], [0], [0], [1], [0, 0, 1, 1], [], []>} : vector<8x128xbf16>, vector<128x128xbf16>, vector<8x128xf32> -> vector<8x128xf32>
    %425 = arith.addf %422, %424 : vector<8x128xf32>
    %426 = arith.negf %425 : vector<8x128xf32>
    %427 = math.exp %426 : vector<8x128xf32>
    %cst_184 = arith.constant 1.000000e+00 : f32
    %428 = vector.broadcast %cst_184 : f32 to vector<8x128xf32>
    %429 = arith.addf %428, %427 : vector<8x128xf32>
    %430 = arith.divf %428, %429 : vector<8x128xf32>
    %431 = vector.extract_strided_slice %327 {offsets = [0, 256], sizes = [8, 128], strides = [1, 1]} : vector<8x512xf32> to vector<8x128xf32>
    %c0_185 = arith.constant 0 : index
    %c256_186 = arith.constant 256 : index
    %432 = vector.load %arg4[%c0_185, %c256_186] : memref<128x512xbf16, #tpu.memory_space<vmem>>, vector<128x128xbf16>
    %cst_187 = arith.constant dense<0.000000e+00> : vector<8x128xf32>
    %433 = tpu.matmul %412, %432, %cst_187 {dimension_numbers = #tpu.dot_dimension_numbers<[1], [0], [0], [1], [0, 0, 1, 1], [], []>} : vector<8x128xbf16>, vector<128x128xbf16>, vector<8x128xf32> -> vector<8x128xf32>
    %434 = arith.addf %431, %433 : vector<8x128xf32>
    %435 = math.tanh %434 : vector<8x128xf32>
    %436 = vector.extract_strided_slice %327 {offsets = [0, 384], sizes = [8, 128], strides = [1, 1]} : vector<8x512xf32> to vector<8x128xf32>
    %c0_188 = arith.constant 0 : index
    %c384_189 = arith.constant 384 : index
    %437 = vector.load %arg4[%c0_188, %c384_189] : memref<128x512xbf16, #tpu.memory_space<vmem>>, vector<128x128xbf16>
    %cst_190 = arith.constant dense<0.000000e+00> : vector<8x128xf32>
    %438 = tpu.matmul %412, %437, %cst_190 {dimension_numbers = #tpu.dot_dimension_numbers<[1], [0], [0], [1], [0, 0, 1, 1], [], []>} : vector<8x128xbf16>, vector<128x128xbf16>, vector<8x128xf32> -> vector<8x128xf32>
    %439 = arith.addf %436, %438 : vector<8x128xf32>
    %440 = arith.negf %439 : vector<8x128xf32>
    %441 = math.exp %440 : vector<8x128xf32>
    %cst_191 = arith.constant 1.000000e+00 : f32
    %442 = vector.broadcast %cst_191 : f32 to vector<8x128xf32>
    %443 = arith.addf %442, %441 : vector<8x128xf32>
    %444 = arith.divf %442, %443 : vector<8x128xf32>
    %445 = arith.mulf %430, %406 : vector<8x128xf32>
    %446 = arith.mulf %421, %435 : vector<8x128xf32>
    %447 = arith.addf %445, %446 : vector<8x128xf32>
    %448 = math.tanh %447 : vector<8x128xf32>
    %449 = arith.mulf %444, %448 : vector<8x128xf32>
    %c2_192 = arith.constant 2 : index
    %c0_193 = arith.constant 0 : index
    %c0_194 = arith.constant 0 : index
    %450 = vector.load %arg6[%c2_192, %c0_193, %c0_194] : memref<8x8x128xf32, #tpu.memory_space<vmem>>, vector<1x8x128xf32>
    %451 = vector.shape_cast %450 : vector<1x8x128xf32> to vector<8x128xf32>
    %452 = vector.shape_cast %449 : vector<8x128xf32> to vector<1x8x128xf32>
    tpu.vector_store %arg6[%c2_192, %c0_193, %c0_194], %452 {strides = array<i32>} : memref<8x8x128xf32, #tpu.memory_space<vmem>>, vector<1x8x128xf32>,
    %453 = arith.truncf %449 : vector<8x128xf32> to vector<8x128xbf16>
    %454 = vector.extract_strided_slice %327 {offsets = [0, 0], sizes = [8, 128], strides = [1, 1]} : vector<8x512xf32> to vector<8x128xf32>
    %c0_195 = arith.constant 0 : index
    %c0_196 = arith.constant 0 : index
    %455 = vector.load %arg4[%c0_195, %c0_196] : memref<128x512xbf16, #tpu.memory_space<vmem>>, vector<128x128xbf16>
    %cst_197 = arith.constant dense<0.000000e+00> : vector<8x128xf32>
    %456 = tpu.matmul %453, %455, %cst_197 {dimension_numbers = #tpu.dot_dimension_numbers<[1], [0], [0], [1], [0, 0, 1, 1], [], []>} : vector<8x128xbf16>, vector<128x128xbf16>, vector<8x128xf32> -> vector<8x128xf32>
    %457 = arith.addf %454, %456 : vector<8x128xf32>
    %458 = arith.negf %457 : vector<8x128xf32>
    %459 = math.exp %458 : vector<8x128xf32>
    %cst_198 = arith.constant 1.000000e+00 : f32
    %460 = vector.broadcast %cst_198 : f32 to vector<8x128xf32>
    %461 = arith.addf %460, %459 : vector<8x128xf32>
    %462 = arith.divf %460, %461 : vector<8x128xf32>
    %463 = vector.extract_strided_slice %327 {offsets = [0, 128], sizes = [8, 128], strides = [1, 1]} : vector<8x512xf32> to vector<8x128xf32>
    %c0_199 = arith.constant 0 : index
    %c128_200 = arith.constant 128 : index
    %464 = vector.load %arg4[%c0_199, %c128_200] : memref<128x512xbf16, #tpu.memory_space<vmem>>, vector<128x128xbf16>
    %cst_201 = arith.constant dense<0.000000e+00> : vector<8x128xf32>
    %465 = tpu.matmul %453, %464, %cst_201 {dimension_numbers = #tpu.dot_dimension_numbers<[1], [0], [0], [1], [0, 0, 1, 1], [], []>} : vector<8x128xbf16>, vector<128x128xbf16>, vector<8x128xf32> -> vector<8x128xf32>
    %466 = arith.addf %463, %465 : vector<8x128xf32>
    %467 = arith.negf %466 : vector<8x128xf32>
    %468 = math.exp %467 : vector<8x128xf32>
    %cst_202 = arith.constant 1.000000e+00 : f32
    %469 = vector.broadcast %cst_202 : f32 to vector<8x128xf32>
    %470 = arith.addf %469, %468 : vector<8x128xf32>
    %471 = arith.divf %469, %470 : vector<8x128xf32>
    %472 = vector.extract_strided_slice %327 {offsets = [0, 256], sizes = [8, 128], strides = [1, 1]} : vector<8x512xf32> to vector<8x128xf32>
    %c0_203 = arith.constant 0 : index
    %c256_204 = arith.constant 256 : index
    %473 = vector.load %arg4[%c0_203, %c256_204] : memref<128x512xbf16, #tpu.memory_space<vmem>>, vector<128x128xbf16>
    %cst_205 = arith.constant dense<0.000000e+00> : vector<8x128xf32>
    %474 = tpu.matmul %453, %473, %cst_205 {dimension_numbers = #tpu.dot_dimension_numbers<[1], [0], [0], [1], [0, 0, 1, 1], [], []>} : vector<8x128xbf16>, vector<128x128xbf16>, vector<8x128xf32> -> vector<8x128xf32>
    %475 = arith.addf %472, %474 : vector<8x128xf32>
    %476 = math.tanh %475 : vector<8x128xf32>
    %477 = vector.extract_strided_slice %327 {offsets = [0, 384], sizes = [8, 128], strides = [1, 1]} : vector<8x512xf32> to vector<8x128xf32>
    %c0_206 = arith.constant 0 : index
    %c384_207 = arith.constant 384 : index
    %478 = vector.load %arg4[%c0_206, %c384_207] : memref<128x512xbf16, #tpu.memory_space<vmem>>, vector<128x128xbf16>
    %cst_208 = arith.constant dense<0.000000e+00> : vector<8x128xf32>
    %479 = tpu.matmul %453, %478, %cst_208 {dimension_numbers = #tpu.dot_dimension_numbers<[1], [0], [0], [1], [0, 0, 1, 1], [], []>} : vector<8x128xbf16>, vector<128x128xbf16>, vector<8x128xf32> -> vector<8x128xf32>
    %480 = arith.addf %477, %479 : vector<8x128xf32>
    %481 = arith.negf %480 : vector<8x128xf32>
    %482 = math.exp %481 : vector<8x128xf32>
    %cst_209 = arith.constant 1.000000e+00 : f32
    %483 = vector.broadcast %cst_209 : f32 to vector<8x128xf32>
    %484 = arith.addf %483, %482 : vector<8x128xf32>
    %485 = arith.divf %483, %484 : vector<8x128xf32>
    %486 = arith.mulf %471, %447 : vector<8x128xf32>
    %487 = arith.mulf %462, %476 : vector<8x128xf32>
    %488 = arith.addf %486, %487 : vector<8x128xf32>
    %489 = math.tanh %488 : vector<8x128xf32>
    %490 = arith.mulf %485, %489 : vector<8x128xf32>
    %c3_210 = arith.constant 3 : index
    %c0_211 = arith.constant 0 : index
    %c0_212 = arith.constant 0 : index
    %491 = vector.load %arg6[%c3_210, %c0_211, %c0_212] : memref<8x8x128xf32, #tpu.memory_space<vmem>>, vector<1x8x128xf32>
    %492 = vector.shape_cast %491 : vector<1x8x128xf32> to vector<8x128xf32>
    %493 = vector.shape_cast %490 : vector<8x128xf32> to vector<1x8x128xf32>
    tpu.vector_store %arg6[%c3_210, %c0_211, %c0_212], %493 {strides = array<i32>} : memref<8x8x128xf32, #tpu.memory_space<vmem>>, vector<1x8x128xf32>,
    %494 = arith.truncf %490 : vector<8x128xf32> to vector<8x128xbf16>
    %495 = vector.extract_strided_slice %327 {offsets = [0, 0], sizes = [8, 128], strides = [1, 1]} : vector<8x512xf32> to vector<8x128xf32>
    %c0_213 = arith.constant 0 : index
    %c0_214 = arith.constant 0 : index
    %496 = vector.load %arg4[%c0_213, %c0_214] : memref<128x512xbf16, #tpu.memory_space<vmem>>, vector<128x128xbf16>
    %cst_215 = arith.constant dense<0.000000e+00> : vector<8x128xf32>
    %497 = tpu.matmul %494, %496, %cst_215 {dimension_numbers = #tpu.dot_dimension_numbers<[1], [0], [0], [1], [0, 0, 1, 1], [], []>} : vector<8x128xbf16>, vector<128x128xbf16>, vector<8x128xf32> -> vector<8x128xf32>
    %498 = arith.addf %495, %497 : vector<8x128xf32>
    %499 = arith.negf %498 : vector<8x128xf32>
    %500 = math.exp %499 : vector<8x128xf32>
    %cst_216 = arith.constant 1.000000e+00 : f32
    %501 = vector.broadcast %cst_216 : f32 to vector<8x128xf32>
    %502 = arith.addf %501, %500 : vector<8x128xf32>
    %503 = arith.divf %501, %502 : vector<8x128xf32>
    %504 = vector.extract_strided_slice %327 {offsets = [0, 128], sizes = [8, 128], strides = [1, 1]} : vector<8x512xf32> to vector<8x128xf32>
    %c0_217 = arith.constant 0 : index
    %c128_218 = arith.constant 128 : index
    %505 = vector.load %arg4[%c0_217, %c128_218] : memref<128x512xbf16, #tpu.memory_space<vmem>>, vector<128x128xbf16>
    %cst_219 = arith.constant dense<0.000000e+00> : vector<8x128xf32>
    %506 = tpu.matmul %494, %505, %cst_219 {dimension_numbers = #tpu.dot_dimension_numbers<[1], [0], [0], [1], [0, 0, 1, 1], [], []>} : vector<8x128xbf16>, vector<128x128xbf16>, vector<8x128xf32> -> vector<8x128xf32>
    %507 = arith.addf %504, %506 : vector<8x128xf32>
    %508 = arith.negf %507 : vector<8x128xf32>
    %509 = math.exp %508 : vector<8x128xf32>
    %cst_220 = arith.constant 1.000000e+00 : f32
    %510 = vector.broadcast %cst_220 : f32 to vector<8x128xf32>
    %511 = arith.addf %510, %509 : vector<8x128xf32>
    %512 = arith.divf %510, %511 : vector<8x128xf32>
    %513 = vector.extract_strided_slice %327 {offsets = [0, 256], sizes = [8, 128], strides = [1, 1]} : vector<8x512xf32> to vector<8x128xf32>
    %c0_221 = arith.constant 0 : index
    %c256_222 = arith.constant 256 : index
    %514 = vector.load %arg4[%c0_221, %c256_222] : memref<128x512xbf16, #tpu.memory_space<vmem>>, vector<128x128xbf16>
    %cst_223 = arith.constant dense<0.000000e+00> : vector<8x128xf32>
    %515 = tpu.matmul %494, %514, %cst_223 {dimension_numbers = #tpu.dot_dimension_numbers<[1], [0], [0], [1], [0, 0, 1, 1], [], []>} : vector<8x128xbf16>, vector<128x128xbf16>, vector<8x128xf32> -> vector<8x128xf32>
    %516 = arith.addf %513, %515 : vector<8x128xf32>
    %517 = math.tanh %516 : vector<8x128xf32>
    %518 = vector.extract_strided_slice %327 {offsets = [0, 384], sizes = [8, 128], strides = [1, 1]} : vector<8x512xf32> to vector<8x128xf32>
    %c0_224 = arith.constant 0 : index
    %c384_225 = arith.constant 384 : index
    %519 = vector.load %arg4[%c0_224, %c384_225] : memref<128x512xbf16, #tpu.memory_space<vmem>>, vector<128x128xbf16>
    %cst_226 = arith.constant dense<0.000000e+00> : vector<8x128xf32>
    %520 = tpu.matmul %494, %519, %cst_226 {dimension_numbers = #tpu.dot_dimension_numbers<[1], [0], [0], [1], [0, 0, 1, 1], [], []>} : vector<8x128xbf16>, vector<128x128xbf16>, vector<8x128xf32> -> vector<8x128xf32>
    %521 = arith.addf %518, %520 : vector<8x128xf32>
    %522 = arith.negf %521 : vector<8x128xf32>
    %523 = math.exp %522 : vector<8x128xf32>
    %cst_227 = arith.constant 1.000000e+00 : f32
    %524 = vector.broadcast %cst_227 : f32 to vector<8x128xf32>
    %525 = arith.addf %524, %523 : vector<8x128xf32>
    %526 = arith.divf %524, %525 : vector<8x128xf32>
    %527 = arith.mulf %512, %488 : vector<8x128xf32>
    %528 = arith.mulf %503, %517 : vector<8x128xf32>
    %529 = arith.addf %527, %528 : vector<8x128xf32>
    %530 = math.tanh %529 : vector<8x128xf32>
    %531 = arith.mulf %526, %530 : vector<8x128xf32>
    %c4_228 = arith.constant 4 : index
    %c0_229 = arith.constant 0 : index
    %c0_230 = arith.constant 0 : index
    %532 = vector.load %arg6[%c4_228, %c0_229, %c0_230] : memref<8x8x128xf32, #tpu.memory_space<vmem>>, vector<1x8x128xf32>
    %533 = vector.shape_cast %532 : vector<1x8x128xf32> to vector<8x128xf32>
    %534 = vector.shape_cast %531 : vector<8x128xf32> to vector<1x8x128xf32>
    tpu.vector_store %arg6[%c4_228, %c0_229, %c0_230], %534 {strides = array<i32>} : memref<8x8x128xf32, #tpu.memory_space<vmem>>, vector<1x8x128xf32>,
    %535 = arith.truncf %531 : vector<8x128xf32> to vector<8x128xbf16>
    %536 = vector.extract_strided_slice %327 {offsets = [0, 0], sizes = [8, 128], strides = [1, 1]} : vector<8x512xf32> to vector<8x128xf32>
    %c0_231 = arith.constant 0 : index
    %c0_232 = arith.constant 0 : index
    %537 = vector.load %arg4[%c0_231, %c0_232] : memref<128x512xbf16, #tpu.memory_space<vmem>>, vector<128x128xbf16>
    %cst_233 = arith.constant dense<0.000000e+00> : vector<8x128xf32>
    %538 = tpu.matmul %535, %537, %cst_233 {dimension_numbers = #tpu.dot_dimension_numbers<[1], [0], [0], [1], [0, 0, 1, 1], [], []>} : vector<8x128xbf16>, vector<128x128xbf16>, vector<8x128xf32> -> vector<8x128xf32>
    %539 = arith.addf %536, %538 : vector<8x128xf32>
    %540 = arith.negf %539 : vector<8x128xf32>
    %541 = math.exp %540 : vector<8x128xf32>
    %cst_234 = arith.constant 1.000000e+00 : f32
    %542 = vector.broadcast %cst_234 : f32 to vector<8x128xf32>
    %543 = arith.addf %542, %541 : vector<8x128xf32>
    %544 = arith.divf %542, %543 : vector<8x128xf32>
    %545 = vector.extract_strided_slice %327 {offsets = [0, 128], sizes = [8, 128], strides = [1, 1]} : vector<8x512xf32> to vector<8x128xf32>
    %c0_235 = arith.constant 0 : index
    %c128_236 = arith.constant 128 : index
    %546 = vector.load %arg4[%c0_235, %c128_236] : memref<128x512xbf16, #tpu.memory_space<vmem>>, vector<128x128xbf16>
    %cst_237 = arith.constant dense<0.000000e+00> : vector<8x128xf32>
    %547 = tpu.matmul %535, %546, %cst_237 {dimension_numbers = #tpu.dot_dimension_numbers<[1], [0], [0], [1], [0, 0, 1, 1], [], []>} : vector<8x128xbf16>, vector<128x128xbf16>, vector<8x128xf32> -> vector<8x128xf32>
    %548 = arith.addf %545, %547 : vector<8x128xf32>
    %549 = arith.negf %548 : vector<8x128xf32>
    %550 = math.exp %549 : vector<8x128xf32>
    %cst_238 = arith.constant 1.000000e+00 : f32
    %551 = vector.broadcast %cst_238 : f32 to vector<8x128xf32>
    %552 = arith.addf %551, %550 : vector<8x128xf32>
    %553 = arith.divf %551, %552 : vector<8x128xf32>
    %554 = vector.extract_strided_slice %327 {offsets = [0, 256], sizes = [8, 128], strides = [1, 1]} : vector<8x512xf32> to vector<8x128xf32>
    %c0_239 = arith.constant 0 : index
    %c256_240 = arith.constant 256 : index
    %555 = vector.load %arg4[%c0_239, %c256_240] : memref<128x512xbf16, #tpu.memory_space<vmem>>, vector<128x128xbf16>
    %cst_241 = arith.constant dense<0.000000e+00> : vector<8x128xf32>
    %556 = tpu.matmul %535, %555, %cst_241 {dimension_numbers = #tpu.dot_dimension_numbers<[1], [0], [0], [1], [0, 0, 1, 1], [], []>} : vector<8x128xbf16>, vector<128x128xbf16>, vector<8x128xf32> -> vector<8x128xf32>
    %557 = arith.addf %554, %556 : vector<8x128xf32>
    %558 = math.tanh %557 : vector<8x128xf32>
    %559 = vector.extract_strided_slice %327 {offsets = [0, 384], sizes = [8, 128], strides = [1, 1]} : vector<8x512xf32> to vector<8x128xf32>
    %c0_242 = arith.constant 0 : index
    %c384_243 = arith.constant 384 : index
    %560 = vector.load %arg4[%c0_242, %c384_243] : memref<128x512xbf16, #tpu.memory_space<vmem>>, vector<128x128xbf16>
    %cst_244 = arith.constant dense<0.000000e+00> : vector<8x128xf32>
    %561 = tpu.matmul %535, %560, %cst_244 {dimension_numbers = #tpu.dot_dimension_numbers<[1], [0], [0], [1], [0, 0, 1, 1], [], []>} : vector<8x128xbf16>, vector<128x128xbf16>, vector<8x128xf32> -> vector<8x128xf32>
    %562 = arith.addf %559, %561 : vector<8x128xf32>
    %563 = arith.negf %562 : vector<8x128xf32>
    %564 = math.exp %563 : vector<8x128xf32>
    %cst_245 = arith.constant 1.000000e+00 : f32
    %565 = vector.broadcast %cst_245 : f32 to vector<8x128xf32>
    %566 = arith.addf %565, %564 : vector<8x128xf32>
    %567 = arith.divf %565, %566 : vector<8x128xf32>
    %568 = arith.mulf %553, %529 : vector<8x128xf32>
    %569 = arith.mulf %544, %558 : vector<8x128xf32>
    %570 = arith.addf %568, %569 : vector<8x128xf32>
    %571 = math.tanh %570 : vector<8x128xf32>
    %572 = arith.mulf %567, %571 : vector<8x128xf32>
    %c5_246 = arith.constant 5 : index
    %c0_247 = arith.constant 0 : index
    %c0_248 = arith.constant 0 : index
    %573 = vector.load %arg6[%c5_246, %c0_247, %c0_248] : memref<8x8x128xf32, #tpu.memory_space<vmem>>, vector<1x8x128xf32>
    %574 = vector.shape_cast %573 : vector<1x8x128xf32> to vector<8x128xf32>
    %575 = vector.shape_cast %572 : vector<8x128xf32> to vector<1x8x128xf32>
    tpu.vector_store %arg6[%c5_246, %c0_247, %c0_248], %575 {strides = array<i32>} : memref<8x8x128xf32, #tpu.memory_space<vmem>>, vector<1x8x128xf32>,
    %576 = arith.truncf %572 : vector<8x128xf32> to vector<8x128xbf16>
    %577 = vector.extract_strided_slice %327 {offsets = [0, 0], sizes = [8, 128], strides = [1, 1]} : vector<8x512xf32> to vector<8x128xf32>
    %c0_249 = arith.constant 0 : index
    %c0_250 = arith.constant 0 : index
    %578 = vector.load %arg4[%c0_249, %c0_250] : memref<128x512xbf16, #tpu.memory_space<vmem>>, vector<128x128xbf16>
    %cst_251 = arith.constant dense<0.000000e+00> : vector<8x128xf32>
    %579 = tpu.matmul %576, %578, %cst_251 {dimension_numbers = #tpu.dot_dimension_numbers<[1], [0], [0], [1], [0, 0, 1, 1], [], []>} : vector<8x128xbf16>, vector<128x128xbf16>, vector<8x128xf32> -> vector<8x128xf32>
    %580 = arith.addf %577, %579 : vector<8x128xf32>
    %581 = arith.negf %580 : vector<8x128xf32>
    %582 = math.exp %581 : vector<8x128xf32>
    %cst_252 = arith.constant 1.000000e+00 : f32
    %583 = vector.broadcast %cst_252 : f32 to vector<8x128xf32>
    %584 = arith.addf %583, %582 : vector<8x128xf32>
    %585 = arith.divf %583, %584 : vector<8x128xf32>
    %586 = vector.extract_strided_slice %327 {offsets = [0, 128], sizes = [8, 128], strides = [1, 1]} : vector<8x512xf32> to vector<8x128xf32>
    %c0_253 = arith.constant 0 : index
    %c128_254 = arith.constant 128 : index
    %587 = vector.load %arg4[%c0_253, %c128_254] : memref<128x512xbf16, #tpu.memory_space<vmem>>, vector<128x128xbf16>
    %cst_255 = arith.constant dense<0.000000e+00> : vector<8x128xf32>
    %588 = tpu.matmul %576, %587, %cst_255 {dimension_numbers = #tpu.dot_dimension_numbers<[1], [0], [0], [1], [0, 0, 1, 1], [], []>} : vector<8x128xbf16>, vector<128x128xbf16>, vector<8x128xf32> -> vector<8x128xf32>
    %589 = arith.addf %586, %588 : vector<8x128xf32>
    %590 = arith.negf %589 : vector<8x128xf32>
    %591 = math.exp %590 : vector<8x128xf32>
    %cst_256 = arith.constant 1.000000e+00 : f32
    %592 = vector.broadcast %cst_256 : f32 to vector<8x128xf32>
    %593 = arith.addf %592, %591 : vector<8x128xf32>
    %594 = arith.divf %592, %593 : vector<8x128xf32>
    %595 = vector.extract_strided_slice %327 {offsets = [0, 256], sizes = [8, 128], strides = [1, 1]} : vector<8x512xf32> to vector<8x128xf32>
    %c0_257 = arith.constant 0 : index
    %c256_258 = arith.constant 256 : index
    %596 = vector.load %arg4[%c0_257, %c256_258] : memref<128x512xbf16, #tpu.memory_space<vmem>>, vector<128x128xbf16>
    %cst_259 = arith.constant dense<0.000000e+00> : vector<8x128xf32>
    %597 = tpu.matmul %576, %596, %cst_259 {dimension_numbers = #tpu.dot_dimension_numbers<[1], [0], [0], [1], [0, 0, 1, 1], [], []>} : vector<8x128xbf16>, vector<128x128xbf16>, vector<8x128xf32> -> vector<8x128xf32>
    %598 = arith.addf %595, %597 : vector<8x128xf32>
    %599 = math.tanh %598 : vector<8x128xf32>
    %600 = vector.extract_strided_slice %327 {offsets = [0, 384], sizes = [8, 128], strides = [1, 1]} : vector<8x512xf32> to vector<8x128xf32>
    %c0_260 = arith.constant 0 : index
    %c384_261 = arith.constant 384 : index
    %601 = vector.load %arg4[%c0_260, %c384_261] : memref<128x512xbf16, #tpu.memory_space<vmem>>, vector<128x128xbf16>
    %cst_262 = arith.constant dense<0.000000e+00> : vector<8x128xf32>
    %602 = tpu.matmul %576, %601, %cst_262 {dimension_numbers = #tpu.dot_dimension_numbers<[1], [0], [0], [1], [0, 0, 1, 1], [], []>} : vector<8x128xbf16>, vector<128x128xbf16>, vector<8x128xf32> -> vector<8x128xf32>
    %603 = arith.addf %600, %602 : vector<8x128xf32>
    %604 = arith.negf %603 : vector<8x128xf32>
    %605 = math.exp %604 : vector<8x128xf32>
    %cst_263 = arith.constant 1.000000e+00 : f32
    %606 = vector.broadcast %cst_263 : f32 to vector<8x128xf32>
    %607 = arith.addf %606, %605 : vector<8x128xf32>
    %608 = arith.divf %606, %607 : vector<8x128xf32>
    %609 = arith.mulf %594, %570 : vector<8x128xf32>
    %610 = arith.mulf %585, %599 : vector<8x128xf32>
    %611 = arith.addf %609, %610 : vector<8x128xf32>
    %612 = math.tanh %611 : vector<8x128xf32>
    %613 = arith.mulf %608, %612 : vector<8x128xf32>
    %c6_264 = arith.constant 6 : index
    %c0_265 = arith.constant 0 : index
    %c0_266 = arith.constant 0 : index
    %614 = vector.load %arg6[%c6_264, %c0_265, %c0_266] : memref<8x8x128xf32, #tpu.memory_space<vmem>>, vector<1x8x128xf32>
    %615 = vector.shape_cast %614 : vector<1x8x128xf32> to vector<8x128xf32>
    %616 = vector.shape_cast %613 : vector<8x128xf32> to vector<1x8x128xf32>
    tpu.vector_store %arg6[%c6_264, %c0_265, %c0_266], %616 {strides = array<i32>} : memref<8x8x128xf32, #tpu.memory_space<vmem>>, vector<1x8x128xf32>,
    %617 = arith.truncf %613 : vector<8x128xf32> to vector<8x128xbf16>
    %618 = vector.extract_strided_slice %327 {offsets = [0, 0], sizes = [8, 128], strides = [1, 1]} : vector<8x512xf32> to vector<8x128xf32>
    %c0_267 = arith.constant 0 : index
    %c0_268 = arith.constant 0 : index
    %619 = vector.load %arg4[%c0_267, %c0_268] : memref<128x512xbf16, #tpu.memory_space<vmem>>, vector<128x128xbf16>
    %cst_269 = arith.constant dense<0.000000e+00> : vector<8x128xf32>
    %620 = tpu.matmul %617, %619, %cst_269 {dimension_numbers = #tpu.dot_dimension_numbers<[1], [0], [0], [1], [0, 0, 1, 1], [], []>} : vector<8x128xbf16>, vector<128x128xbf16>, vector<8x128xf32> -> vector<8x128xf32>
    %621 = arith.addf %618, %620 : vector<8x128xf32>
    %622 = arith.negf %621 : vector<8x128xf32>
    %623 = math.exp %622 : vector<8x128xf32>
    %cst_270 = arith.constant 1.000000e+00 : f32
    %624 = vector.broadcast %cst_270 : f32 to vector<8x128xf32>
    %625 = arith.addf %624, %623 : vector<8x128xf32>
    %626 = arith.divf %624, %625 : vector<8x128xf32>
    %627 = vector.extract_strided_slice %327 {offsets = [0, 128], sizes = [8, 128], strides = [1, 1]} : vector<8x512xf32> to vector<8x128xf32>
    %c0_271 = arith.constant 0 : index
    %c128_272 = arith.constant 128 : index
    %628 = vector.load %arg4[%c0_271, %c128_272] : memref<128x512xbf16, #tpu.memory_space<vmem>>, vector<128x128xbf16>
    %cst_273 = arith.constant dense<0.000000e+00> : vector<8x128xf32>
    %629 = tpu.matmul %617, %628, %cst_273 {dimension_numbers = #tpu.dot_dimension_numbers<[1], [0], [0], [1], [0, 0, 1, 1], [], []>} : vector<8x128xbf16>, vector<128x128xbf16>, vector<8x128xf32> -> vector<8x128xf32>
    %630 = arith.addf %627, %629 : vector<8x128xf32>
    %631 = arith.negf %630 : vector<8x128xf32>
    %632 = math.exp %631 : vector<8x128xf32>
    %cst_274 = arith.constant 1.000000e+00 : f32
    %633 = vector.broadcast %cst_274 : f32 to vector<8x128xf32>
    %634 = arith.addf %633, %632 : vector<8x128xf32>
    %635 = arith.divf %633, %634 : vector<8x128xf32>
    %636 = vector.extract_strided_slice %327 {offsets = [0, 256], sizes = [8, 128], strides = [1, 1]} : vector<8x512xf32> to vector<8x128xf32>
    %c0_275 = arith.constant 0 : index
    %c256_276 = arith.constant 256 : index
    %637 = vector.load %arg4[%c0_275, %c256_276] : memref<128x512xbf16, #tpu.memory_space<vmem>>, vector<128x128xbf16>
    %cst_277 = arith.constant dense<0.000000e+00> : vector<8x128xf32>
    %638 = tpu.matmul %617, %637, %cst_277 {dimension_numbers = #tpu.dot_dimension_numbers<[1], [0], [0], [1], [0, 0, 1, 1], [], []>} : vector<8x128xbf16>, vector<128x128xbf16>, vector<8x128xf32> -> vector<8x128xf32>
    %639 = arith.addf %636, %638 : vector<8x128xf32>
    %640 = math.tanh %639 : vector<8x128xf32>
    %641 = vector.extract_strided_slice %327 {offsets = [0, 384], sizes = [8, 128], strides = [1, 1]} : vector<8x512xf32> to vector<8x128xf32>
    %c0_278 = arith.constant 0 : index
    %c384_279 = arith.constant 384 : index
    %642 = vector.load %arg4[%c0_278, %c384_279] : memref<128x512xbf16, #tpu.memory_space<vmem>>, vector<128x128xbf16>
    %cst_280 = arith.constant dense<0.000000e+00> : vector<8x128xf32>
    %643 = tpu.matmul %617, %642, %cst_280 {dimension_numbers = #tpu.dot_dimension_numbers<[1], [0], [0], [1], [0, 0, 1, 1], [], []>} : vector<8x128xbf16>, vector<128x128xbf16>, vector<8x128xf32> -> vector<8x128xf32>
    %644 = arith.addf %641, %643 : vector<8x128xf32>
    %645 = arith.negf %644 : vector<8x128xf32>
    %646 = math.exp %645 : vector<8x128xf32>
    %cst_281 = arith.constant 1.000000e+00 : f32
    %647 = vector.broadcast %cst_281 : f32 to vector<8x128xf32>
    %648 = arith.addf %647, %646 : vector<8x128xf32>
    %649 = arith.divf %647, %648 : vector<8x128xf32>
    %650 = arith.mulf %635, %611 : vector<8x128xf32>
    %651 = arith.mulf %626, %640 : vector<8x128xf32>
    %652 = arith.addf %650, %651 : vector<8x128xf32>
    %653 = math.tanh %652 : vector<8x128xf32>
    %654 = arith.mulf %649, %653 : vector<8x128xf32>
    %c7_282 = arith.constant 7 : index
    %c0_283 = arith.constant 0 : index
    %c0_284 = arith.constant 0 : index
    %655 = vector.load %arg6[%c7_282, %c0_283, %c0_284] : memref<8x8x128xf32, #tpu.memory_space<vmem>>, vector<1x8x128xf32>
    %656 = vector.shape_cast %655 : vector<1x8x128xf32> to vector<8x128xf32>
    %657 = vector.shape_cast %654 : vector<8x128xf32> to vector<1x8x128xf32>
    tpu.vector_store %arg6[%c7_282, %c0_283, %c0_284], %657 {strides = array<i32>} : memref<8x8x128xf32, #tpu.memory_space<vmem>>, vector<1x8x128xf32>,
    return
  }
  func.func @transform_0(%arg0: i32) -> (i32, i32, i32) {
    %c0_i32 = arith.constant 0 : i32
    %c0_i32_0 = arith.constant 0 : i32
    %c0_i32_1 = arith.constant 0 : i32
    return %c0_i32, %arg0, %c0_i32_0 : i32, i32, i32
  }
  func.func @transform_1(%arg0: i32) -> (i32, i32) {
    %c0_i32 = arith.constant 0 : i32
    %c0_i32_0 = arith.constant 0 : i32
    %c0_i32_1 = arith.constant 0 : i32
    return %c0_i32, %c0_i32_0 : i32, i32
  }
  func.func @transform_2(%arg0: i32) -> (i32, i32) {
    %c0_i32 = arith.constant 0 : i32
    %c0_i32_0 = arith.constant 0 : i32
    %c0_i32_1 = arith.constant 0 : i32
    return %c0_i32, %c0_i32_0 : i32, i32
  }
  func.func @transform_3(%arg0: i32) -> (i32, i32) {
    %c0_i32 = arith.constant 0 : i32
    %c0_i32_0 = arith.constant 0 : i32
    %c0_i32_1 = arith.constant 0 : i32
    return %c0_i32, %c0_i32_0 : i32, i32
  }
  func.func @transform_4(%arg0: i32) -> (i32, i32) {
    %c0_i32 = arith.constant 0 : i32
    %c0_i32_0 = arith.constant 0 : i32
    %c0_i32_1 = arith.constant 0 : i32
    return %c0_i32, %c0_i32_0 : i32, i32
  }
  func.func @transform_5(%arg0: i32) -> (i32, i32, i32) {
    %c0_i32 = arith.constant 0 : i32
    %c0_i32_0 = arith.constant 0 : i32
    %c0_i32_1 = arith.constant 0 : i32
    return %c0_i32, %arg0, %c0_i32_0 : i32, i32, i32
  }
}

</mosaic_0001>

<bundles_post_ra>
// kernel: tpu_custom_call.1
= control target key start
LH: loop header
LB: loop body
LE: loop exit
PB: predicated region body
PF: predicated region fallthrough
CT: control target
= control target key end

     0   :  { %10 = vsyncpa [#allocation3], 0  ;;  %s10006_s0 = inlined_call_operand.hbm [shape: f32[8,8,512], index: 0, kind: input, shape index: {}]   ;;  %s10007_s1 = inlined_call_operand.hbm [shape: bf16[128,512], index: 1, kind: input, shape index: {}]   ;;  %s10008_s2 = inlined_call_operand.hbm [shape: bf16[128,512], index: 2, kind: input, shape index: {}]   ;;  %s10009_s3 = inlined_call_operand.hbm [shape: bf16[128,512], index: 3, kind: input, shape index: {}]   ;;  %s10010_s4 = inlined_call_operand.vmem [shape: f32[1,512], index: 4, kind: input, shape index: {}]   ;;  %s10011_s5 = inlined_call_operand.hbm [shape: f32[8,8,128], index: 5, kind: output, shape index: {}]  }
   0x1   :  { %11 = vsyncpa [#allocation6], 0 }
   0x2   :  { %12 = vsyncpa [#allocation9], 0 }
   0x3   :  { %13 = vsyncpa [#allocation4], 0  ;;  %s8785_s18 = smov [#allocation5]   ;;  %s8667_s22 = scalar_lea.hbm %s10007_s1, 4096 }
   0x4   :  { %s31_s19 = sshll.u32 %s8785_s18, 4  ;;  %p8668_p0 = scmp.ne.s32.totalorder %s10007_s1, %s8667_s22  ;;  %s32_s19 = int_to_ptr.vmem [resolvable:$true] %s31_s19 }
   0x5   :  { %p8671_p1 = scmp.lt.u32.totalorder %s8667_s22, %s10007_s1 }
   0x7   :  { %p8673_p2 = pnand %p8671_p1, %p8668_p0 }
   0x9   :  { %8676 = shalt.err (!%p8673_p2)
}
   0xa   :  { %s8677_s27 = scalar_lea.vmem %s32_s19, 4096  ;;  %p8682_p4 = scmp.lt.s32.totalorder %s32_s19, %s32_s19 }
   0xb   :  { %p8678_p3 = scmp.ne.s32.totalorder %s32_s19, %s8677_s27  ;;  %p8683_p5 = scmp.lt.s32.totalorder %s8677_s27, %s8677_s27 }
   0xd   :  { %p8684_p6 = por %p8683_p5, %p8682_p4 }
   0xf   :  { %p8685_p7 = pnand %p8684_p6, %p8678_p3 }
  0x11   :  { %8688 = shalt.err (!%p8685_p7)
}
  0x12   :  { %s8786_s28 = smov 256   ;;  %s8787_s29 = smov 16  }
  0x13   :  { %37 = dma.hbm_to_vmem [thread:$0]  %s10007_s1, 4096, %s32_s19, [#allocation6], %s8786_s28, %s8786_s28, %s8787_s29  }
  0x14   :  { %s8788_s7 = smov [#allocation2]   ;;  %s8689_s11 = scalar_lea.hbm %s10006_s0, 4096 }
  0x15   :  { %s19_s8 = sshll.u32 %s8788_s7, 4  ;;  %p8690_p8 = scmp.ne.s32.totalorder %s10006_s0, %s8689_s11  ;;  %s20_s8 = int_to_ptr.vmem [resolvable:$true] %s19_s8 }
  0x16   :  { %p8693_p9 = scmp.lt.u32.totalorder %s8689_s11, %s10006_s0 }
  0x18   :  { %p8695_p10 = pnand %p8693_p9, %p8690_p8 }
  0x1a   :  { %8698 = shalt.err (!%p8695_p10)
}
  0x1b   :  { %s8699_s16 = scalar_lea.vmem %s20_s8, 4096  ;;  %p8704_p12 = scmp.lt.s32.totalorder %s20_s8, %s20_s8 }
  0x1c   :  { %p8700_p11 = scmp.ne.s32.totalorder %s20_s8, %s8699_s16  ;;  %p8705_p13 = scmp.lt.s32.totalorder %s8699_s16, %s8699_s16 }
  0x1e   :  { %p8706_p0 = por %p8705_p13, %p8704_p12 }
  0x20   :  { %p8707_p1 = pnand %p8706_p0, %p8700_p11 }
  0x22   :  { %8710 = shalt.err (!%p8707_p1)
}
  0x23   :  { %s8789_s1 = smov 512   ;;  %s8790_s17 = smov 32  }
  0x24   :  { %25 = dma.hbm_to_vmem [thread:$0]  %s10006_s0, 4096, %s20_s8, [#allocation3], %s8789_s1, %s8789_s1, %s8790_s17  }
  0x25   :  { %s8791_s20 = smov [#allocation7]   ;;  %s8792_s22 = smov [#allocation8]  }
  0x26   :  { %s43_s21 = sshll.u32 %s8791_s20, 4  ;;  %s55_s23 = sshll.u32 %s8792_s22, 4  ;;  %s44_s21 = int_to_ptr.vmem [resolvable:$true] %s43_s21  ;;  %s8856_s23 = int_to_ptr.vmem [resolvable:$true] %s55_s23 }
  0x27   :  { %s8711_s26 = scalar_lea.hbm %s10008_s2, 4096 }
  0x28   :  { %p8712_p2 = scmp.ne.s32.totalorder %s10008_s2, %s8711_s26  ;;  %p8715_p3 = scmp.lt.u32.totalorder %s8711_s26, %s10008_s2 }
  0x2a   :  { %p8717_p4 = pnand %p8715_p3, %p8712_p2 }
  0x2c   :  { %8720 = shalt.err (!%p8717_p4)
}
  0x2d   :  { %s8721_s0 = scalar_lea.vmem %s44_s21, 4096  ;;  %p8726_p6 = scmp.lt.s32.totalorder %s44_s21, %s44_s21 }
  0x2e   :  { %p8722_p5 = scmp.ne.s32.totalorder %s44_s21, %s8721_s0  ;;  %p8727_p7 = scmp.lt.s32.totalorder %s8721_s0, %s8721_s0 }
  0x30   :  { %p8728_p8 = por %p8727_p7, %p8726_p6 }
  0x32   :  { %p8729_p9 = pnand %p8728_p8, %p8722_p5 }
  0x34   :  { %8732 = shalt.err (!%p8729_p9)
}
  0x35   :  { %49 = dma.hbm_to_vmem [thread:$0]  %s10008_s2, 4096, %s44_s21, [#allocation6], %s8786_s28, %s8786_s28, %s8787_s29  }
  0x36   :  { %s8733_s12 = scalar_lea.hbm %s10009_s3, 4096 }
  0x37   :  { %p8734_p10 = scmp.ne.s32.totalorder %s10009_s3, %s8733_s12  ;;  %p8737_p11 = scmp.lt.u32.totalorder %s8733_s12, %s10009_s3 }
  0x39   :  { %p8739_p12 = pnand %p8737_p11, %p8734_p10 }
  0x3b   :  { %8742 = shalt.err (!%p8739_p12)
}
  0x3c   :  { %s8743_s1 = scalar_lea.vmem %s8856_s23, 4096  ;;  %p8748_p0 = scmp.lt.s32.totalorder %s8856_s23, %s8856_s23 }
  0x3d   :  { %p8744_p13 = scmp.ne.s32.totalorder %s8856_s23, %s8743_s1  ;;  %p8749_p1 = scmp.lt.s32.totalorder %s8743_s1, %s8743_s1 }
  0x3f   :  { %p8750_p2 = por %p8749_p1, %p8748_p0 }
  0x41   :  { %p8751_p3 = pnand %p8750_p2, %p8744_p13 }
  0x43   :  { %8754 = shalt.err (!%p8751_p3)
}
  0x44   :  { %61 = dma.hbm_to_vmem [thread:$0]  %s10009_s3, 4096, %s8856_s23, [#allocation9], %s8786_s28, %s8786_s28, %s8787_s29  }
  0x45   :  { %8777 = dma.done.wait [#allocation3], 4096  }
  0x46   :  { %8778 = vsyncadd [#allocation3], 4294963200 }
  0x47   :  { %8779 = dma.done.wait [#allocation6], 8192  }
  0x48   :  { %8780 = vsyncadd [#allocation6], 4294959104 }
  0x49   :  { %8781 = dma.done.wait [#allocation9], 4096  }
  0x4a   :  { %8782 = vsyncadd [#allocation9], 4294963200  ;;  %v8793_v0 = vmov 0.0   ;;  %vm8794_vm0 = vmmov 0   ;;  %v8899_v1 = vld [vmem:[#allocation5] ss:$16 sps:$4 sm:$0xff]  }
  0x4b   :  { %6717 = vmatprep.subr.bf16.mxu0 %v8793_v0  ;;  %6737 = vmatprep.subr.bf16.mxu1 %v8793_v0  ;;  %v8901_v2 = vld [vmem:[#allocation5 + $0x4] ss:$16 sps:$4 sm:$0xff]   ;;  %v8904_v3 = vld [vmem:[#allocation5 + $0x20] ss:$16 sps:$4 sm:$0xff]   ;;  %v8027_v17 = vld [vmem:[#allocation5 + $0x8] ss:$16 sps:$4 sm:$0xff]  }
  0x4c   :  { %6733 = vmatprep.mubr.msk.bf16.mxu0 %vm8794_vm0, %v8793_v0  ;;  %6753 = vmatprep.mubr.msk.bf16.mxu1 %vm8794_vm0, %v8793_v0  ;;  %v8908_v4 = vld [vmem:[#allocation5 + $0x24] ss:$16 sps:$4 sm:$0xff]   ;;  %v8912_v5 = vld [vmem:[#allocation5 + $0x40] ss:$16 sps:$4 sm:$0xff]   ;;  %v8028_v18 = vld [vmem:[#allocation5 + $0xc] ss:$16 sps:$4 sm:$0xff]  }
  0x4d   :  { %6718 = vmatpush3.bf16.msra.mxu0 %v8899_v1  ;;  %6738 = vmatpush3.bf16.msra.mxu1 %v8901_v2  ;;  %v8916_v6 = vld [vmem:[#allocation5 + $0x44] ss:$16 sps:$4 sm:$0xff]   ;;  %v8920_v7 = vld [vmem:[#allocation5 + $0x60] ss:$16 sps:$4 sm:$0xff]   ;;  %v8029_v19 = vld [vmem:[#allocation5 + $0x28] ss:$16 sps:$4 sm:$0xff]  }
  0x4e   :  { %6719 = vmatprep.subr.bf16.mxu0 %v8793_v0  ;;  %6739 = vmatprep.subr.bf16.mxu1 %v8793_v0  ;;  %v8924_v8 = vld [vmem:[#allocation5 + $0x64] ss:$16 sps:$4 sm:$0xff]   ;;  %v8928_v9 = vld [vmem:[#allocation5 + $0x80] ss:$16 sps:$4 sm:$0xff]   ;;  %v8795_v20 = vmov 0   ;;  %v78_v42 = vld [vmem:[#allocation2 + $0x8] sm:$0xff] }
  0x4f   :  { %v8932_v10 = vld [vmem:[#allocation5 + $0x84] ss:$16 sps:$4 sm:$0xff]   ;;  %v8936_v11 = vld [vmem:[#allocation5 + $0xa0] ss:$16 sps:$4 sm:$0xff]   ;;  %v8030_v21 = vld [vmem:[#allocation5 + $0x2c] ss:$16 sps:$4 sm:$0xff]  }
  0x50   :  { %v8940_v12 = vld [vmem:[#allocation5 + $0xa4] ss:$16 sps:$4 sm:$0xff]   ;;  %v8944_v13 = vld [vmem:[#allocation5 + $0xc0] ss:$16 sps:$4 sm:$0xff]   ;;  %v8031_v22 = vld [vmem:[#allocation5 + $0x48] ss:$16 sps:$4 sm:$0xff]  }
  0x51   :  { %6720 = vmatpush3.bf16.msra.mxu0 %v8904_v3  ;;  %6740 = vmatpush3.bf16.msra.mxu1 %v8908_v4  ;;  %v8948_v14 = vld [vmem:[#allocation5 + $0xc4] ss:$16 sps:$4 sm:$0xff]   ;;  %v8952_v15 = vld [vmem:[#allocation5 + $0xe0] ss:$16 sps:$4 sm:$0xff]   ;;  %v8032_v23 = vld [vmem:[#allocation5 + $0x4c] ss:$16 sps:$4 sm:$0xff]  }
  0x52   :  { %6721 = vmatprep.subr.bf16.mxu0 %v8793_v0  ;;  %6741 = vmatprep.subr.bf16.mxu1 %v8793_v0  ;;  %v8956_v16 = vld [vmem:[#allocation5 + $0xe4] ss:$16 sps:$4 sm:$0xff]   ;;  %v8033_v24 = vld [vmem:[#allocation5 + $0x68] ss:$16 sps:$4 sm:$0xff]   ;;  %v8034_v25 = vld [vmem:[#allocation5 + $0x6c] ss:$16 sps:$4 sm:$0xff]  }
  0x53   :  { %v8035_v26 = vld [vmem:[#allocation5 + $0x88] ss:$16 sps:$4 sm:$0xff]   ;;  %v8036_v27 = vld [vmem:[#allocation5 + $0x8c] ss:$16 sps:$4 sm:$0xff]   ;;  %v77_v43 = vld [vmem:[#allocation2] sm:$0xff] }
  0x54   :  { %v8037_v28 = vld [vmem:[#allocation5 + $0xa8] ss:$16 sps:$4 sm:$0xff]   ;;  %v8038_v29 = vld [vmem:[#allocation5 + $0xac] ss:$16 sps:$4 sm:$0xff]   ;;  %v79_v52 = vld [vmem:[#allocation2 + $0x10] sm:$0xff] }
  0x55   :  { %6722 = vmatpush3.bf16.msra.mxu0 %v8912_v5  ;;  %6742 = vmatpush3.bf16.msra.mxu1 %v8916_v6  ;;  %v8039_v30 = vld [vmem:[#allocation5 + $0xc8] ss:$16 sps:$4 sm:$0xff]   ;;  %v8040_v31 = vld [vmem:[#allocation5 + $0xcc] ss:$16 sps:$4 sm:$0xff]  }
  0x56   :  { %6723 = vmatprep.subr.bf16.mxu0 %v8793_v0  ;;  %6743 = vmatprep.subr.bf16.mxu1 %v8793_v0  ;;  %v8041_v32 = vld [vmem:[#allocation5 + $0xe8] ss:$16 sps:$4 sm:$0xff]   ;;  %v8042_v33 = vld [vmem:[#allocation5 + $0xec] ss:$16 sps:$4 sm:$0xff]  }
  0x57   :  { %v80_v53 = vld [vmem:[#allocation2 + $0x18] sm:$0xff] }
  0x59   :  { %6724 = vmatpush3.bf16.msra.mxu0 %v8920_v7  ;;  %6744 = vmatpush3.bf16.msra.mxu1 %v8924_v8 }
  0x5a   :  { %6725 = vmatprep.subr.bf16.mxu0 %v8793_v0  ;;  %6745 = vmatprep.subr.bf16.mxu1 %v8793_v0 }
  0x5d   :  { %6726 = vmatpush3.bf16.msra.mxu0 %v8928_v9  ;;  %6746 = vmatpush3.bf16.msra.mxu1 %v8932_v10 }
  0x5e   :  { %6727 = vmatprep.subr.bf16.mxu0 %v8793_v0  ;;  %6747 = vmatprep.subr.bf16.mxu1 %v8793_v0 }
  0x61   :  { %6728 = vmatpush3.bf16.msra.mxu0 %v8936_v11  ;;  %6748 = vmatpush3.bf16.msra.mxu1 %v8940_v12 }
  0x62   :  { %6729 = vmatprep.subr.bf16.mxu0 %v8793_v0  ;;  %6749 = vmatprep.subr.bf16.mxu1 %v8793_v0 }
  0x65   :  { %6730 = vmatpush3.bf16.msra.mxu0 %v8944_v13  ;;  %6750 = vmatpush3.bf16.msra.mxu1 %v8948_v14 }
  0x66   :  { %6731 = vmatprep.subr.bf16.mxu0 %v8793_v0  ;;  %6751 = vmatprep.subr.bf16.mxu1 %v8793_v0 }
  0x69   :  { %6732 = vmatpush3.bf16.msra.mxu0 %v8952_v15  ;;  %6752 = vmatpush3.bf16.msra.mxu1 %v8956_v16 }
  0x6a   :  { %6757 = vmatprep.subr.bf16.mxu0 %v8793_v0  ;;  %6777 = vmatprep.subr.bf16.mxu1 %v8793_v0 }
  0x6c   :  { %6734 = vmatmul.mubr.bf16.vlgmr.msra.gmra.mrb[0].mxu0 %v8795_v20  ;;  %6754 = vmatmul.mubr.bf16.vlgmr.msra.gmra.mrb[0].mxu1 %v8795_v20 }
  0x6d   :  { %6758 = vmatpush3.bf16.msra.mxu0 %v8027_v17  ;;  %6778 = vmatpush3.bf16.msra.mxu1 %v8028_v18  ;;  %v9041_v17 = vld [vmem:[#allocation5 + $0x2c] ss:$16 sps:$4 sm:$0xff]   ;;  %v9046_v18 = vld [vmem:[#allocation5 + $0x48] ss:$16 sps:$4 sm:$0xff]  }
  0x6e   :  { %6759 = vmatprep.subr.bf16.mxu0 %v8793_v0  ;;  %6779 = vmatprep.subr.bf16.mxu1 %v8793_v0 }
  0x6f   :  { %6773 = vmatprep.mubr.msk.bf16.mxu0 %vm8794_vm0, %v8793_v0  ;;  %6793 = vmatprep.mubr.msk.bf16.mxu1 %vm8794_vm0, %v8793_v0 }
  0x71   :  { %6760 = vmatpush3.bf16.msra.mxu0 %v8029_v19  ;;  %6780 = vmatpush3.bf16.msra.mxu1 %v8030_v21  ;;  %v9049_v19 = vld [vmem:[#allocation5 + $0x4c] ss:$16 sps:$4 sm:$0xff]   ;;  %v9054_v21 = vld [vmem:[#allocation5 + $0x68] ss:$16 sps:$4 sm:$0xff]  }
  0x72   :  { %6761 = vmatprep.subr.bf16.mxu0 %v8793_v0  ;;  %6781 = vmatprep.subr.bf16.mxu1 %v8793_v0 }
  0x75   :  { %6762 = vmatpush3.bf16.msra.mxu0 %v8031_v22  ;;  %6782 = vmatpush3.bf16.msra.mxu1 %v8032_v23  ;;  %v9057_v22 = vld [vmem:[#allocation5 + $0x6c] ss:$16 sps:$4 sm:$0xff]   ;;  %v9062_v23 = vld [vmem:[#allocation5 + $0x88] ss:$16 sps:$4 sm:$0xff]  }
  0x76   :  { %6763 = vmatprep.subr.bf16.mxu0 %v8793_v0  ;;  %6783 = vmatprep.subr.bf16.mxu1 %v8793_v0 }
  0x79   :  { %6764 = vmatpush3.bf16.msra.mxu0 %v8033_v24  ;;  %6784 = vmatpush3.bf16.msra.mxu1 %v8034_v25  ;;  %v9065_v24 = vld [vmem:[#allocation5 + $0x8c] ss:$16 sps:$4 sm:$0xff]   ;;  %v9070_v25 = vld [vmem:[#allocation5 + $0xa8] ss:$16 sps:$4 sm:$0xff]  }
  0x7a   :  { %6765 = vmatprep.subr.bf16.mxu0 %v8793_v0  ;;  %6785 = vmatprep.subr.bf16.mxu1 %v8793_v0 }
  0x7d   :  { %6766 = vmatpush3.bf16.msra.mxu0 %v8035_v26  ;;  %6786 = vmatpush3.bf16.msra.mxu1 %v8036_v27  ;;  %v9073_v26 = vld [vmem:[#allocation5 + $0xac] ss:$16 sps:$4 sm:$0xff]   ;;  %v9078_v27 = vld [vmem:[#allocation5 + $0xc8] ss:$16 sps:$4 sm:$0xff]  }
  0x7e   :  { %6767 = vmatprep.subr.bf16.mxu0 %v8793_v0  ;;  %6787 = vmatprep.subr.bf16.mxu1 %v8793_v0 }
  0x81   :  { %6768 = vmatpush3.bf16.msra.mxu0 %v8037_v28  ;;  %6788 = vmatpush3.bf16.msra.mxu1 %v8038_v29  ;;  %v9081_v28 = vld [vmem:[#allocation5 + $0xcc] ss:$16 sps:$4 sm:$0xff]   ;;  %v9086_v29 = vld [vmem:[#allocation5 + $0xe8] ss:$16 sps:$4 sm:$0xff]  }
  0x82   :  { %6769 = vmatprep.subr.bf16.mxu0 %v8793_v0  ;;  %6789 = vmatprep.subr.bf16.mxu1 %v8793_v0 }
  0x85   :  { %6770 = vmatpush3.bf16.msra.mxu0 %v8039_v30  ;;  %6790 = vmatpush3.bf16.msra.mxu1 %v8040_v31  ;;  %v9089_v30 = vld [vmem:[#allocation5 + $0xec] ss:$16 sps:$4 sm:$0xff]   ;;  %v9094_v31 = vld [vmem:[#allocation5] ss:$16 sps:$4 sm:$0xff]  }
  0x86   :  { %6771 = vmatprep.subr.bf16.mxu0 %v8793_v0  ;;  %6791 = vmatprep.subr.bf16.mxu1 %v8793_v0 }
  0x89   :  { %6772 = vmatpush3.bf16.msra.mxu0 %v8041_v32  ;;  %6792 = vmatpush3.bf16.msra.mxu1 %v8042_v33  ;;  %v9097_v32 = vld [vmem:[#allocation5 + $0x4] ss:$16 sps:$4 sm:$0xff]   ;;  %v9106_v33 = vld [vmem:[#allocation5 + $0x20] ss:$16 sps:$4 sm:$0xff]  }
  0x8a   :  { %6797 = vmatprep.subr.bf16.mxu0 %v8793_v0  ;;  %6817 = vmatprep.subr.bf16.mxu1 %v8793_v0 }
  0x8c   :  { %6774 = vmatmul.mubr.bf16.vlgmr.msra.gmra.mrb[4].mxu0 %v8795_v20  ;;  %6794 = vmatmul.mubr.bf16.vlgmr.msra.gmra.mrb[4].mxu1 %v8795_v20 }
  0x8d   :  { %6798 = vmatpush3.bf16.msra.mxu0 %v8899_v1  ;;  %6818 = vmatpush3.bf16.msra.mxu1 %v8901_v2 }
  0x8e   :  { %6799 = vmatprep.subr.bf16.mxu0 %v8793_v0  ;;  %6819 = vmatprep.subr.bf16.mxu1 %v8793_v0 }
  0x8f   :  { %6813 = vmatprep.mubr.msk.bf16.mxu0 %vm8794_vm0, %v8793_v0  ;;  %6833 = vmatprep.mubr.msk.bf16.mxu1 %vm8794_vm0, %v8793_v0 }
  0x91   :  { %6800 = vmatpush3.bf16.msra.mxu0 %v8904_v3  ;;  %6820 = vmatpush3.bf16.msra.mxu1 %v8908_v4 }
  0x92   :  { %6801 = vmatprep.subr.bf16.mxu0 %v8793_v0  ;;  %6821 = vmatprep.subr.bf16.mxu1 %v8793_v0 }
  0x95   :  { %6802 = vmatpush3.bf16.msra.mxu0 %v8912_v5  ;;  %6822 = vmatpush3.bf16.msra.mxu1 %v8916_v6 }
  0x96   :  { %6803 = vmatprep.subr.bf16.mxu0 %v8793_v0  ;;  %6823 = vmatprep.subr.bf16.mxu1 %v8793_v0 }
  0x99   :  { %6804 = vmatpush3.bf16.msra.mxu0 %v8920_v7  ;;  %6824 = vmatpush3.bf16.msra.mxu1 %v8924_v8 }
  0x9a   :  { %6805 = vmatprep.subr.bf16.mxu0 %v8793_v0  ;;  %6825 = vmatprep.subr.bf16.mxu1 %v8793_v0 }
  0x9d   :  { %6806 = vmatpush3.bf16.msra.mxu0 %v8928_v9  ;;  %6826 = vmatpush3.bf16.msra.mxu1 %v8932_v10 }
  0x9e   :  { %6807 = vmatprep.subr.bf16.mxu0 %v8793_v0  ;;  %6827 = vmatprep.subr.bf16.mxu1 %v8793_v0 }
  0xa1   :  { %6808 = vmatpush3.bf16.msra.mxu0 %v8936_v11  ;;  %6828 = vmatpush3.bf16.msra.mxu1 %v8940_v12 }
  0xa2   :  { %6809 = vmatprep.subr.bf16.mxu0 %v8793_v0  ;;  %6829 = vmatprep.subr.bf16.mxu1 %v8793_v0 }
  0xa5   :  { %6810 = vmatpush3.bf16.msra.mxu0 %v8944_v13  ;;  %6830 = vmatpush3.bf16.msra.mxu1 %v8948_v14  ;;  %v9026_v14 = vld [vmem:[#allocation5 + $0x8] ss:$16 sps:$4 sm:$0xff]  }
  0xa6   :  { %6811 = vmatprep.subr.bf16.mxu0 %v8793_v0  ;;  %6831 = vmatprep.subr.bf16.mxu1 %v8793_v0 }
  0xa9   :  { %6812 = vmatpush3.bf16.msra.mxu0 %v8952_v15  ;;  %6832 = vmatpush3.bf16.msra.mxu1 %v8956_v16  ;;  %v9029_v15 = vld [vmem:[#allocation5 + $0xc] ss:$16 sps:$4 sm:$0xff]   ;;  %v9038_v16 = vld [vmem:[#allocation5 + $0x28] ss:$16 sps:$4 sm:$0xff]  }
  0xaa   :  { %6837 = vmatprep.subr.bf16.mxu0 %v8793_v0  ;;  %6857 = vmatprep.subr.bf16.mxu1 %v8793_v0 }
 0x13f   :  { %v179_v34 = vpop.f32.mrb[0].mxu0  ;;  %v290_v35 = vpop.f32.mrb[0].mxu1 }
 0x140   :  { %v6735_v36 = vpop.f32.mrb[1].mxu0  ;;  %v6755_v37 = vpop.f32.mrb[1].mxu1  ;;  %v296_v44 = vadd.f32 %v290_v35, %v78_v42  ;;  %v185_v45 = vadd.f32 %v179_v34, %v77_v43  ;;  %v9109_v34 = vld [vmem:[#allocation5 + $0x24] ss:$16 sps:$4 sm:$0xff]   ;;  %v9114_v35 = vld [vmem:[#allocation5 + $0x40] ss:$16 sps:$4 sm:$0xff]  }
 0x141   :  { %v182_v38 = vpop.f32.mrb[2].mxu0  ;;  %v293_v39 = vpop.f32.mrb[2].mxu1  ;;  %v9117_v36 = vld [vmem:[#allocation5 + $0x44] ss:$16 sps:$4 sm:$0xff]   ;;  %v9122_v37 = vld [vmem:[#allocation5 + $0x60] ss:$16 sps:$4 sm:$0xff]  }
 0x142   :  { %v6736_v40 = vpop.f32.mrb[3].mxu0  ;;  %v6756_v41 = vpop.f32.mrb[3].mxu1  ;;  %v5790_v46 = vmul.f32 -1.442695, %v296_v44  ;;  %v5781_v47 = vmul.f32 -1.442695, %v185_v45 }
 0x143   :  { %v9125_v38 = vld [vmem:[#allocation5 + $0x64] ss:$16 sps:$4 sm:$0xff]   ;;  %v9130_v39 = vld [vmem:[#allocation5 + $0x80] ss:$16 sps:$4 sm:$0xff]  }
 0x144   :  { %8347 = vpow2.f32 %v5790_v46  ;;  %v9133_v40 = vld [vmem:[#allocation5 + $0x84] ss:$16 sps:$4 sm:$0xff]   ;;  %v9138_v41 = vld [vmem:[#allocation5 + $0xa0] ss:$16 sps:$4 sm:$0xff]  }
 0x145   :  { %8349 = vpow2.f32 %v5781_v47  ;;  %v9141_v42 = vld [vmem:[#allocation5 + $0xa4] ss:$16 sps:$4 sm:$0xff]   ;;  %v9146_v43 = vld [vmem:[#allocation5 + $0xc0] ss:$16 sps:$4 sm:$0xff]  }
 0x146   :  { %v9149_v44 = vld [vmem:[#allocation5 + $0xc4] ss:$16 sps:$4 sm:$0xff]   ;;  %v9154_v45 = vld [vmem:[#allocation5 + $0xe0] ss:$16 sps:$4 sm:$0xff]  }
 0x147   :  { %v9157_v46 = vld [vmem:[#allocation5 + $0xe4] ss:$16 sps:$4 sm:$0xff]  }
 0x14e   :  { %v8348_v48 = vpop.eup %8347 }
 0x14f   :  { %v8350_v49 = vpop.eup %8349  ;;  %v300_v50 = vadd.f32 1.0, %v8348_v48 }
 0x150   :  { %v189_v51 = vadd.f32 1.0, %v8350_v49 }
 0x151   :  { %8351 = vrcp.f32 %v300_v50 }
 0x152   :  { %8353 = vrcp.f32 %v189_v51 }
 0x15b   :  { %v8352_v2 = vpop.eup %8351 }
 0x15c   :  { %v8354_v3 = vpop.eup %8353  ;;  %v520_v5 = vmul.f32 0.0, %v8352_v2  ;;  %v528_v2 = vld [vmem:[#allocation2 + $0x30] sm:$0xff] }
 0x15f   :  { %v401_v54 = vpop.f32.mrb[4].mxu0  ;;  %v507_v56 = vpop.f32.mrb[4].mxu1 }
 0x160   :  { %v407_v55 = vadd.f32 %v401_v54, %v79_v52  ;;  %v6775_v57 = vpop.f32.mrb[5].mxu0  ;;  %v513_v58 = vadd.f32 %v507_v56, %v80_v53  ;;  %v6795_v59 = vpop.f32.mrb[5].mxu1  ;;  %v526_v56 = vld [vmem:[#allocation2 + $0x20] sm:$0xff] }
 0x161   :  { %v404_v60 = vpop.f32.mrb[6].mxu0  ;;  %v510_v61 = vpop.f32.mrb[6].mxu1 }
 0x162   :  { %8355 = vtanh.f32 %v407_v55  ;;  %v6776_v62 = vpop.f32.mrb[7].mxu0  ;;  %v5807_v63 = vmul.f32 -1.442695, %v513_v58  ;;  %v6796_v1 = vpop.f32.mrb[7].mxu1  ;;  %v527_v55 = vld [vmem:[#allocation2 + $0x28] sm:$0xff] }
 0x164   :  { %8357 = vpow2.f32 %v5807_v63 }
 0x16c   :  { %v8356_v4 = vpop.eup %8355 }
 0x16d   :  { %v521_v6 = vmul.f32 %v8356_v4, %v8354_v3  ;;  %v529_v3 = vld [vmem:[#allocation2 + $0x38] sm:$0xff] }
 0x16e   :  { %v8358_v7 = vpop.eup %8357 }
 0x16f   :  { %v9023_v8 = vadd.f32 %v521_v6, %v520_v5  ;;  %v517_v9 = vadd.f32 1.0, %v8358_v7 }
 0x171   :  { %8359 = vtanh.f32 %v9023_v8 }
 0x172   :  { %8361 = vrcp.f32 %v517_v9 }
 0x17b   :  { %v8360_v10 = vpop.eup %8359 }
 0x17c   :  { %v8362_v11 = vpop.eup %8361 }
 0x17d   :  { %v524_v12 = vmul.f32 %v8362_v11, %v8360_v10 }
 0x17f   :  { %v530_v13 = vpack.c.bf16 %v524_v12, %v524_v12 }
 0x181   :  { %6814 = vmatmul.mubr.bf16.vlgmr.msra.gmra.mrb[8].mxu0 %v530_v13  ;;  %6834 = vmatmul.mubr.bf16.vlgmr.msra.gmra.mrb[8].mxu1 %v530_v13 }
 0x182   :  { %6838 = vmatpush3.bf16.msra.mxu0 %v9026_v14  ;;  %6858 = vmatpush3.bf16.msra.mxu1 %v9029_v15 }
 0x183   :  { %6839 = vmatprep.subr.bf16.mxu0 %v8793_v0  ;;  %6859 = vmatprep.subr.bf16.mxu1 %v8793_v0 }
 0x184   :  { %6853 = vmatprep.mubr.msk.bf16.mxu0 %vm8794_vm0, %v8793_v0  ;;  %6873 = vmatprep.mubr.msk.bf16.mxu1 %vm8794_vm0, %v8793_v0 }
 0x186   :  { %6840 = vmatpush3.bf16.msra.mxu0 %v9038_v16  ;;  %6860 = vmatpush3.bf16.msra.mxu1 %v9041_v17 }
 0x187   :  { %6841 = vmatprep.subr.bf16.mxu0 %v8793_v0  ;;  %6861 = vmatprep.subr.bf16.mxu1 %v8793_v0 }
 0x18a   :  { %6842 = vmatpush3.bf16.msra.mxu0 %v9046_v18  ;;  %6862 = vmatpush3.bf16.msra.mxu1 %v9049_v19 }
 0x18b   :  { %6843 = vmatprep.subr.bf16.mxu0 %v8793_v0  ;;  %6863 = vmatprep.subr.bf16.mxu1 %v8793_v0 }
 0x18e   :  { %6844 = vmatpush3.bf16.msra.mxu0 %v9054_v21  ;;  %6864 = vmatpush3.bf16.msra.mxu1 %v9057_v22 }
 0x18f   :  { %6845 = vmatprep.subr.bf16.mxu0 %v8793_v0  ;;  %6865 = vmatprep.subr.bf16.mxu1 %v8793_v0 }
 0x192   :  { %6846 = vmatpush3.bf16.msra.mxu0 %v9062_v23  ;;  %6866 = vmatpush3.bf16.msra.mxu1 %v9065_v24 }
 0x193   :  { %6847 = vmatprep.subr.bf16.mxu0 %v8793_v0  ;;  %6867 = vmatprep.subr.bf16.mxu1 %v8793_v0 }
 0x196   :  { %6848 = vmatpush3.bf16.msra.mxu0 %v9070_v25  ;;  %6868 = vmatpush3.bf16.msra.mxu1 %v9073_v26 }
 0x197   :  { %6849 = vmatprep.subr.bf16.mxu0 %v8793_v0  ;;  %6869 = vmatprep.subr.bf16.mxu1 %v8793_v0 }
 0x19a   :  { %6850 = vmatpush3.bf16.msra.mxu0 %v9078_v27  ;;  %6870 = vmatpush3.bf16.msra.mxu1 %v9081_v28 }
 0x19b   :  { %6851 = vmatprep.subr.bf16.mxu0 %v8793_v0  ;;  %6871 = vmatprep.subr.bf16.mxu1 %v8793_v0 }
 0x19e   :  { %6852 = vmatpush3.bf16.msra.mxu0 %v9086_v29  ;;  %6872 = vmatpush3.bf16.msra.mxu1 %v9089_v30 }
 0x19f   :  { %6877 = vmatprep.subr.bf16.mxu0 %v8793_v0  ;;  %6897 = vmatprep.subr.bf16.mxu1 %v8793_v0 }
 0x1a1   :  { %6854 = vmatmul.mubr.bf16.vlgmr.msra.gmra.mrb[12].mxu0 %v530_v13  ;;  %6874 = vmatmul.mubr.bf16.vlgmr.msra.gmra.mrb[12].mxu1 %v530_v13 }
 0x1a2   :  { %6878 = vmatpush3.bf16.msra.mxu0 %v9094_v31  ;;  %6898 = vmatpush3.bf16.msra.mxu1 %v9097_v32 }
 0x1a3   :  { %6879 = vmatprep.subr.bf16.mxu0 %v8793_v0  ;;  %6899 = vmatprep.subr.bf16.mxu1 %v8793_v0 }
 0x1a4   :  { %6893 = vmatprep.mubr.msk.bf16.mxu0 %vm8794_vm0, %v8793_v0  ;;  %6913 = vmatprep.mubr.msk.bf16.mxu1 %vm8794_vm0, %v8793_v0 }
 0x1a6   :  { %6880 = vmatpush3.bf16.msra.mxu0 %v9106_v33  ;;  %6900 = vmatpush3.bf16.msra.mxu1 %v9109_v34 }
 0x1a7   :  { %6881 = vmatprep.subr.bf16.mxu0 %v8793_v0  ;;  %6901 = vmatprep.subr.bf16.mxu1 %v8793_v0 }
 0x1aa   :  { %6882 = vmatpush3.bf16.msra.mxu0 %v9114_v35  ;;  %6902 = vmatpush3.bf16.msra.mxu1 %v9117_v36 }
 0x1ab   :  { %6883 = vmatprep.subr.bf16.mxu0 %v8793_v0  ;;  %6903 = vmatprep.subr.bf16.mxu1 %v8793_v0 }
 0x1ae   :  { %6884 = vmatpush3.bf16.msra.mxu0 %v9122_v37  ;;  %6904 = vmatpush3.bf16.msra.mxu1 %v9125_v38 }
 0x1af   :  { %6885 = vmatprep.subr.bf16.mxu0 %v8793_v0  ;;  %6905 = vmatprep.subr.bf16.mxu1 %v8793_v0 }
 0x1b2   :  { %6886 = vmatpush3.bf16.msra.mxu0 %v9130_v39  ;;  %6906 = vmatpush3.bf16.msra.mxu1 %v9133_v40 }
 0x1b3   :  { %6887 = vmatprep.subr.bf16.mxu0 %v8793_v0  ;;  %6907 = vmatprep.subr.bf16.mxu1 %v8793_v0 }
 0x1b6   :  { %6888 = vmatpush3.bf16.msra.mxu0 %v9138_v41  ;;  %6908 = vmatpush3.bf16.msra.mxu1 %v9141_v42 }
 0x1b7   :  { %6889 = vmatprep.subr.bf16.mxu0 %v8793_v0  ;;  %6909 = vmatprep.subr.bf16.mxu1 %v8793_v0 }
 0x1ba   :  { %6890 = vmatpush3.bf16.msra.mxu0 %v9146_v43  ;;  %6910 = vmatpush3.bf16.msra.mxu1 %v9149_v44 }
 0x1bb   :  { %6891 = vmatprep.subr.bf16.mxu0 %v8793_v0  ;;  %6911 = vmatprep.subr.bf16.mxu1 %v8793_v0 }
 0x1be   :  { %6892 = vmatpush3.bf16.msra.mxu0 %v9154_v45  ;;  %6912 = vmatpush3.bf16.msra.mxu1 %v9157_v46 }
 0x1bf   :  { %6917 = vmatprep.subr.bf16.mxu0 %v8793_v0  ;;  %6937 = vmatprep.subr.bf16.mxu1 %v8793_v0 }
 0x254   :  { %v565_v47 = vpop.f32.mrb[8].mxu0  ;;  %v612_v48 = vpop.f32.mrb[8].mxu1 }
 0x255   :  { %v6815_v49 = vpop.f32.mrb[9].mxu0  ;;  %v6835_v50 = vpop.f32.mrb[9].mxu1  ;;  %v618_v57 = vadd.f32 %v612_v48, %v527_v55  ;;  %v571_v58 = vadd.f32 %v565_v47, %v526_v56 }
 0x256   :  { %v568_v51 = vpop.f32.mrb[10].mxu0  ;;  %v615_v52 = vpop.f32.mrb[10].mxu1 }
 0x257   :  { %v6816_v53 = vpop.f32.mrb[11].mxu0  ;;  %v6836_v54 = vpop.f32.mrb[11].mxu1  ;;  %v5809_v59 = vmul.f32 -1.442695, %v618_v57  ;;  %v5808_v60 = vmul.f32 -1.442695, %v571_v58 }
 0x259   :  { %8363 = vpow2.f32 %v5809_v59 }
 0x25a   :  { %8365 = vpow2.f32 %v5808_v60 }
 0x263   :  { %v8364_v61 = vpop.eup %8363 }
 0x264   :  { %v8366_v62 = vpop.eup %8365  ;;  %v622_v63 = vadd.f32 1.0, %v8364_v61 }
 0x265   :  { %v575_v1 = vadd.f32 1.0, %v8366_v62 }
 0x266   :  { %8367 = vrcp.f32 %v622_v63 }
 0x267   :  { %8369 = vrcp.f32 %v575_v1 }
 0x270   :  { %v8368_v49 = vpop.eup %8367 }
 0x271   :  { %v8370_v50 = vpop.eup %8369  ;;  %v714_v52 = vmul.f32 %v8368_v49, %v9023_v8  ;;  %v722_v49 = vld [vmem:[#allocation2 + $0x50] sm:$0xff] }
 0x274   :  { %v659_v4 = vpop.f32.mrb[12].mxu0  ;;  %v701_v5 = vpop.f32.mrb[12].mxu1 }
 0x275   :  { %v665_v6 = vadd.f32 %v659_v4, %v528_v2  ;;  %v707_v7 = vadd.f32 %v701_v5, %v529_v3  ;;  %v6855_v9 = vpop.f32.mrb[13].mxu0  ;;  %v6875_v10 = vpop.f32.mrb[13].mxu1  ;;  %v721_v5 = vld [vmem:[#allocation2 + $0x48] sm:$0xff] }
 0x276   :  { %v662_v11 = vpop.f32.mrb[14].mxu0  ;;  %v704_v12 = vpop.f32.mrb[14].mxu1 }
 0x277   :  { %8371 = vtanh.f32 %v665_v6  ;;  %v5810_v13 = vmul.f32 -1.442695, %v707_v7  ;;  %v6856_v47 = vpop.f32.mrb[15].mxu0  ;;  %v6876_v48 = vpop.f32.mrb[15].mxu1  ;;  %v720_v6 = vld [vmem:[#allocation2 + $0x40] sm:$0xff] }
 0x279   :  { %8373 = vpow2.f32 %v5810_v13 }
 0x281   :  { %v8372_v51 = vpop.eup %8371 }
 0x282   :  { %v715_v53 = vmul.f32 %v8372_v51, %v8370_v50  ;;  %v723_v50 = vld [vmem:[#allocation2 + $0x58] sm:$0xff] }
 0x283   :  { %v8374_v54 = vpop.eup %8373 }
 0x284   :  { %v9163_v55 = vadd.f32 %v715_v53, %v714_v52  ;;  %v711_v56 = vadd.f32 1.0, %v8374_v54 }
 0x286   :  { %8375 = vtanh.f32 %v9163_v55 }
 0x287   :  { %8377 = vrcp.f32 %v711_v56 }
 0x290   :  { %v8376_v57 = vpop.eup %8375 }
 0x291   :  { %v8378_v58 = vpop.eup %8377 }
 0x292   :  { %v718_v59 = vmul.f32 %v8378_v58, %v8376_v57 }
 0x294   :  { %v724_v60 = vpack.c.bf16 %v718_v59, %v718_v59 }
 0x296   :  { %6894 = vmatmul.mubr.bf16.vlgmr.msra.gmra.mrb[16].mxu0 %v724_v60  ;;  %6914 = vmatmul.mubr.bf16.vlgmr.msra.gmra.mrb[16].mxu1 %v724_v60 }
 0x297   :  { %6918 = vmatpush3.bf16.msra.mxu0 %v9026_v14  ;;  %6938 = vmatpush3.bf16.msra.mxu1 %v9029_v15 }
 0x298   :  { %6919 = vmatprep.subr.bf16.mxu0 %v8793_v0  ;;  %6939 = vmatprep.subr.bf16.mxu1 %v8793_v0 }
 0x299   :  { %6933 = vmatprep.mubr.msk.bf16.mxu0 %vm8794_vm0, %v8793_v0  ;;  %6953 = vmatprep.mubr.msk.bf16.mxu1 %vm8794_vm0, %v8793_v0 }
 0x29b   :  { %6920 = vmatpush3.bf16.msra.mxu0 %v9038_v16  ;;  %6940 = vmatpush3.bf16.msra.mxu1 %v9041_v17 }
 0x29c   :  { %6921 = vmatprep.subr.bf16.mxu0 %v8793_v0  ;;  %6941 = vmatprep.subr.bf16.mxu1 %v8793_v0 }
 0x29f   :  { %6922 = vmatpush3.bf16.msra.mxu0 %v9046_v18  ;;  %6942 = vmatpush3.bf16.msra.mxu1 %v9049_v19 }
 0x2a0   :  { %6923 = vmatprep.subr.bf16.mxu0 %v8793_v0  ;;  %6943 = vmatprep.subr.bf16.mxu1 %v8793_v0 }
 0x2a3   :  { %6924 = vmatpush3.bf16.msra.mxu0 %v9054_v21  ;;  %6944 = vmatpush3.bf16.msra.mxu1 %v9057_v22 }
 0x2a4   :  { %6925 = vmatprep.subr.bf16.mxu0 %v8793_v0  ;;  %6945 = vmatprep.subr.bf16.mxu1 %v8793_v0 }
 0x2a7   :  { %6926 = vmatpush3.bf16.msra.mxu0 %v9062_v23  ;;  %6946 = vmatpush3.bf16.msra.mxu1 %v9065_v24 }
 0x2a8   :  { %6927 = vmatprep.subr.bf16.mxu0 %v8793_v0  ;;  %6947 = vmatprep.subr.bf16.mxu1 %v8793_v0 }
 0x2ab   :  { %6928 = vmatpush3.bf16.msra.mxu0 %v9070_v25  ;;  %6948 = vmatpush3.bf16.msra.mxu1 %v9073_v26 }
 0x2ac   :  { %6929 = vmatprep.subr.bf16.mxu0 %v8793_v0  ;;  %6949 = vmatprep.subr.bf16.mxu1 %v8793_v0 }
 0x2af   :  { %6930 = vmatpush3.bf16.msra.mxu0 %v9078_v27  ;;  %6950 = vmatpush3.bf16.msra.mxu1 %v9081_v28 }
 0x2b0   :  { %6931 = vmatprep.subr.bf16.mxu0 %v8793_v0  ;;  %6951 = vmatprep.subr.bf16.mxu1 %v8793_v0 }
 0x2b3   :  { %6932 = vmatpush3.bf16.msra.mxu0 %v9086_v29  ;;  %6952 = vmatpush3.bf16.msra.mxu1 %v9089_v30 }
 0x2b4   :  { %6957 = vmatprep.subr.bf16.mxu0 %v8793_v0  ;;  %6977 = vmatprep.subr.bf16.mxu1 %v8793_v0 }
 0x2b6   :  { %6934 = vmatmul.mubr.bf16.vlgmr.msra.gmra.mrb[20].mxu0 %v724_v60  ;;  %6954 = vmatmul.mubr.bf16.vlgmr.msra.gmra.mrb[20].mxu1 %v724_v60 }
 0x2b7   :  { %6958 = vmatpush3.bf16.msra.mxu0 %v9094_v31  ;;  %6978 = vmatpush3.bf16.msra.mxu1 %v9097_v32 }
 0x2b8   :  { %6959 = vmatprep.subr.bf16.mxu0 %v8793_v0  ;;  %6979 = vmatprep.subr.bf16.mxu1 %v8793_v0 }
 0x2b9   :  { %6973 = vmatprep.mubr.msk.bf16.mxu0 %vm8794_vm0, %v8793_v0  ;;  %6993 = vmatprep.mubr.msk.bf16.mxu1 %vm8794_vm0, %v8793_v0 }
 0x2bb   :  { %6960 = vmatpush3.bf16.msra.mxu0 %v9106_v33  ;;  %6980 = vmatpush3.bf16.msra.mxu1 %v9109_v34 }
 0x2bc   :  { %6961 = vmatprep.subr.bf16.mxu0 %v8793_v0  ;;  %6981 = vmatprep.subr.bf16.mxu1 %v8793_v0 }
 0x2bf   :  { %6962 = vmatpush3.bf16.msra.mxu0 %v9114_v35  ;;  %6982 = vmatpush3.bf16.msra.mxu1 %v9117_v36 }
 0x2c0   :  { %6963 = vmatprep.subr.bf16.mxu0 %v8793_v0  ;;  %6983 = vmatprep.subr.bf16.mxu1 %v8793_v0 }
 0x2c3   :  { %6964 = vmatpush3.bf16.msra.mxu0 %v9122_v37  ;;  %6984 = vmatpush3.bf16.msra.mxu1 %v9125_v38 }
 0x2c4   :  { %6965 = vmatprep.subr.bf16.mxu0 %v8793_v0  ;;  %6985 = vmatprep.subr.bf16.mxu1 %v8793_v0 }
 0x2c7   :  { %6966 = vmatpush3.bf16.msra.mxu0 %v9130_v39  ;;  %6986 = vmatpush3.bf16.msra.mxu1 %v9133_v40 }
 0x2c8   :  { %6967 = vmatprep.subr.bf16.mxu0 %v8793_v0  ;;  %6987 = vmatprep.subr.bf16.mxu1 %v8793_v0 }
 0x2cb   :  { %6968 = vmatpush3.bf16.msra.mxu0 %v9138_v41  ;;  %6988 = vmatpush3.bf16.msra.mxu1 %v9141_v42 }
 0x2cc   :  { %6969 = vmatprep.subr.bf16.mxu0 %v8793_v0  ;;  %6989 = vmatprep.subr.bf16.mxu1 %v8793_v0 }
 0x2cf   :  { %6970 = vmatpush3.bf16.msra.mxu0 %v9146_v43  ;;  %6990 = vmatpush3.bf16.msra.mxu1 %v9149_v44 }
 0x2d0   :  { %6971 = vmatprep.subr.bf16.mxu0 %v8793_v0  ;;  %6991 = vmatprep.subr.bf16.mxu1 %v8793_v0 }
 0x2d3   :  { %6972 = vmatpush3.bf16.msra.mxu0 %v9154_v45  ;;  %6992 = vmatpush3.bf16.msra.mxu1 %v9157_v46 }
 0x2d4   :  { %6997 = vmatprep.subr.bf16.mxu0 %v8793_v0  ;;  %7017 = vmatprep.subr.bf16.mxu1 %v8793_v0 }
 0x369   :  { %v759_v8 = vpop.f32.mrb[16].mxu0  ;;  %v806_v61 = vpop.f32.mrb[16].mxu1 }
 0x36a   :  { %v6895_v62 = vpop.f32.mrb[17].mxu0  ;;  %v6915_v63 = vpop.f32.mrb[17].mxu1  ;;  %v812_v7 = vadd.f32 %v806_v61, %v721_v5  ;;  %v765_v9 = vadd.f32 %v759_v8, %v720_v6 }
 0x36b   :  { %v762_v1 = vpop.f32.mrb[18].mxu0  ;;  %v809_v2 = vpop.f32.mrb[18].mxu1 }
 0x36c   :  { %v6896_v3 = vpop.f32.mrb[19].mxu0  ;;  %v6916_v4 = vpop.f32.mrb[19].mxu1  ;;  %v5812_v10 = vmul.f32 -1.442695, %v812_v7  ;;  %v5811_v11 = vmul.f32 -1.442695, %v765_v9 }
 0x36e   :  { %8379 = vpow2.f32 %v5812_v10 }
 0x36f   :  { %8381 = vpow2.f32 %v5811_v11 }
 0x378   :  { %v8380_v12 = vpop.eup %8379 }
 0x379   :  { %v8382_v13 = vpop.eup %8381  ;;  %v816_v47 = vadd.f32 1.0, %v8380_v12 }
 0x37a   :  { %v769_v48 = vadd.f32 1.0, %v8382_v13 }
 0x37b   :  { %8383 = vrcp.f32 %v816_v47 }
 0x37c   :  { %8385 = vrcp.f32 %v769_v48 }
 0x385   :  { %v8384_v62 = vpop.eup %8383 }
 0x386   :  { %v8386_v63 = vpop.eup %8385  ;;  %v908_v2 = vmul.f32 %v8384_v62, %v9163_v55  ;;  %v916_v62 = vld [vmem:[#allocation2 + $0x70] sm:$0xff] }
 0x389   :  { %v853_v51 = vpop.f32.mrb[20].mxu0  ;;  %v895_v52 = vpop.f32.mrb[20].mxu1 }
 0x38a   :  { %v859_v53 = vadd.f32 %v853_v51, %v722_v49  ;;  %v901_v54 = vadd.f32 %v895_v52, %v723_v50  ;;  %v6935_v56 = vpop.f32.mrb[21].mxu0  ;;  %v6955_v57 = vpop.f32.mrb[21].mxu1  ;;  %v915_v52 = vld [vmem:[#allocation2 + $0x68] sm:$0xff] }
 0x38b   :  { %v856_v58 = vpop.f32.mrb[22].mxu0  ;;  %v898_v59 = vpop.f32.mrb[22].mxu1 }
 0x38c   :  { %8387 = vtanh.f32 %v859_v53  ;;  %v5813_v60 = vmul.f32 -1.442695, %v901_v54  ;;  %v6936_v8 = vpop.f32.mrb[23].mxu0  ;;  %v6956_v61 = vpop.f32.mrb[23].mxu1  ;;  %v914_v53 = vld [vmem:[#allocation2 + $0x60] sm:$0xff] }
 0x38e   :  { %8389 = vpow2.f32 %v5813_v60 }
 0x396   :  { %v8388_v1 = vpop.eup %8387 }
 0x397   :  { %v909_v3 = vmul.f32 %v8388_v1, %v8386_v63  ;;  %v917_v63 = vld [vmem:[#allocation2 + $0x78] sm:$0xff] }
 0x398   :  { %v8390_v4 = vpop.eup %8389 }
 0x399   :  { %v9239_v5 = vadd.f32 %v909_v3, %v908_v2  ;;  %v905_v6 = vadd.f32 1.0, %v8390_v4 }
 0x39b   :  { %8391 = vtanh.f32 %v9239_v5 }
 0x39c   :  { %8393 = vrcp.f32 %v905_v6 }
 0x3a5   :  { %v8392_v7 = vpop.eup %8391 }
 0x3a6   :  { %v8394_v9 = vpop.eup %8393 }
 0x3a7   :  { %v912_v10 = vmul.f32 %v8394_v9, %v8392_v7 }
 0x3a9   :  { %v918_v11 = vpack.c.bf16 %v912_v10, %v912_v10 }
 0x3ab   :  { %6974 = vmatmul.mubr.bf16.vlgmr.msra.gmra.mrb[24].mxu0 %v918_v11  ;;  %6994 = vmatmul.mubr.bf16.vlgmr.msra.gmra.mrb[24].mxu1 %v918_v11 }
 0x3ac   :  { %6998 = vmatpush3.bf16.msra.mxu0 %v9026_v14  ;;  %7018 = vmatpush3.bf16.msra.mxu1 %v9029_v15 }
 0x3ad   :  { %6999 = vmatprep.subr.bf16.mxu0 %v8793_v0  ;;  %7019 = vmatprep.subr.bf16.mxu1 %v8793_v0 }
 0x3ae   :  { %7013 = vmatprep.mubr.msk.bf16.mxu0 %vm8794_vm0, %v8793_v0  ;;  %7033 = vmatprep.mubr.msk.bf16.mxu1 %vm8794_vm0, %v8793_v0 }
 0x3b0   :  { %7000 = vmatpush3.bf16.msra.mxu0 %v9038_v16  ;;  %7020 = vmatpush3.bf16.msra.mxu1 %v9041_v17 }
 0x3b1   :  { %7001 = vmatprep.subr.bf16.mxu0 %v8793_v0  ;;  %7021 = vmatprep.subr.bf16.mxu1 %v8793_v0 }
 0x3b4   :  { %7002 = vmatpush3.bf16.msra.mxu0 %v9046_v18  ;;  %7022 = vmatpush3.bf16.msra.mxu1 %v9049_v19 }
 0x3b5   :  { %7003 = vmatprep.subr.bf16.mxu0 %v8793_v0  ;;  %7023 = vmatprep.subr.bf16.mxu1 %v8793_v0 }
 0x3b8   :  { %7004 = vmatpush3.bf16.msra.mxu0 %v9054_v21  ;;  %7024 = vmatpush3.bf16.msra.mxu1 %v9057_v22 }
 0x3b9   :  { %7005 = vmatprep.subr.bf16.mxu0 %v8793_v0  ;;  %7025 = vmatprep.subr.bf16.mxu1 %v8793_v0 }
 0x3bc   :  { %7006 = vmatpush3.bf16.msra.mxu0 %v9062_v23  ;;  %7026 = vmatpush3.bf16.msra.mxu1 %v9065_v24 }
 0x3bd   :  { %7007 = vmatprep.subr.bf16.mxu0 %v8793_v0  ;;  %7027 = vmatprep.subr.bf16.mxu1 %v8793_v0 }
 0x3c0   :  { %7008 = vmatpush3.bf16.msra.mxu0 %v9070_v25  ;;  %7028 = vmatpush3.bf16.msra.mxu1 %v9073_v26 }
 0x3c1   :  { %7009 = vmatprep.subr.bf16.mxu0 %v8793_v0  ;;  %7029 = vmatprep.subr.bf16.mxu1 %v8793_v0 }
 0x3c4   :  { %7010 = vmatpush3.bf16.msra.mxu0 %v9078_v27  ;;  %7030 = vmatpush3.bf16.msra.mxu1 %v9081_v28 }
 0x3c5   :  { %7011 = vmatprep.subr.bf16.mxu0 %v8793_v0  ;;  %7031 = vmatprep.subr.bf16.mxu1 %v8793_v0 }
 0x3c8   :  { %7012 = vmatpush3.bf16.msra.mxu0 %v9086_v29  ;;  %7032 = vmatpush3.bf16.msra.mxu1 %v9089_v30 }
 0x3c9   :  { %7037 = vmatprep.subr.bf16.mxu0 %v8793_v0  ;;  %7057 = vmatprep.subr.bf16.mxu1 %v8793_v0 }
 0x3cb   :  { %7014 = vmatmul.mubr.bf16.vlgmr.msra.gmra.mrb[28].mxu0 %v918_v11  ;;  %7034 = vmatmul.mubr.bf16.vlgmr.msra.gmra.mrb[28].mxu1 %v918_v11 }
 0x3cc   :  { %7038 = vmatpush3.bf16.msra.mxu0 %v9094_v31  ;;  %7058 = vmatpush3.bf16.msra.mxu1 %v9097_v32 }
 0x3cd   :  { %7039 = vmatprep.subr.bf16.mxu0 %v8793_v0  ;;  %7059 = vmatprep.subr.bf16.mxu1 %v8793_v0 }
 0x3ce   :  { %7053 = vmatprep.mubr.msk.bf16.mxu0 %vm8794_vm0, %v8793_v0  ;;  %7073 = vmatprep.mubr.msk.bf16.mxu1 %vm8794_vm0, %v8793_v0 }
 0x3d0   :  { %7040 = vmatpush3.bf16.msra.mxu0 %v9106_v33  ;;  %7060 = vmatpush3.bf16.msra.mxu1 %v9109_v34 }
 0x3d1   :  { %7041 = vmatprep.subr.bf16.mxu0 %v8793_v0  ;;  %7061 = vmatprep.subr.bf16.mxu1 %v8793_v0 }
 0x3d4   :  { %7042 = vmatpush3.bf16.msra.mxu0 %v9114_v35  ;;  %7062 = vmatpush3.bf16.msra.mxu1 %v9117_v36 }
 0x3d5   :  { %7043 = vmatprep.subr.bf16.mxu0 %v8793_v0  ;;  %7063 = vmatprep.subr.bf16.mxu1 %v8793_v0 }
 0x3d8   :  { %7044 = vmatpush3.bf16.msra.mxu0 %v9122_v37  ;;  %7064 = vmatpush3.bf16.msra.mxu1 %v9125_v38 }
 0x3d9   :  { %7045 = vmatprep.subr.bf16.mxu0 %v8793_v0  ;;  %7065 = vmatprep.subr.bf16.mxu1 %v8793_v0 }
 0x3dc   :  { %7046 = vmatpush3.bf16.msra.mxu0 %v9130_v39  ;;  %7066 = vmatpush3.bf16.msra.mxu1 %v9133_v40 }
 0x3dd   :  { %7047 = vmatprep.subr.bf16.mxu0 %v8793_v0  ;;  %7067 = vmatprep.subr.bf16.mxu1 %v8793_v0 }
 0x3e0   :  { %7048 = vmatpush3.bf16.msra.mxu0 %v9138_v41  ;;  %7068 = vmatpush3.bf16.msra.mxu1 %v9141_v42 }
 0x3e1   :  { %7049 = vmatprep.subr.bf16.mxu0 %v8793_v0  ;;  %7069 = vmatprep.subr.bf16.mxu1 %v8793_v0 }
 0x3e4   :  { %7050 = vmatpush3.bf16.msra.mxu0 %v9146_v43  ;;  %7070 = vmatpush3.bf16.msra.mxu1 %v9149_v44 }
 0x3e5   :  { %7051 = vmatprep.subr.bf16.mxu0 %v8793_v0  ;;  %7071 = vmatprep.subr.bf16.mxu1 %v8793_v0 }
 0x3e8   :  { %7052 = vmatpush3.bf16.msra.mxu0 %v9154_v45  ;;  %7072 = vmatpush3.bf16.msra.mxu1 %v9157_v46 }
 0x3e9   :  { %7077 = vmatprep.subr.bf16.mxu0 %v8793_v0  ;;  %7097 = vmatprep.subr.bf16.mxu1 %v8793_v0 }
 0x47e   :  { %v953_v55 = vpop.f32.mrb[24].mxu0  ;;  %v1000_v12 = vpop.f32.mrb[24].mxu1 }
 0x47f   :  { %v6975_v13 = vpop.f32.mrb[25].mxu0  ;;  %v6995_v47 = vpop.f32.mrb[25].mxu1  ;;  %v1006_v54 = vadd.f32 %v1000_v12, %v915_v52  ;;  %v959_v56 = vadd.f32 %v953_v55, %v914_v53 }
 0x480   :  { %v956_v48 = vpop.f32.mrb[26].mxu0  ;;  %v1003_v49 = vpop.f32.mrb[26].mxu1 }
 0x481   :  { %v6976_v50 = vpop.f32.mrb[27].mxu0  ;;  %v6996_v51 = vpop.f32.mrb[27].mxu1  ;;  %v5815_v57 = vmul.f32 -1.442695, %v1006_v54  ;;  %v5814_v58 = vmul.f32 -1.442695, %v959_v56 }
 0x483   :  { %8395 = vpow2.f32 %v5815_v57 }
 0x484   :  { %8397 = vpow2.f32 %v5814_v58 }
 0x48d   :  { %v8396_v59 = vpop.eup %8395 }
 0x48e   :  { %v8398_v60 = vpop.eup %8397  ;;  %v1010_v8 = vadd.f32 1.0, %v8396_v59 }
 0x48f   :  { %v963_v61 = vadd.f32 1.0, %v8398_v60 }
 0x490   :  { %8399 = vrcp.f32 %v1010_v8 }
 0x491   :  { %8401 = vrcp.f32 %v963_v61 }
 0x49a   :  { %v8400_v13 = vpop.eup %8399 }
 0x49b   :  { %v8402_v47 = vpop.eup %8401  ;;  %v1102_v49 = vmul.f32 %v8400_v13, %v9239_v5  ;;  %v1110_v13 = vld [vmem:[#allocation2 + $0x90] sm:$0xff] }
 0x49e   :  { %v1047_v1 = vpop.f32.mrb[28].mxu0  ;;  %v1089_v2 = vpop.f32.mrb[28].mxu1 }
 0x49f   :  { %v1053_v3 = vadd.f32 %v1047_v1, %v916_v62  ;;  %v1095_v4 = vadd.f32 %v1089_v2, %v917_v63  ;;  %v7015_v6 = vpop.f32.mrb[29].mxu0  ;;  %v7035_v7 = vpop.f32.mrb[29].mxu1  ;;  %v1109_v2 = vld [vmem:[#allocation2 + $0x88] sm:$0xff] }
 0x4a0   :  { %v1050_v9 = vpop.f32.mrb[30].mxu0  ;;  %v1092_v10 = vpop.f32.mrb[30].mxu1 }
 0x4a1   :  { %8403 = vtanh.f32 %v1053_v3  ;;  %v5816_v11 = vmul.f32 -1.442695, %v1095_v4  ;;  %v7016_v55 = vpop.f32.mrb[31].mxu0  ;;  %v7036_v12 = vpop.f32.mrb[31].mxu1  ;;  %v1108_v3 = vld [vmem:[#allocation2 + $0x80] sm:$0xff] }
 0x4a3   :  { %8405 = vpow2.f32 %v5816_v11 }
 0x4ab   :  { %v8404_v48 = vpop.eup %8403 }
 0x4ac   :  { %v1103_v50 = vmul.f32 %v8404_v48, %v8402_v47  ;;  %v1111_v47 = vld [vmem:[#allocation2 + $0x98] sm:$0xff] }
 0x4ad   :  { %v8406_v51 = vpop.eup %8405 }
 0x4ae   :  { %v9315_v52 = vadd.f32 %v1103_v50, %v1102_v49  ;;  %v1099_v53 = vadd.f32 1.0, %v8406_v51 }
 0x4b0   :  { %8407 = vtanh.f32 %v9315_v52 }
 0x4b1   :  { %8409 = vrcp.f32 %v1099_v53 }
 0x4ba   :  { %v8408_v54 = vpop.eup %8407 }
 0x4bb   :  { %v8410_v56 = vpop.eup %8409 }
 0x4bc   :  { %v1106_v57 = vmul.f32 %v8410_v56, %v8408_v54 }
 0x4be   :  { %v1112_v58 = vpack.c.bf16 %v1106_v57, %v1106_v57 }
 0x4c0   :  { %7054 = vmatmul.mubr.bf16.vlgmr.msra.gmra.mrb[32].mxu0 %v1112_v58  ;;  %7074 = vmatmul.mubr.bf16.vlgmr.msra.gmra.mrb[32].mxu1 %v1112_v58 }
 0x4c1   :  { %7078 = vmatpush3.bf16.msra.mxu0 %v9026_v14  ;;  %7098 = vmatpush3.bf16.msra.mxu1 %v9029_v15 }
 0x4c2   :  { %7079 = vmatprep.subr.bf16.mxu0 %v8793_v0  ;;  %7099 = vmatprep.subr.bf16.mxu1 %v8793_v0 }
 0x4c3   :  { %7093 = vmatprep.mubr.msk.bf16.mxu0 %vm8794_vm0, %v8793_v0  ;;  %7113 = vmatprep.mubr.msk.bf16.mxu1 %vm8794_vm0, %v8793_v0 }
 0x4c5   :  { %7080 = vmatpush3.bf16.msra.mxu0 %v9038_v16  ;;  %7100 = vmatpush3.bf16.msra.mxu1 %v9041_v17 }
 0x4c6   :  { %7081 = vmatprep.subr.bf16.mxu0 %v8793_v0  ;;  %7101 = vmatprep.subr.bf16.mxu1 %v8793_v0 }
 0x4c9   :  { %7082 = vmatpush3.bf16.msra.mxu0 %v9046_v18  ;;  %7102 = vmatpush3.bf16.msra.mxu1 %v9049_v19 }
 0x4ca   :  { %7083 = vmatprep.subr.bf16.mxu0 %v8793_v0  ;;  %7103 = vmatprep.subr.bf16.mxu1 %v8793_v0 }
 0x4cd   :  { %7084 = vmatpush3.bf16.msra.mxu0 %v9054_v21  ;;  %7104 = vmatpush3.bf16.msra.mxu1 %v9057_v22 }
 0x4ce   :  { %7085 = vmatprep.subr.bf16.mxu0 %v8793_v0  ;;  %7105 = vmatprep.subr.bf16.mxu1 %v8793_v0 }
 0x4d1   :  { %7086 = vmatpush3.bf16.msra.mxu0 %v9062_v23  ;;  %7106 = vmatpush3.bf16.msra.mxu1 %v9065_v24 }
 0x4d2   :  { %7087 = vmatprep.subr.bf16.mxu0 %v8793_v0  ;;  %7107 = vmatprep.subr.bf16.mxu1 %v8793_v0 }
 0x4d5   :  { %7088 = vmatpush3.bf16.msra.mxu0 %v9070_v25  ;;  %7108 = vmatpush3.bf16.msra.mxu1 %v9073_v26 }
 0x4d6   :  { %7089 = vmatprep.subr.bf16.mxu0 %v8793_v0  ;;  %7109 = vmatprep.subr.bf16.mxu1 %v8793_v0 }
 0x4d9   :  { %7090 = vmatpush3.bf16.msra.mxu0 %v9078_v27  ;;  %7110 = vmatpush3.bf16.msra.mxu1 %v9081_v28 }
 0x4da   :  { %7091 = vmatprep.subr.bf16.mxu0 %v8793_v0  ;;  %7111 = vmatprep.subr.bf16.mxu1 %v8793_v0 }
 0x4dd   :  { %7092 = vmatpush3.bf16.msra.mxu0 %v9086_v29  ;;  %7112 = vmatpush3.bf16.msra.mxu1 %v9089_v30 }
 0x4de   :  { %7117 = vmatprep.subr.bf16.mxu0 %v8793_v0  ;;  %7137 = vmatprep.subr.bf16.mxu1 %v8793_v0 }
 0x4e0   :  { %7094 = vmatmul.mubr.bf16.vlgmr.msra.gmra.mrb[36].mxu0 %v1112_v58  ;;  %7114 = vmatmul.mubr.bf16.vlgmr.msra.gmra.mrb[36].mxu1 %v1112_v58 }
 0x4e1   :  { %7118 = vmatpush3.bf16.msra.mxu0 %v9094_v31  ;;  %7138 = vmatpush3.bf16.msra.mxu1 %v9097_v32 }
 0x4e2   :  { %7119 = vmatprep.subr.bf16.mxu0 %v8793_v0  ;;  %7139 = vmatprep.subr.bf16.mxu1 %v8793_v0 }
 0x4e3   :  { %7133 = vmatprep.mubr.msk.bf16.mxu0 %vm8794_vm0, %v8793_v0  ;;  %7153 = vmatprep.mubr.msk.bf16.mxu1 %vm8794_vm0, %v8793_v0 }
 0x4e5   :  { %7120 = vmatpush3.bf16.msra.mxu0 %v9106_v33  ;;  %7140 = vmatpush3.bf16.msra.mxu1 %v9109_v34 }
 0x4e6   :  { %7121 = vmatprep.subr.bf16.mxu0 %v8793_v0  ;;  %7141 = vmatprep.subr.bf16.mxu1 %v8793_v0 }
 0x4e9   :  { %7122 = vmatpush3.bf16.msra.mxu0 %v9114_v35  ;;  %7142 = vmatpush3.bf16.msra.mxu1 %v9117_v36 }
 0x4ea   :  { %7123 = vmatprep.subr.bf16.mxu0 %v8793_v0  ;;  %7143 = vmatprep.subr.bf16.mxu1 %v8793_v0 }
 0x4ed   :  { %7124 = vmatpush3.bf16.msra.mxu0 %v9122_v37  ;;  %7144 = vmatpush3.bf16.msra.mxu1 %v9125_v38 }
 0x4ee   :  { %7125 = vmatprep.subr.bf16.mxu0 %v8793_v0  ;;  %7145 = vmatprep.subr.bf16.mxu1 %v8793_v0 }
 0x4f1   :  { %7126 = vmatpush3.bf16.msra.mxu0 %v9130_v39  ;;  %7146 = vmatpush3.bf16.msra.mxu1 %v9133_v40 }
 0x4f2   :  { %7127 = vmatprep.subr.bf16.mxu0 %v8793_v0  ;;  %7147 = vmatprep.subr.bf16.mxu1 %v8793_v0 }
 0x4f5   :  { %7128 = vmatpush3.bf16.msra.mxu0 %v9138_v41  ;;  %7148 = vmatpush3.bf16.msra.mxu1 %v9141_v42 }
 0x4f6   :  { %7129 = vmatprep.subr.bf16.mxu0 %v8793_v0  ;;  %7149 = vmatprep.subr.bf16.mxu1 %v8793_v0 }
 0x4f9   :  { %7130 = vmatpush3.bf16.msra.mxu0 %v9146_v43  ;;  %7150 = vmatpush3.bf16.msra.mxu1 %v9149_v44 }
 0x4fa   :  { %7131 = vmatprep.subr.bf16.mxu0 %v8793_v0  ;;  %7151 = vmatprep.subr.bf16.mxu1 %v8793_v0 }
 0x4fd   :  { %7132 = vmatpush3.bf16.msra.mxu0 %v9154_v45  ;;  %7152 = vmatpush3.bf16.msra.mxu1 %v9157_v46 }
 0x4fe   :  { %7157 = vmatprep.subr.bf16.mxu0 %v8793_v0  ;;  %7177 = vmatprep.subr.bf16.mxu1 %v8793_v0 }
 0x593   :  { %v1147_v5 = vpop.f32.mrb[32].mxu0  ;;  %v1194_v59 = vpop.f32.mrb[32].mxu1 }
 0x594   :  { %v7055_v60 = vpop.f32.mrb[33].mxu0  ;;  %v7075_v8 = vpop.f32.mrb[33].mxu1  ;;  %v1200_v4 = vadd.f32 %v1194_v59, %v1109_v2  ;;  %v1153_v6 = vadd.f32 %v1147_v5, %v1108_v3 }
 0x595   :  { %v1150_v61 = vpop.f32.mrb[34].mxu0  ;;  %v1197_v62 = vpop.f32.mrb[34].mxu1 }
 0x596   :  { %v7056_v63 = vpop.f32.mrb[35].mxu0  ;;  %v7076_v1 = vpop.f32.mrb[35].mxu1  ;;  %v5818_v7 = vmul.f32 -1.442695, %v1200_v4  ;;  %v5817_v9 = vmul.f32 -1.442695, %v1153_v6 }
 0x598   :  { %8411 = vpow2.f32 %v5818_v7 }
 0x599   :  { %8413 = vpow2.f32 %v5817_v9 }
 0x5a2   :  { %v8412_v10 = vpop.eup %8411 }
 0x5a3   :  { %v8414_v11 = vpop.eup %8413  ;;  %v1204_v55 = vadd.f32 1.0, %v8412_v10 }
 0x5a4   :  { %v1157_v12 = vadd.f32 1.0, %v8414_v11 }
 0x5a5   :  { %8415 = vrcp.f32 %v1204_v55 }
 0x5a6   :  { %8417 = vrcp.f32 %v1157_v12 }
 0x5af   :  { %v8416_v60 = vpop.eup %8415 }
 0x5b0   :  { %v8418_v8 = vpop.eup %8417  ;;  %v1296_v62 = vmul.f32 %v8416_v60, %v9315_v52  ;;  %v9501_v60 = vld [vmem:[#allocation5 + $0x6c] ss:$16 sps:$4 sm:$0xff]  }
 0x5b3   :  { %v1241_v48 = vpop.f32.mrb[36].mxu0  ;;  %v1283_v49 = vpop.f32.mrb[36].mxu1 }
 0x5b4   :  { %v1247_v50 = vadd.f32 %v1241_v48, %v1110_v13  ;;  %v1289_v51 = vadd.f32 %v1283_v49, %v1111_v47  ;;  %v7095_v53 = vpop.f32.mrb[37].mxu0  ;;  %v7115_v54 = vpop.f32.mrb[37].mxu1 }
 0x5b5   :  { %v1244_v56 = vpop.f32.mrb[38].mxu0  ;;  %v1286_v57 = vpop.f32.mrb[38].mxu1  ;;  %v9470_v53 = vld [vmem:[#allocation5 + $0x8] ss:$16 sps:$4 sm:$0xff]   ;;  %v9473_v54 = vld [vmem:[#allocation5 + $0xc] ss:$16 sps:$4 sm:$0xff]  }
 0x5b6   :  { %8419 = vtanh.f32 %v1247_v50  ;;  %v5819_v58 = vmul.f32 -1.442695, %v1289_v51  ;;  %v7096_v5 = vpop.f32.mrb[39].mxu0  ;;  %v7116_v59 = vpop.f32.mrb[39].mxu1  ;;  %v9482_v56 = vld [vmem:[#allocation5 + $0x28] ss:$16 sps:$4 sm:$0xff]  }
 0x5b7   :  { %v9485_v57 = vld [vmem:[#allocation5 + $0x2c] ss:$16 sps:$4 sm:$0xff]   ;;  %v9498_v59 = vld [vmem:[#allocation5 + $0x68] ss:$16 sps:$4 sm:$0xff]  }
 0x5b8   :  { %8421 = vpow2.f32 %v5819_v58  ;;  %v9490_v58 = vld [vmem:[#allocation5 + $0x48] ss:$16 sps:$4 sm:$0xff]   ;;  %v9493_v5 = vld [vmem:[#allocation5 + $0x4c] ss:$16 sps:$4 sm:$0xff]  }
 0x5c0   :  { %v8420_v61 = vpop.eup %8419 }
 0x5c1   :  { %v1297_v63 = vmul.f32 %v8420_v61, %v8418_v8  ;;  %v9506_v8 = vld [vmem:[#allocation5 + $0x88] ss:$16 sps:$4 sm:$0xff]   ;;  %v9509_v61 = vld [vmem:[#allocation5 + $0x8c] ss:$16 sps:$4 sm:$0xff]  }
 0x5c2   :  { %v8422_v1 = vpop.eup %8421 }
 0x5c3   :  { %v9391_v2 = vadd.f32 %v1297_v63, %v1296_v62  ;;  %v1293_v3 = vadd.f32 1.0, %v8422_v1  ;;  %v9514_v62 = vld [vmem:[#allocation5 + $0xa8] ss:$16 sps:$4 sm:$0xff]   ;;  %v9517_v63 = vld [vmem:[#allocation5 + $0xac] ss:$16 sps:$4 sm:$0xff]  }
 0x5c4   :  { %v9522_v1 = vld [vmem:[#allocation5 + $0xc8] ss:$16 sps:$4 sm:$0xff]  }
 0x5c5   :  { %8423 = vtanh.f32 %v9391_v2 }
 0x5c6   :  { %8425 = vrcp.f32 %v1293_v3  ;;  %v9530_v3 = vld [vmem:[#allocation5 + $0xe8] ss:$16 sps:$4 sm:$0xff]  }
 0x5cf   :  { %v8424_v4 = vpop.eup %8423 }
 0x5d0   :  { %v8426_v6 = vpop.eup %8425 }
 0x5d1   :  { %v1300_v7 = vmul.f32 %v8426_v6, %v8424_v4  ;;  %v9533_v4 = vld [vmem:[#allocation5 + $0xec] ss:$16 sps:$4 sm:$0xff]   ;;  %v8651_v6 = vld [vmem:[#allocation5] ss:$16 sps:$4 sm:$0xff]  }
 0x5d3   :  { %v1306_v9 = vpack.c.bf16 %v1300_v7, %v1300_v7  ;;  %v8652_v7 = vld [vmem:[#allocation5 + $0x4] ss:$16 sps:$4 sm:$0xff]  }
 0x5d5   :  { %7134 = vmatmul.mubr.bf16.vlgmr.msra.gmra.mrb[40].mxu0 %v1306_v9  ;;  %7154 = vmatmul.mubr.bf16.vlgmr.msra.gmra.mrb[40].mxu1 %v1306_v9 }
 0x5d6   :  { %7158 = vmatpush3.bf16.msra.mxu0 %v9026_v14  ;;  %7178 = vmatpush3.bf16.msra.mxu1 %v9029_v15 }
 0x5d7   :  { %7159 = vmatprep.subr.bf16.mxu0 %v8793_v0  ;;  %7179 = vmatprep.subr.bf16.mxu1 %v8793_v0 }
 0x5d8   :  { %7173 = vmatprep.mubr.msk.bf16.mxu0 %vm8794_vm0, %v8793_v0  ;;  %7193 = vmatprep.mubr.msk.bf16.mxu1 %vm8794_vm0, %v8793_v0 }
 0x5da   :  { %7160 = vmatpush3.bf16.msra.mxu0 %v9038_v16  ;;  %7180 = vmatpush3.bf16.msra.mxu1 %v9041_v17 }
 0x5db   :  { %7161 = vmatprep.subr.bf16.mxu0 %v8793_v0  ;;  %7181 = vmatprep.subr.bf16.mxu1 %v8793_v0 }
 0x5de   :  { %7162 = vmatpush3.bf16.msra.mxu0 %v9046_v18  ;;  %7182 = vmatpush3.bf16.msra.mxu1 %v9049_v19 }
 0x5df   :  { %7163 = vmatprep.subr.bf16.mxu0 %v8793_v0  ;;  %7183 = vmatprep.subr.bf16.mxu1 %v8793_v0 }
 0x5e2   :  { %7164 = vmatpush3.bf16.msra.mxu0 %v9054_v21  ;;  %7184 = vmatpush3.bf16.msra.mxu1 %v9057_v22 }
 0x5e3   :  { %7165 = vmatprep.subr.bf16.mxu0 %v8793_v0  ;;  %7185 = vmatprep.subr.bf16.mxu1 %v8793_v0 }
 0x5e6   :  { %7166 = vmatpush3.bf16.msra.mxu0 %v9062_v23  ;;  %7186 = vmatpush3.bf16.msra.mxu1 %v9065_v24  ;;  %v1303_v23 = vld [vmem:[#allocation2 + $0xa8] sm:$0xff]  ;;  %v1302_v24 = vld [vmem:[#allocation2 + $0xa0] sm:$0xff] }
 0x5e7   :  { %7167 = vmatprep.subr.bf16.mxu0 %v8793_v0  ;;  %7187 = vmatprep.subr.bf16.mxu1 %v8793_v0 }
 0x5ea   :  { %7168 = vmatpush3.bf16.msra.mxu0 %v9070_v25  ;;  %7188 = vmatpush3.bf16.msra.mxu1 %v9073_v26 }
 0x5eb   :  { %7169 = vmatprep.subr.bf16.mxu0 %v8793_v0  ;;  %7189 = vmatprep.subr.bf16.mxu1 %v8793_v0 }
 0x5ee   :  { %7170 = vmatpush3.bf16.msra.mxu0 %v9078_v27  ;;  %7190 = vmatpush3.bf16.msra.mxu1 %v9081_v28 }
 0x5ef   :  { %7171 = vmatprep.subr.bf16.mxu0 %v8793_v0  ;;  %7191 = vmatprep.subr.bf16.mxu1 %v8793_v0 }
 0x5f2   :  { %7172 = vmatpush3.bf16.msra.mxu0 %v9086_v29  ;;  %7192 = vmatpush3.bf16.msra.mxu1 %v9089_v30 }
 0x5f3   :  { %7197 = vmatprep.subr.bf16.mxu0 %v8793_v0  ;;  %7217 = vmatprep.subr.bf16.mxu1 %v8793_v0 }
 0x5f5   :  { %7174 = vmatmul.mubr.bf16.vlgmr.msra.gmra.mrb[44].mxu0 %v1306_v9  ;;  %7194 = vmatmul.mubr.bf16.vlgmr.msra.gmra.mrb[44].mxu1 %v1306_v9  ;;  %v8653_v9 = vld [vmem:[#allocation5 + $0x20] ss:$16 sps:$4 sm:$0xff]  }
 0x5f6   :  { %7198 = vmatpush3.bf16.msra.mxu0 %v9094_v31  ;;  %7218 = vmatpush3.bf16.msra.mxu1 %v9097_v32 }
 0x5f7   :  { %7199 = vmatprep.subr.bf16.mxu0 %v8793_v0  ;;  %7219 = vmatprep.subr.bf16.mxu1 %v8793_v0 }
 0x5f8   :  { %7213 = vmatprep.mubr.msk.bf16.mxu0 %vm8794_vm0, %v8793_v0  ;;  %7233 = vmatprep.mubr.msk.bf16.mxu1 %vm8794_vm0, %v8793_v0 }
 0x5fa   :  { %7200 = vmatpush3.bf16.msra.mxu0 %v9106_v33  ;;  %7220 = vmatpush3.bf16.msra.mxu1 %v9109_v34  ;;  %v1304_v33 = vld [vmem:[#allocation2 + $0xb0] sm:$0xff]  ;;  %v1305_v34 = vld [vmem:[#allocation2 + $0xb8] sm:$0xff] }
 0x5fb   :  { %7201 = vmatprep.subr.bf16.mxu0 %v8793_v0  ;;  %7221 = vmatprep.subr.bf16.mxu1 %v8793_v0 }
 0x5fe   :  { %7202 = vmatpush3.bf16.msra.mxu0 %v9114_v35  ;;  %7222 = vmatpush3.bf16.msra.mxu1 %v9117_v36 }
 0x5ff   :  { %7203 = vmatprep.subr.bf16.mxu0 %v8793_v0  ;;  %7223 = vmatprep.subr.bf16.mxu1 %v8793_v0 }
 0x602   :  { %7204 = vmatpush3.bf16.msra.mxu0 %v9122_v37  ;;  %7224 = vmatpush3.bf16.msra.mxu1 %v9125_v38 }
 0x603   :  { %7205 = vmatprep.subr.bf16.mxu0 %v8793_v0  ;;  %7225 = vmatprep.subr.bf16.mxu1 %v8793_v0 }
 0x606   :  { %7206 = vmatpush3.bf16.msra.mxu0 %v9130_v39  ;;  %7226 = vmatpush3.bf16.msra.mxu1 %v9133_v40 }
 0x607   :  { %7207 = vmatprep.subr.bf16.mxu0 %v8793_v0  ;;  %7227 = vmatprep.subr.bf16.mxu1 %v8793_v0 }
 0x60a   :  { %7208 = vmatpush3.bf16.msra.mxu0 %v9138_v41  ;;  %7228 = vmatpush3.bf16.msra.mxu1 %v9141_v42 }
 0x60b   :  { %7209 = vmatprep.subr.bf16.mxu0 %v8793_v0  ;;  %7229 = vmatprep.subr.bf16.mxu1 %v8793_v0 }
 0x60e   :  { %7210 = vmatpush3.bf16.msra.mxu0 %v9146_v43  ;;  %7230 = vmatpush3.bf16.msra.mxu1 %v9149_v44 }
 0x60f   :  { %7211 = vmatprep.subr.bf16.mxu0 %v8793_v0  ;;  %7231 = vmatprep.subr.bf16.mxu1 %v8793_v0 }
 0x612   :  { %7212 = vmatpush3.bf16.msra.mxu0 %v9154_v45  ;;  %7232 = vmatpush3.bf16.msra.mxu1 %v9157_v46 }
 0x613   :  { %7237 = vmatprep.subr.bf16.mxu0 %v8793_v0  ;;  %7257 = vmatprep.subr.bf16.mxu1 %v8793_v0 }
 0x6a8   :  { %v1341_v14 = vpop.f32.mrb[40].mxu0  ;;  %v1388_v15 = vpop.f32.mrb[40].mxu1 }
 0x6a9   :  { %v7135_v16 = vpop.f32.mrb[41].mxu0  ;;  %v7155_v17 = vpop.f32.mrb[41].mxu1  ;;  %v1394_v25 = vadd.f32 %v1388_v15, %v1303_v23  ;;  %v1347_v26 = vadd.f32 %v1341_v14, %v1302_v24  ;;  %v8654_v14 = vld [vmem:[#allocation5 + $0x24] ss:$16 sps:$4 sm:$0xff]   ;;  %v8655_v15 = vld [vmem:[#allocation5 + $0x40] ss:$16 sps:$4 sm:$0xff]  }
 0x6aa   :  { %v1344_v18 = vpop.f32.mrb[42].mxu0  ;;  %v1391_v19 = vpop.f32.mrb[42].mxu1  ;;  %v8656_v16 = vld [vmem:[#allocation5 + $0x44] ss:$16 sps:$4 sm:$0xff]   ;;  %v8657_v17 = vld [vmem:[#allocation5 + $0x60] ss:$16 sps:$4 sm:$0xff]  }
 0x6ab   :  { %v7136_v21 = vpop.f32.mrb[43].mxu0  ;;  %v7156_v22 = vpop.f32.mrb[43].mxu1  ;;  %v5821_v27 = vmul.f32 -1.442695, %v1394_v25  ;;  %v5820_v28 = vmul.f32 -1.442695, %v1347_v26 }
 0x6ac   :  { %v8658_v18 = vld [vmem:[#allocation5 + $0x64] ss:$16 sps:$4 sm:$0xff]   ;;  %v8659_v19 = vld [vmem:[#allocation5 + $0x80] ss:$16 sps:$4 sm:$0xff]  }
 0x6ad   :  { %8427 = vpow2.f32 %v5821_v27  ;;  %v8660_v21 = vld [vmem:[#allocation5 + $0x84] ss:$16 sps:$4 sm:$0xff]   ;;  %v8661_v22 = vld [vmem:[#allocation5 + $0xa0] ss:$16 sps:$4 sm:$0xff]  }
 0x6ae   :  { %8429 = vpow2.f32 %v5820_v28  ;;  %v8662_v23 = vld [vmem:[#allocation5 + $0xa4] ss:$16 sps:$4 sm:$0xff]   ;;  %v8663_v24 = vld [vmem:[#allocation5 + $0xc0] ss:$16 sps:$4 sm:$0xff]  }
 0x6af   :  { %v8664_v25 = vld [vmem:[#allocation5 + $0xc4] ss:$16 sps:$4 sm:$0xff]   ;;  %v8665_v26 = vld [vmem:[#allocation5 + $0xe0] ss:$16 sps:$4 sm:$0xff]  }
 0x6b0   :  { %v8666_v27 = vld [vmem:[#allocation5 + $0xe4] ss:$16 sps:$4 sm:$0xff]  }
 0x6b7   :  { %v8428_v29 = vpop.eup %8427 }
 0x6b8   :  { %v8430_v30 = vpop.eup %8429  ;;  %v1398_v31 = vadd.f32 1.0, %v8428_v29 }
 0x6b9   :  { %v1351_v32 = vadd.f32 1.0, %v8430_v30 }
 0x6ba   :  { %8431 = vrcp.f32 %v1398_v31 }
 0x6bb   :  { %8433 = vrcp.f32 %v1351_v32 }
 0x6c4   :  { %v8432_v46 = vpop.eup %8431 }
 0x6c5   :  { %v8434_v52 = vpop.eup %8433  ;;  %v1490_v11 = vmul.f32 %v8432_v46, %v9391_v2  ;;  %v9525_v2 = vld [vmem:[#allocation5 + $0xcc] ss:$16 sps:$4 sm:$0xff]   ;;  %v1498_v46 = vld [vmem:[#allocation2 + $0xd0] sm:$0xff] }
 0x6c8   :  { %v1435_v35 = vpop.f32.mrb[44].mxu0  ;;  %v1477_v36 = vpop.f32.mrb[44].mxu1 }
 0x6c9   :  { %v1441_v37 = vadd.f32 %v1435_v35, %v1304_v33  ;;  %v1483_v38 = vadd.f32 %v1477_v36, %v1305_v34  ;;  %v7175_v39 = vpop.f32.mrb[45].mxu0  ;;  %v7195_v40 = vpop.f32.mrb[45].mxu1  ;;  %v1497_v36 = vld [vmem:[#allocation2 + $0xc8] sm:$0xff] }
 0x6ca   :  { %v1438_v41 = vpop.f32.mrb[46].mxu0  ;;  %v1480_v42 = vpop.f32.mrb[46].mxu1 }
 0x6cb   :  { %8435 = vtanh.f32 %v1441_v37  ;;  %v5822_v43 = vmul.f32 -1.442695, %v1483_v38  ;;  %v7176_v44 = vpop.f32.mrb[47].mxu0  ;;  %v7196_v45 = vpop.f32.mrb[47].mxu1  ;;  %v1496_v37 = vld [vmem:[#allocation2 + $0xc0] sm:$0xff] }
 0x6cd   :  { %8437 = vpow2.f32 %v5822_v43 }
 0x6d5   :  { %v8436_v10 = vpop.eup %8435 }
 0x6d6   :  { %v1491_v55 = vmul.f32 %v8436_v10, %v8434_v52  ;;  %v1499_v52 = vld [vmem:[#allocation2 + $0xd8] sm:$0xff] }
 0x6d7   :  { %v8438_v12 = vpop.eup %8437 }
 0x6d8   :  { %v9467_v13 = vadd.f32 %v1491_v55, %v1490_v11  ;;  %v1487_v47 = vadd.f32 1.0, %v8438_v12 }
 0x6da   :  { %8439 = vtanh.f32 %v9467_v13 }
 0x6db   :  { %8441 = vrcp.f32 %v1487_v47 }
 0x6e4   :  { %v8440_v48 = vpop.eup %8439 }
 0x6e5   :  { %v8442_v49 = vpop.eup %8441 }
 0x6e6   :  { %v1494_v50 = vmul.f32 %v8442_v49, %v8440_v48 }
 0x6e8   :  { %v1500_v51 = vpack.c.bf16 %v1494_v50, %v1494_v50 }
 0x6ea   :  { %7214 = vmatmul.mubr.bf16.vlgmr.msra.gmra.mrb[48].mxu0 %v1500_v51  ;;  %7234 = vmatmul.mubr.bf16.vlgmr.msra.gmra.mrb[48].mxu1 %v1500_v51 }
 0x6eb   :  { %7238 = vmatpush3.bf16.msra.mxu0 %v9470_v53  ;;  %7258 = vmatpush3.bf16.msra.mxu1 %v9473_v54 }
 0x6ec   :  { %7239 = vmatprep.subr.bf16.mxu0 %v8793_v0  ;;  %7259 = vmatprep.subr.bf16.mxu1 %v8793_v0 }
 0x6ed   :  { %7253 = vmatprep.mubr.msk.bf16.mxu0 %vm8794_vm0, %v8793_v0  ;;  %7273 = vmatprep.mubr.msk.bf16.mxu1 %vm8794_vm0, %v8793_v0 }
 0x6ef   :  { %7240 = vmatpush3.bf16.msra.mxu0 %v9482_v56  ;;  %7260 = vmatpush3.bf16.msra.mxu1 %v9485_v57 }
 0x6f0   :  { %7241 = vmatprep.subr.bf16.mxu0 %v8793_v0  ;;  %7261 = vmatprep.subr.bf16.mxu1 %v8793_v0 }
 0x6f3   :  { %7242 = vmatpush3.bf16.msra.mxu0 %v9490_v58  ;;  %7262 = vmatpush3.bf16.msra.mxu1 %v9493_v5 }
 0x6f4   :  { %7243 = vmatprep.subr.bf16.mxu0 %v8793_v0  ;;  %7263 = vmatprep.subr.bf16.mxu1 %v8793_v0 }
 0x6f7   :  { %7244 = vmatpush3.bf16.msra.mxu0 %v9498_v59  ;;  %7264 = vmatpush3.bf16.msra.mxu1 %v9501_v60 }
 0x6f8   :  { %7245 = vmatprep.subr.bf16.mxu0 %v8793_v0  ;;  %7265 = vmatprep.subr.bf16.mxu1 %v8793_v0 }
 0x6fb   :  { %7246 = vmatpush3.bf16.msra.mxu0 %v9506_v8  ;;  %7266 = vmatpush3.bf16.msra.mxu1 %v9509_v61 }
 0x6fc   :  { %7247 = vmatprep.subr.bf16.mxu0 %v8793_v0  ;;  %7267 = vmatprep.subr.bf16.mxu1 %v8793_v0 }
 0x6ff   :  { %7248 = vmatpush3.bf16.msra.mxu0 %v9514_v62  ;;  %7268 = vmatpush3.bf16.msra.mxu1 %v9517_v63 }
 0x700   :  { %7249 = vmatprep.subr.bf16.mxu0 %v8793_v0  ;;  %7269 = vmatprep.subr.bf16.mxu1 %v8793_v0 }
 0x703   :  { %7250 = vmatpush3.bf16.msra.mxu0 %v9522_v1  ;;  %7270 = vmatpush3.bf16.msra.mxu1 %v9525_v2 }
 0x704   :  { %7251 = vmatprep.subr.bf16.mxu0 %v8793_v0  ;;  %7271 = vmatprep.subr.bf16.mxu1 %v8793_v0 }
 0x707   :  { %7252 = vmatpush3.bf16.msra.mxu0 %v9530_v3  ;;  %7272 = vmatpush3.bf16.msra.mxu1 %v9533_v4 }
 0x708   :  { %7277 = vmatprep.subr.bf16.mxu0 %v8793_v0  ;;  %7297 = vmatprep.subr.bf16.mxu1 %v8793_v0 }
 0x70a   :  { %7254 = vmatmul.mubr.bf16.vlgmr.msra.gmra.mrb[52].mxu0 %v1500_v51  ;;  %7274 = vmatmul.mubr.bf16.vlgmr.msra.gmra.mrb[52].mxu1 %v1500_v51 }
 0x70b   :  { %7278 = vmatpush3.bf16.msra.mxu0 %v8651_v6  ;;  %7298 = vmatpush3.bf16.msra.mxu1 %v8652_v7 }
 0x70c   :  { %7279 = vmatprep.subr.bf16.mxu0 %v8793_v0  ;;  %7299 = vmatprep.subr.bf16.mxu1 %v8793_v0 }
 0x70d   :  { %7293 = vmatprep.mubr.msk.bf16.mxu0 %vm8794_vm0, %v8793_v0  ;;  %7313 = vmatprep.mubr.msk.bf16.mxu1 %vm8794_vm0, %v8793_v0 }
 0x70f   :  { %7280 = vmatpush3.bf16.msra.mxu0 %v8653_v9  ;;  %7300 = vmatpush3.bf16.msra.mxu1 %v8654_v14 }
 0x710   :  { %7281 = vmatprep.subr.bf16.mxu0 %v8793_v0  ;;  %7301 = vmatprep.subr.bf16.mxu1 %v8793_v0 }
 0x713   :  { %7282 = vmatpush3.bf16.msra.mxu0 %v8655_v15  ;;  %7302 = vmatpush3.bf16.msra.mxu1 %v8656_v16 }
 0x714   :  { %7283 = vmatprep.subr.bf16.mxu0 %v8793_v0  ;;  %7303 = vmatprep.subr.bf16.mxu1 %v8793_v0 }
 0x717   :  { %7284 = vmatpush3.bf16.msra.mxu0 %v8657_v17  ;;  %7304 = vmatpush3.bf16.msra.mxu1 %v8658_v18 }
 0x718   :  { %7285 = vmatprep.subr.bf16.mxu0 %v8793_v0  ;;  %7305 = vmatprep.subr.bf16.mxu1 %v8793_v0 }
 0x71b   :  { %7286 = vmatpush3.bf16.msra.mxu0 %v8659_v19  ;;  %7306 = vmatpush3.bf16.msra.mxu1 %v8660_v21 }
 0x71c   :  { %7287 = vmatprep.subr.bf16.mxu0 %v8793_v0  ;;  %7307 = vmatprep.subr.bf16.mxu1 %v8793_v0 }
 0x71f   :  { %7288 = vmatpush3.bf16.msra.mxu0 %v8661_v22  ;;  %7308 = vmatpush3.bf16.msra.mxu1 %v8662_v23 }
 0x720   :  { %7289 = vmatprep.subr.bf16.mxu0 %v8793_v0  ;;  %7309 = vmatprep.subr.bf16.mxu1 %v8793_v0 }
 0x723   :  { %7290 = vmatpush3.bf16.msra.mxu0 %v8663_v24  ;;  %7310 = vmatpush3.bf16.msra.mxu1 %v8664_v25 }
 0x724   :  { %7291 = vmatprep.subr.bf16.mxu0 %v8793_v0  ;;  %7311 = vmatprep.subr.bf16.mxu1 %v8793_v0 }
 0x727   :  { %7292 = vmatpush3.bf16.msra.mxu0 %v8665_v26  ;;  %7312 = vmatpush3.bf16.msra.mxu1 %v8666_v27  ;;  %v8072_v26 = vld [vmem:[#allocation7 + $0x8c] ss:$16 sps:$4 sm:$0xff]   ;;  %v8067_v27 = vld [vmem:[#allocation7 + $0x80] ss:$16 sps:$4 sm:$0xff]  }
 0x728   :  { %7317 = vmatprep.subr.bf16.mxu0 %v8793_v0  ;;  %7337 = vmatprep.subr.bf16.mxu1 %v8793_v0 }
 0x7bd   :  { %v1535_v28 = vpop.f32.mrb[48].mxu0  ;;  %v1582_v29 = vpop.f32.mrb[48].mxu1 }
 0x7be   :  { %v7215_v30 = vpop.f32.mrb[49].mxu0  ;;  %v7235_v31 = vpop.f32.mrb[49].mxu1  ;;  %v1588_v38 = vadd.f32 %v1582_v29, %v1497_v36  ;;  %v1541_v39 = vadd.f32 %v1535_v28, %v1496_v37  ;;  %v8070_v28 = vld [vmem:[#allocation7 + $0x88] ss:$16 sps:$4 sm:$0xff]   ;;  %v8073_v29 = vld [vmem:[#allocation7 + $0xa0] ss:$16 sps:$4 sm:$0xff]  }
 0x7bf   :  { %v1538_v32 = vpop.f32.mrb[50].mxu0  ;;  %v1585_v33 = vpop.f32.mrb[50].mxu1  ;;  %v8075_v30 = vld [vmem:[#allocation7 + $0xa4] ss:$16 sps:$4 sm:$0xff]   ;;  %v8076_v31 = vld [vmem:[#allocation7 + $0xa8] ss:$16 sps:$4 sm:$0xff]  }
 0x7c0   :  { %v7216_v34 = vpop.f32.mrb[51].mxu0  ;;  %v7236_v35 = vpop.f32.mrb[51].mxu1  ;;  %v5824_v40 = vmul.f32 -1.442695, %v1588_v38  ;;  %v5823_v41 = vmul.f32 -1.442695, %v1541_v39 }
 0x7c1   :  { %v8078_v32 = vld [vmem:[#allocation7 + $0xac] ss:$16 sps:$4 sm:$0xff]   ;;  %v8081_v33 = vld [vmem:[#allocation7 + $0xc4] ss:$16 sps:$4 sm:$0xff]   ;;  %v8079_v35 = vld [vmem:[#allocation7 + $0xc0] ss:$16 sps:$4 sm:$0xff]  }
 0x7c2   :  { %8443 = vpow2.f32 %v5824_v40  ;;  %v8084_v34 = vld [vmem:[#allocation7 + $0xcc] ss:$16 sps:$4 sm:$0xff]   ;;  %v8082_v36 = vld [vmem:[#allocation7 + $0xc8] ss:$16 sps:$4 sm:$0xff]   ;;  %v8087_v37 = vld [vmem:[#allocation7 + $0xe4] ss:$16 sps:$4 sm:$0xff]  }
 0x7c3   :  { %8445 = vpow2.f32 %v5823_v41  ;;  %v8090_v38 = vld [vmem:[#allocation7 + $0xec] ss:$16 sps:$4 sm:$0xff]   ;;  %v8085_v39 = vld [vmem:[#allocation7 + $0xe0] ss:$16 sps:$4 sm:$0xff]   ;;  %v8088_v40 = vld [vmem:[#allocation7 + $0xe8] ss:$16 sps:$4 sm:$0xff]  }
 0x7cc   :  { %v8444_v42 = vpop.eup %8443 }
 0x7cd   :  { %v8446_v43 = vpop.eup %8445  ;;  %v1592_v44 = vadd.f32 1.0, %v8444_v42 }
 0x7ce   :  { %v1545_v45 = vadd.f32 1.0, %v8446_v43 }
 0x7cf   :  { %8447 = vrcp.f32 %v1592_v44 }
 0x7d0   :  { %8449 = vrcp.f32 %v1545_v45 }
 0x7d9   :  { %v8448_v9 = vpop.eup %8447 }
 0x7da   :  { %v8450_v14 = vpop.eup %8449  ;;  %v1684_v16 = vmul.f32 %v8448_v9, %v9467_v13  ;;  %v8045_v13 = vld [vmem:[#allocation7 + $0x4] ss:$16 sps:$4 sm:$0xff]  }
 0x7db   :  { %v1692_v9 = vld [vmem:[#allocation2 + $0xf0] sm:$0xff] }
 0x7dd   :  { %v1629_v10 = vpop.f32.mrb[52].mxu0  ;;  %v1671_v11 = vpop.f32.mrb[52].mxu1 }
 0x7de   :  { %v1635_v55 = vadd.f32 %v1629_v10, %v1498_v46  ;;  %v1677_v12 = vadd.f32 %v1671_v11, %v1499_v52  ;;  %v7255_v47 = vpop.f32.mrb[53].mxu0  ;;  %v7275_v48 = vpop.f32.mrb[53].mxu1  ;;  %v1691_v11 = vld [vmem:[#allocation2 + $0xe8] sm:$0xff] }
 0x7df   :  { %v1632_v49 = vpop.f32.mrb[54].mxu0  ;;  %v1674_v50 = vpop.f32.mrb[54].mxu1 }
 0x7e0   :  { %8451 = vtanh.f32 %v1635_v55  ;;  %v5825_v51 = vmul.f32 -1.442695, %v1677_v12  ;;  %v7256_v6 = vpop.f32.mrb[55].mxu0  ;;  %v7276_v7 = vpop.f32.mrb[55].mxu1  ;;  %v1690_v55 = vld [vmem:[#allocation2 + $0xe0] sm:$0xff] }
 0x7e2   :  { %8453 = vpow2.f32 %v5825_v51 }
 0x7ea   :  { %v8452_v15 = vpop.eup %8451 }
 0x7eb   :  { %v1685_v17 = vmul.f32 %v8452_v15, %v8450_v14  ;;  %v1693_v14 = vld [vmem:[#allocation2 + $0xf8] sm:$0xff] }
 0x7ec   :  { %v8454_v18 = vpop.eup %8453 }
 0x7ed   :  { %v9559_v19 = vadd.f32 %v1685_v17, %v1684_v16  ;;  %v1681_v21 = vadd.f32 1.0, %v8454_v18 }
 0x7ef   :  { %8455 = vtanh.f32 %v9559_v19 }
 0x7f0   :  { %8457 = vrcp.f32 %v1681_v21 }
 0x7f9   :  { %v8456_v22 = vpop.eup %8455 }
 0x7fa   :  { %v8458_v23 = vpop.eup %8457 }
 0x7fb   :  { %v1688_v24 = vmul.f32 %v8458_v23, %v8456_v22 }
 0x7fd   :  { %v1694_v25 = vpack.c.bf16 %v1688_v24, %v1688_v24 }
 0x7ff   :  { %7294 = vmatmul.mubr.bf16.vlgmr.msra.gmra.mrb[56].mxu0 %v1694_v25  ;;  %7314 = vmatmul.mubr.bf16.vlgmr.msra.gmra.mrb[56].mxu1 %v1694_v25 }
 0x800   :  { %7318 = vmatpush3.bf16.msra.mxu0 %v9470_v53  ;;  %7338 = vmatpush3.bf16.msra.mxu1 %v9473_v54  ;;  %v8048_v53 = vld [vmem:[#allocation7 + $0xc] ss:$16 sps:$4 sm:$0xff]   ;;  %v8043_v54 = vld [vmem:[#allocation7] ss:$16 sps:$4 sm:$0xff]  }
 0x801   :  { %7319 = vmatprep.subr.bf16.mxu0 %v8793_v0  ;;  %7339 = vmatprep.subr.bf16.mxu1 %v8793_v0 }
 0x802   :  { %7333 = vmatprep.mubr.msk.bf16.mxu0 %vm8794_vm0, %v8793_v0  ;;  %7353 = vmatprep.mubr.msk.bf16.mxu1 %vm8794_vm0, %v8793_v0 }
 0x804   :  { %7320 = vmatpush3.bf16.msra.mxu0 %v9482_v56  ;;  %7340 = vmatpush3.bf16.msra.mxu1 %v9485_v57  ;;  %v8046_v56 = vld [vmem:[#allocation7 + $0x8] ss:$16 sps:$4 sm:$0xff]   ;;  %v8051_v57 = vld [vmem:[#allocation7 + $0x24] ss:$16 sps:$4 sm:$0xff]  }
 0x805   :  { %7321 = vmatprep.subr.bf16.mxu0 %v8793_v0  ;;  %7341 = vmatprep.subr.bf16.mxu1 %v8793_v0 }
 0x808   :  { %7322 = vmatpush3.bf16.msra.mxu0 %v9490_v58  ;;  %7342 = vmatpush3.bf16.msra.mxu1 %v9493_v5  ;;  %v8054_v58 = vld [vmem:[#allocation7 + $0x2c] ss:$16 sps:$4 sm:$0xff]   ;;  %v8049_v5 = vld [vmem:[#allocation7 + $0x20] ss:$16 sps:$4 sm:$0xff]  }
 0x809   :  { %7323 = vmatprep.subr.bf16.mxu0 %v8793_v0  ;;  %7343 = vmatprep.subr.bf16.mxu1 %v8793_v0 }
 0x80c   :  { %7324 = vmatpush3.bf16.msra.mxu0 %v9498_v59  ;;  %7344 = vmatpush3.bf16.msra.mxu1 %v9501_v60  ;;  %v8052_v59 = vld [vmem:[#allocation7 + $0x28] ss:$16 sps:$4 sm:$0xff]   ;;  %v8057_v60 = vld [vmem:[#allocation7 + $0x44] ss:$16 sps:$4 sm:$0xff]  }
 0x80d   :  { %7325 = vmatprep.subr.bf16.mxu0 %v8793_v0  ;;  %7345 = vmatprep.subr.bf16.mxu1 %v8793_v0 }
 0x810   :  { %7326 = vmatpush3.bf16.msra.mxu0 %v9506_v8  ;;  %7346 = vmatpush3.bf16.msra.mxu1 %v9509_v61  ;;  %v8060_v8 = vld [vmem:[#allocation7 + $0x4c] ss:$16 sps:$4 sm:$0xff]   ;;  %v8055_v61 = vld [vmem:[#allocation7 + $0x40] ss:$16 sps:$4 sm:$0xff]  }
 0x811   :  { %7327 = vmatprep.subr.bf16.mxu0 %v8793_v0  ;;  %7347 = vmatprep.subr.bf16.mxu1 %v8793_v0 }
 0x814   :  { %7328 = vmatpush3.bf16.msra.mxu0 %v9514_v62  ;;  %7348 = vmatpush3.bf16.msra.mxu1 %v9517_v63  ;;  %v8058_v62 = vld [vmem:[#allocation7 + $0x48] ss:$16 sps:$4 sm:$0xff]   ;;  %v8063_v63 = vld [vmem:[#allocation7 + $0x64] ss:$16 sps:$4 sm:$0xff]  }
 0x815   :  { %7329 = vmatprep.subr.bf16.mxu0 %v8793_v0  ;;  %7349 = vmatprep.subr.bf16.mxu1 %v8793_v0 }
 0x818   :  { %7330 = vmatpush3.bf16.msra.mxu0 %v9522_v1  ;;  %7350 = vmatpush3.bf16.msra.mxu1 %v9525_v2  ;;  %v8066_v1 = vld [vmem:[#allocation7 + $0x6c] ss:$16 sps:$4 sm:$0xff]   ;;  %v8061_v2 = vld [vmem:[#allocation7 + $0x60] ss:$16 sps:$4 sm:$0xff]  }
 0x819   :  { %7331 = vmatprep.subr.bf16.mxu0 %v8793_v0  ;;  %7351 = vmatprep.subr.bf16.mxu1 %v8793_v0 }
 0x81c   :  { %7332 = vmatpush3.bf16.msra.mxu0 %v9530_v3  ;;  %7352 = vmatpush3.bf16.msra.mxu1 %v9533_v4  ;;  %v8064_v3 = vld [vmem:[#allocation7 + $0x68] ss:$16 sps:$4 sm:$0xff]   ;;  %v8069_v4 = vld [vmem:[#allocation7 + $0x84] ss:$16 sps:$4 sm:$0xff]  }
 0x81d   :  { %2098 = vmatprep.subr.bf16.mxu0 %v8045_v13  ;;  %2139 = vmatprep.subr.bf16.mxu1 %v8048_v53 }
 0x81f   :  { %7334 = vmatmul.mubr.bf16.vlgmr.msra.gmra.mrb[60].mxu0 %v1694_v25  ;;  %7354 = vmatmul.mubr.bf16.vlgmr.msra.gmra.mrb[60].mxu1 %v1694_v25 }
 0x820   :  { %2130 = vmatprep.mubr.bf16.mxu0 %v8795_v20  ;;  %2171 = vmatprep.mubr.bf16.mxu1 %v8795_v20 }
 0x821   :  { %2099 = vmatpush1.bf16.msra.mxu0 %v8043_v54  ;;  %2140 = vmatpush1.bf16.msra.mxu1 %v8046_v56 }
 0x822   :  { %2100 = vmatprep.subr.bf16.mxu0 %v8051_v57  ;;  %2141 = vmatprep.subr.bf16.mxu1 %v8054_v58 }
 0x825   :  { %2101 = vmatpush1.bf16.msra.mxu0 %v8049_v5  ;;  %2142 = vmatpush1.bf16.msra.mxu1 %v8052_v59 }
 0x826   :  { %2102 = vmatprep.subr.bf16.mxu0 %v8057_v60  ;;  %2143 = vmatprep.subr.bf16.mxu1 %v8060_v8 }
 0x829   :  { %2103 = vmatpush1.bf16.msra.mxu0 %v8055_v61  ;;  %2144 = vmatpush1.bf16.msra.mxu1 %v8058_v62 }
 0x82a   :  { %2104 = vmatprep.subr.bf16.mxu0 %v8063_v63  ;;  %2145 = vmatprep.subr.bf16.mxu1 %v8066_v1  ;;  %v8091_v1 = vld [vmem:[#allocation8] ss:$16 sps:$4 sm:$0xff]  }
 0x82d   :  { %2105 = vmatpush1.bf16.msra.mxu0 %v8061_v2  ;;  %2146 = vmatpush1.bf16.msra.mxu1 %v8064_v3  ;;  %v8092_v2 = vld [vmem:[#allocation8 + $0x4] ss:$16 sps:$4 sm:$0xff]  }
 0x82e   :  { %2106 = vmatprep.subr.bf16.mxu0 %v8069_v4  ;;  %2147 = vmatprep.subr.bf16.mxu1 %v8072_v26  ;;  %v8093_v4 = vld [vmem:[#allocation8 + $0x20] ss:$16 sps:$4 sm:$0xff]   ;;  %v8094_v26 = vld [vmem:[#allocation8 + $0x24] ss:$16 sps:$4 sm:$0xff]  }
 0x831   :  { %2107 = vmatpush1.bf16.msra.mxu0 %v8067_v27  ;;  %2148 = vmatpush1.bf16.msra.mxu1 %v8070_v28  ;;  %v8096_v27 = vld [vmem:[#allocation8 + $0x44] ss:$16 sps:$4 sm:$0xff]   ;;  %v8097_v28 = vld [vmem:[#allocation8 + $0x60] ss:$16 sps:$4 sm:$0xff]  }
 0x832   :  { %2108 = vmatprep.subr.bf16.mxu0 %v8075_v30  ;;  %2149 = vmatprep.subr.bf16.mxu1 %v8078_v32  ;;  %v8099_v30 = vld [vmem:[#allocation8 + $0x80] ss:$16 sps:$4 sm:$0xff]  }
 0x833   :  { %v8101_v32 = vld [vmem:[#allocation8 + $0xa0] ss:$16 sps:$4 sm:$0xff]  }
 0x835   :  { %2109 = vmatpush1.bf16.msra.mxu0 %v8073_v29  ;;  %2150 = vmatpush1.bf16.msra.mxu1 %v8076_v31  ;;  %v8098_v29 = vld [vmem:[#allocation8 + $0x64] ss:$16 sps:$4 sm:$0xff]  }
 0x836   :  { %2110 = vmatprep.subr.bf16.mxu0 %v8081_v33  ;;  %2151 = vmatprep.subr.bf16.mxu1 %v8084_v34  ;;  %v8100_v31 = vld [vmem:[#allocation8 + $0x84] ss:$16 sps:$4 sm:$0xff]   ;;  %v8103_v34 = vld [vmem:[#allocation8 + $0xc0] ss:$16 sps:$4 sm:$0xff]  }
 0x837   :  { %v8102_v33 = vld [vmem:[#allocation8 + $0xa4] ss:$16 sps:$4 sm:$0xff]  }
 0x839   :  { %2111 = vmatpush1.bf16.msra.mxu0 %v8079_v35  ;;  %2152 = vmatpush1.bf16.msra.mxu1 %v8082_v36  ;;  %v8104_v35 = vld [vmem:[#allocation8 + $0xc4] ss:$16 sps:$4 sm:$0xff]   ;;  %v8105_v36 = vld [vmem:[#allocation8 + $0xe0] ss:$16 sps:$4 sm:$0xff]  }
 0x83a   :  { %2112 = vmatprep.subr.bf16.mxu0 %v8087_v37  ;;  %2153 = vmatprep.subr.bf16.mxu1 %v8090_v38  ;;  %v8106_v37 = vld [vmem:[#allocation8 + $0xe4] ss:$16 sps:$4 sm:$0xff]   ;;  %v8107_v38 = vld [vmem:[#allocation8 + $0x8] ss:$16 sps:$4 sm:$0xff]  }
 0x83d   :  { %2113 = vmatpush1.bf16.msra.mxu0 %v8085_v39  ;;  %2154 = vmatpush1.bf16.msra.mxu1 %v8088_v40  ;;  %v8108_v39 = vld [vmem:[#allocation8 + $0xc] ss:$16 sps:$4 sm:$0xff]   ;;  %v8109_v40 = vld [vmem:[#allocation8 + $0x28] ss:$16 sps:$4 sm:$0xff]  }
 0x83e   :  { %7357 = vmatprep.subr.bf16.mxu0 %v8793_v0  ;;  %7377 = vmatprep.subr.bf16.mxu1 %v8793_v0 }
 0x8d2   :  { %v1729_v41 = vpop.f32.mrb[56].mxu0  ;;  %v1776_v42 = vpop.f32.mrb[56].mxu1 }
 0x8d3   :  { %v7295_v43 = vpop.f32.mrb[57].mxu0  ;;  %v7315_v44 = vpop.f32.mrb[57].mxu1  ;;  %v1782_v12 = vadd.f32 %v1776_v42, %v1691_v11  ;;  %v1735_v47 = vadd.f32 %v1729_v41, %v1690_v55  ;;  %v8110_v41 = vld [vmem:[#allocation8 + $0x2c] ss:$16 sps:$4 sm:$0xff]   ;;  %v8111_v42 = vld [vmem:[#allocation8 + $0x48] ss:$16 sps:$4 sm:$0xff]  }
 0x8d4   :  { %v1732_v45 = vpop.f32.mrb[58].mxu0  ;;  %v1779_v46 = vpop.f32.mrb[58].mxu1  ;;  %v8112_v43 = vld [vmem:[#allocation8 + $0x4c] ss:$16 sps:$4 sm:$0xff]   ;;  %v8113_v44 = vld [vmem:[#allocation8 + $0x68] ss:$16 sps:$4 sm:$0xff]  }
 0x8d5   :  { %v7296_v52 = vpop.f32.mrb[59].mxu0  ;;  %v7316_v10 = vpop.f32.mrb[59].mxu1  ;;  %v5827_v48 = vmul.f32 -1.442695, %v1782_v12  ;;  %v5826_v49 = vmul.f32 -1.442695, %v1735_v47 }
 0x8d6   :  { %v8114_v45 = vld [vmem:[#allocation8 + $0x6c] ss:$16 sps:$4 sm:$0xff]   ;;  %v8115_v46 = vld [vmem:[#allocation8 + $0x88] ss:$16 sps:$4 sm:$0xff]  }
 0x8d7   :  { %8459 = vpow2.f32 %v5827_v48  ;;  %v8116_v52 = vld [vmem:[#allocation8 + $0x8c] ss:$16 sps:$4 sm:$0xff]   ;;  %v8117_v10 = vld [vmem:[#allocation8 + $0xa8] ss:$16 sps:$4 sm:$0xff]  }
 0x8d8   :  { %8461 = vpow2.f32 %v5826_v49  ;;  %v8118_v11 = vld [vmem:[#allocation8 + $0xac] ss:$16 sps:$4 sm:$0xff]   ;;  %v8119_v55 = vld [vmem:[#allocation8 + $0xc8] ss:$16 sps:$4 sm:$0xff]   ;;  %v8123_v49 = vld [vmem:[#allocation8] ss:$16 sps:$4 sm:$0xff]  }
 0x8d9   :  { %v8120_v12 = vld [vmem:[#allocation8 + $0xcc] ss:$16 sps:$4 sm:$0xff]   ;;  %v8121_v47 = vld [vmem:[#allocation8 + $0xe8] ss:$16 sps:$4 sm:$0xff]  }
 0x8da   :  { %v8122_v48 = vld [vmem:[#allocation8 + $0xec] ss:$16 sps:$4 sm:$0xff]  }
 0x8e1   :  { %v8460_v50 = vpop.eup %8459 }
 0x8e2   :  { %v8462_v51 = vpop.eup %8461  ;;  %v1786_v6 = vadd.f32 1.0, %v8460_v50  ;;  %v8124_v50 = vld [vmem:[#allocation8 + $0x4] ss:$16 sps:$4 sm:$0xff]  }
 0x8e3   :  { %v1739_v7 = vadd.f32 1.0, %v8462_v51  ;;  %v8125_v51 = vld [vmem:[#allocation8 + $0x20] ss:$16 sps:$4 sm:$0xff]  }
 0x8e4   :  { %8463 = vrcp.f32 %v1786_v6  ;;  %v8126_v6 = vld [vmem:[#allocation8 + $0x24] ss:$16 sps:$4 sm:$0xff]  }
 0x8e5   :  { %8465 = vrcp.f32 %v1739_v7  ;;  %v8128_v7 = vld [vmem:[#allocation8 + $0x44] ss:$16 sps:$4 sm:$0xff]  }
 0x8ee   :  { %v8464_v54 = vpop.eup %8463 }
 0x8ef   :  { %v8466_v56 = vpop.eup %8465  ;;  %v1878_v58 = vmul.f32 %v8464_v54, %v9559_v19  ;;  %v8095_v19 = vld [vmem:[#allocation8 + $0x40] ss:$16 sps:$4 sm:$0xff]  }
 0x8f2   :  { %v1823_v15 = vpop.f32.mrb[60].mxu0  ;;  %v1865_v16 = vpop.f32.mrb[60].mxu1 }
 0x8f3   :  { %v1829_v17 = vadd.f32 %v1823_v15, %v1692_v9  ;;  %v1871_v18 = vadd.f32 %v1865_v16, %v1693_v14  ;;  %v7335_v21 = vpop.f32.mrb[61].mxu0  ;;  %v7355_v22 = vpop.f32.mrb[61].mxu1  ;;  %v8129_v9 = vld [vmem:[#allocation8 + $0x60] ss:$16 sps:$4 sm:$0xff]   ;;  %v8130_v14 = vld [vmem:[#allocation8 + $0x64] ss:$16 sps:$4 sm:$0xff]  }
 0x8f4   :  { %v1826_v23 = vpop.f32.mrb[62].mxu0  ;;  %v1868_v24 = vpop.f32.mrb[62].mxu1  ;;  %v8131_v15 = vld [vmem:[#allocation8 + $0x80] ss:$16 sps:$4 sm:$0xff]   ;;  %v8132_v16 = vld [vmem:[#allocation8 + $0x84] ss:$16 sps:$4 sm:$0xff]  }
 0x8f5   :  { %8467 = vtanh.f32 %v1829_v17  ;;  %v5828_v25 = vmul.f32 -1.442695, %v1871_v18  ;;  %v7336_v13 = vpop.f32.mrb[63].mxu0  ;;  %v7356_v53 = vpop.f32.mrb[63].mxu1  ;;  %v8133_v17 = vld [vmem:[#allocation8 + $0xa0] ss:$16 sps:$4 sm:$0xff]  }
 0x8f6   :  { %v8134_v18 = vld [vmem:[#allocation8 + $0xa4] ss:$16 sps:$4 sm:$0xff]   ;;  %v8135_v21 = vld [vmem:[#allocation8 + $0xc0] ss:$16 sps:$4 sm:$0xff]  }
 0x8f7   :  { %8469 = vpow2.f32 %v5828_v25  ;;  %v8136_v22 = vld [vmem:[#allocation8 + $0xc4] ss:$16 sps:$4 sm:$0xff]   ;;  %v8137_v23 = vld [vmem:[#allocation8 + $0xe0] ss:$16 sps:$4 sm:$0xff]  }
 0x8f8   :  { %v8138_v24 = vld [vmem:[#allocation8 + $0xe4] ss:$16 sps:$4 sm:$0xff]  }
 0x8ff   :  { %v8468_v57 = vpop.eup %8467 }
 0x900   :  { %v1879_v5 = vmul.f32 %v8468_v57, %v8466_v56 }
 0x901   :  { %v8470_v59 = vpop.eup %8469 }
 0x902   :  { %v1880_v60 = vadd.f32 %v1879_v5, %v1878_v58  ;;  %v1875_v8 = vadd.f32 1.0, %v8470_v59  ;;  %v1918_v59 = vlaneseq }
 0x904   :  { %8471 = vtanh.f32 %v1880_v60  ;;  %v1919_v60 = vshrl.u32 %v1918_v59, 7  ;;  %v8148_v59 = vld [vmem:[#allocation8 + $0x8c] ss:$16 sps:$4 sm:$0xff]  }
 0x905   :  { %8473 = vrcp.f32 %v1875_v8 }
 0x906   :  { %v1924_v8 = vsub.s32 1, %v1919_v60 }
 0x90e   :  { %v8472_v61 = vpop.eup %8471 }
 0x90f   :  { %v8474_v62 = vpop.eup %8473 }
 0x910   :  { %v1882_v63 = vmul.f32 %v8474_v62, %v8472_v61  ;;  %v1916_v61 = vld [vmem:[%s10010_s4] sm:$0xf]  ;;  %v1920_v62 = vsub.s32 0, %v1919_v60  ;;  %s8796_s4 = smov [#allocation10]  }
 0x911   :  { %s5759_s29 = sshll.u32 %s8796_s4, 4  ;;  %s5760_s29 = int_to_ptr.vmem [resolvable:$true] %s5759_s29 }
 0x912   :  { %v1883_v3 = vpack.c.bf16 %v1882_v63, %v1882_v63  ;;  %s8755_s18 = scalar_lea.vmem %s5760_s29, 1024  ;;  %p8760_p5 = scmp.lt.s32.totalorder %s5760_s29, %s5760_s29 }
 0x913   :  { %p8756_p4 = scmp.ne.s32.totalorder %s5760_s29, %s8755_s18  ;;  %p8761_p6 = scmp.lt.s32.totalorder %s8755_s18, %s8755_s18 }
 0x914   :  { %2131 = vmatmul.mubr.bf16.vlgmr.msra.gmra.mrb[64].mxu0 %v1883_v3  ;;  %2172 = vmatmul.mubr.bf16.vlgmr.msra.gmra.mrb[64].mxu1 %v1883_v3 }
 0x915   :  { %7358 = vmatpush3.bf16.msra.mxu0 %v8091_v1  ;;  %7378 = vmatpush3.bf16.msra.mxu1 %v8092_v2  ;;  %p8762_p7 = por %p8761_p6, %p8760_p5 }
 0x916   :  { %7359 = vmatprep.subr.bf16.mxu0 %v8793_v0  ;;  %7379 = vmatprep.subr.bf16.mxu1 %v8793_v0 }
 0x917   :  { %7373 = vmatprep.mubr.msk.bf16.mxu0 %vm8794_vm0, %v8793_v0  ;;  %7393 = vmatprep.mubr.msk.bf16.mxu1 %vm8794_vm0, %v8793_v0  ;;  %p8763_p8 = pnand %p8762_p7, %p8756_p4 }
 0x919   :  { %7360 = vmatpush3.bf16.msra.mxu0 %v8093_v4  ;;  %7380 = vmatpush3.bf16.msra.mxu1 %v8094_v26  ;;  %v1925_v4 = vrot.slane %v1916_v61, %v1924_v8  ;;  %v8150_v8 = vld [vmem:[#allocation8 + $0xac] ss:$16 sps:$4 sm:$0xff]  }
 0x91a   :  { %7361 = vmatprep.subr.bf16.mxu0 %v8793_v0  ;;  %7381 = vmatprep.subr.bf16.mxu1 %v8793_v0 }
 0x91d   :  { %7362 = vmatpush3.bf16.msra.mxu0 %v8095_v19  ;;  %7382 = vmatpush3.bf16.msra.mxu1 %v8096_v27  ;;  %v1921_v27 = vrot.slane %v1916_v61, %v1920_v62  ;;  %v8152_v62 = vld [vmem:[#allocation8 + $0xcc] ss:$16 sps:$4 sm:$0xff]  }
 0x91e   :  { %7363 = vmatprep.subr.bf16.mxu0 %v8793_v0  ;;  %7383 = vmatprep.subr.bf16.mxu1 %v8793_v0 }
 0x921   :  { %7364 = vmatpush3.bf16.msra.mxu0 %v8097_v28  ;;  %7384 = vmatpush3.bf16.msra.mxu1 %v8098_v29 }
 0x922   :  { %7365 = vmatprep.subr.bf16.mxu0 %v8793_v0  ;;  %7385 = vmatprep.subr.bf16.mxu1 %v8793_v0 }
 0x925   :  { %7366 = vmatpush3.bf16.msra.mxu0 %v8099_v30  ;;  %7386 = vmatpush3.bf16.msra.mxu1 %v8100_v31 }
 0x926   :  { %7367 = vmatprep.subr.bf16.mxu0 %v8793_v0  ;;  %7387 = vmatprep.subr.bf16.mxu1 %v8793_v0 }
 0x929   :  { %7368 = vmatpush3.bf16.msra.mxu0 %v8101_v32  ;;  %7388 = vmatpush3.bf16.msra.mxu1 %v8102_v33 }
 0x92a   :  { %7369 = vmatprep.subr.bf16.mxu0 %v8793_v0  ;;  %7389 = vmatprep.subr.bf16.mxu1 %v8793_v0 }
 0x92d   :  { %7370 = vmatpush3.bf16.msra.mxu0 %v8103_v34  ;;  %7390 = vmatpush3.bf16.msra.mxu1 %v8104_v35 }
 0x92e   :  { %7371 = vmatprep.subr.bf16.mxu0 %v8793_v0  ;;  %7391 = vmatprep.subr.bf16.mxu1 %v8793_v0 }
 0x931   :  { %7372 = vmatpush3.bf16.msra.mxu0 %v8105_v36  ;;  %7392 = vmatpush3.bf16.msra.mxu1 %v8106_v37  ;;  %v1928_v36 = vsub.s32 2, %v1919_v60  ;;  %v1932_v37 = vsub.s32 3, %v1919_v60  ;;  %v8149_v60 = vld [vmem:[#allocation8 + $0xa8] ss:$16 sps:$4 sm:$0xff]  }
 0x932   :  { %7397 = vmatprep.subr.bf16.mxu0 %v8793_v0  ;;  %7417 = vmatprep.subr.bf16.mxu1 %v8793_v0 }
 0x934   :  { %7374 = vmatmul.mubr.bf16.vlgmr.msra.gmra.mrb[68].mxu0 %v8795_v20  ;;  %7394 = vmatmul.mubr.bf16.vlgmr.msra.gmra.mrb[68].mxu1 %v8795_v20 }
 0x935   :  { %7398 = vmatpush3.bf16.msra.mxu0 %v8107_v38  ;;  %7418 = vmatpush3.bf16.msra.mxu1 %v8108_v39 }
 0x936   :  { %7399 = vmatprep.subr.bf16.mxu0 %v8793_v0  ;;  %7419 = vmatprep.subr.bf16.mxu1 %v8793_v0 }
 0x937   :  { %7413 = vmatprep.mubr.msk.bf16.mxu0 %vm8794_vm0, %v8793_v0  ;;  %7433 = vmatprep.mubr.msk.bf16.mxu1 %vm8794_vm0, %v8793_v0 }
 0x939   :  { %7400 = vmatpush3.bf16.msra.mxu0 %v8109_v40  ;;  %7420 = vmatpush3.bf16.msra.mxu1 %v8110_v41  ;;  %v1929_v40 = vrot.slane %v1916_v61, %v1928_v36  ;;  %v1933_v41 = vrot.slane %v1916_v61, %v1932_v37  ;;  %v8151_v61 = vld [vmem:[#allocation8 + $0xc8] ss:$16 sps:$4 sm:$0xff]   ;;  %v8167_v36 = vld [vmem:[#allocation8 + $0xc0] ss:$16 sps:$4 sm:$0xff]   ;;  %v8168_v37 = vld [vmem:[#allocation8 + $0xc4] ss:$16 sps:$4 sm:$0xff]  }
 0x93a   :  { %7401 = vmatprep.subr.bf16.mxu0 %v8793_v0  ;;  %7421 = vmatprep.subr.bf16.mxu1 %v8793_v0 }
 0x93d   :  { %7402 = vmatpush3.bf16.msra.mxu0 %v8111_v42  ;;  %7422 = vmatpush3.bf16.msra.mxu1 %v8112_v43 }
 0x93e   :  { %7403 = vmatprep.subr.bf16.mxu0 %v8793_v0  ;;  %7423 = vmatprep.subr.bf16.mxu1 %v8793_v0 }
 0x941   :  { %7404 = vmatpush3.bf16.msra.mxu0 %v8113_v44  ;;  %7424 = vmatpush3.bf16.msra.mxu1 %v8114_v45 }
 0x942   :  { %7405 = vmatprep.subr.bf16.mxu0 %v8793_v0  ;;  %7425 = vmatprep.subr.bf16.mxu1 %v8793_v0 }
 0x945   :  { %7406 = vmatpush3.bf16.msra.mxu0 %v8115_v46  ;;  %7426 = vmatpush3.bf16.msra.mxu1 %v8116_v52 }
 0x946   :  { %7407 = vmatprep.subr.bf16.mxu0 %v8793_v0  ;;  %7427 = vmatprep.subr.bf16.mxu1 %v8793_v0 }
 0x949   :  { %7408 = vmatpush3.bf16.msra.mxu0 %v8117_v10  ;;  %7428 = vmatpush3.bf16.msra.mxu1 %v8118_v11 }
 0x94a   :  { %7409 = vmatprep.subr.bf16.mxu0 %v8793_v0  ;;  %7429 = vmatprep.subr.bf16.mxu1 %v8793_v0 }
 0x94d   :  { %7410 = vmatpush3.bf16.msra.mxu0 %v8119_v55  ;;  %7430 = vmatpush3.bf16.msra.mxu1 %v8120_v12 }
 0x94e   :  { %7411 = vmatprep.subr.bf16.mxu0 %v8793_v0  ;;  %7431 = vmatprep.subr.bf16.mxu1 %v8793_v0 }
 0x951   :  { %7412 = vmatpush3.bf16.msra.mxu0 %v8121_v47  ;;  %7432 = vmatpush3.bf16.msra.mxu1 %v8122_v48 }
 0x952   :  { %7437 = vmatprep.subr.bf16.mxu0 %v8793_v0  ;;  %7457 = vmatprep.subr.bf16.mxu1 %v8793_v0 }
 0x954   :  { %7414 = vmatmul.mubr.bf16.vlgmr.msra.gmra.mrb[72].mxu0 %v8795_v20  ;;  %7434 = vmatmul.mubr.bf16.vlgmr.msra.gmra.mrb[72].mxu1 %v8795_v20  ;;  %v8127_v20 = vld [vmem:[#allocation8 + $0x40] ss:$16 sps:$4 sm:$0xff]  }
 0x955   :  { %7453 = vmatprep.mubr.msk.bf16.mxu0 %vm8794_vm0, %v8793_v0  ;;  %7473 = vmatprep.mubr.msk.bf16.mxu1 %vm8794_vm0, %v8793_v0 }
 0x956   :  { %7438 = vmatpush3.bf16.msra.mxu0 %v8123_v49  ;;  %7458 = vmatpush3.bf16.msra.mxu1 %v8124_v50 }
 0x957   :  { %7439 = vmatprep.subr.bf16.mxu0 %v8793_v0  ;;  %7459 = vmatprep.subr.bf16.mxu1 %v8793_v0 }
 0x95a   :  { %7440 = vmatpush3.bf16.msra.mxu0 %v8125_v51  ;;  %7460 = vmatpush3.bf16.msra.mxu1 %v8126_v6 }
 0x95b   :  { %7441 = vmatprep.subr.bf16.mxu0 %v8793_v0  ;;  %7461 = vmatprep.subr.bf16.mxu1 %v8793_v0 }
 0x95e   :  { %7442 = vmatpush3.bf16.msra.mxu0 %v8127_v20  ;;  %7462 = vmatpush3.bf16.msra.mxu1 %v8128_v7 }
 0x95f   :  { %7443 = vmatprep.subr.bf16.mxu0 %v8793_v0  ;;  %7463 = vmatprep.subr.bf16.mxu1 %v8793_v0 }
 0x962   :  { %7444 = vmatpush3.bf16.msra.mxu0 %v8129_v9  ;;  %7464 = vmatpush3.bf16.msra.mxu1 %v8130_v14 }
 0x963   :  { %7445 = vmatprep.subr.bf16.mxu0 %v8793_v0  ;;  %7465 = vmatprep.subr.bf16.mxu1 %v8793_v0 }
 0x966   :  { %7446 = vmatpush3.bf16.msra.mxu0 %v8131_v15  ;;  %7466 = vmatpush3.bf16.msra.mxu1 %v8132_v16 }
 0x967   :  { %7447 = vmatprep.subr.bf16.mxu0 %v8793_v0  ;;  %7467 = vmatprep.subr.bf16.mxu1 %v8793_v0 }
 0x96a   :  { %7448 = vmatpush3.bf16.msra.mxu0 %v8133_v17  ;;  %7468 = vmatpush3.bf16.msra.mxu1 %v8134_v18 }
 0x96b   :  { %7449 = vmatprep.subr.bf16.mxu0 %v8793_v0  ;;  %7469 = vmatprep.subr.bf16.mxu1 %v8793_v0 }
 0x96e   :  { %7450 = vmatpush3.bf16.msra.mxu0 %v8135_v21  ;;  %7470 = vmatpush3.bf16.msra.mxu1 %v8136_v22 }
 0x96f   :  { %7451 = vmatprep.subr.bf16.mxu0 %v8793_v0  ;;  %7471 = vmatprep.subr.bf16.mxu1 %v8793_v0 }
 0x972   :  { %7452 = vmatpush3.bf16.msra.mxu0 %v8137_v23  ;;  %7472 = vmatpush3.bf16.msra.mxu1 %v8138_v24  ;;  %v8139_v23 = vld [vmem:[#allocation8 + $0x8] ss:$16 sps:$4 sm:$0xff]   ;;  %v8140_v24 = vld [vmem:[#allocation8 + $0xc] ss:$16 sps:$4 sm:$0xff]  }
 0x973   :  { %7477 = vmatprep.subr.bf16.mxu0 %v8793_v0  ;;  %7497 = vmatprep.subr.bf16.mxu1 %v8793_v0 }
 0x9e7   :  { %v2132_v25 = vpop.f32.mrb[64].mxu0  ;;  %v2173_v13 = vpop.f32.mrb[64].mxu1 }
 0x9e8   :  { %v2134_v53 = vpop.f32.mrb[65].mxu0  ;;  %v2175_v54 = vpop.f32.mrb[65].mxu1  ;;  %v9670_v31 = vadd.f32 %v2132_v25, %v1921_v27  ;;  %v9674_v44 = vadd.f32 %v2173_v13, %v1929_v40  ;;  %v8141_v13 = vld [vmem:[#allocation8 + $0x28] ss:$16 sps:$4 sm:$0xff]   ;;  %v8160_v27 = vld [vmem:[#allocation8 + $0x44] ss:$16 sps:$4 sm:$0xff]  }
 0x9e9   :  { %v2136_v56 = vpop.f32.mrb[66].mxu0  ;;  %v2177_v57 = vpop.f32.mrb[66].mxu1  ;;  %v9668_v30 = vadd.f32 %v2134_v53, %v1925_v4  ;;  %v9676_v45 = vadd.f32 %v2175_v54, %v1933_v41  ;;  %v8142_v53 = vld [vmem:[#allocation8 + $0x2c] ss:$16 sps:$4 sm:$0xff]   ;;  %v8143_v54 = vld [vmem:[#allocation8 + $0x48] ss:$16 sps:$4 sm:$0xff]  }
 0x9ea   :  { %v2137_v58 = vpop.f32.mrb[67].mxu0  ;;  %v2178_v5 = vpop.f32.mrb[67].mxu1  ;;  %v8144_v56 = vld [vmem:[#allocation8 + $0x4c] ss:$16 sps:$4 sm:$0xff]   ;;  %v8145_v57 = vld [vmem:[#allocation8 + $0x68] ss:$16 sps:$4 sm:$0xff]  }
 0x9eb   :  { %v8146_v58 = vld [vmem:[#allocation8 + $0x6c] ss:$16 sps:$4 sm:$0xff]   ;;  %v8147_v5 = vld [vmem:[#allocation8 + $0x88] ss:$16 sps:$4 sm:$0xff]   ;;  %v8157_v4 = vld [vmem:[#allocation8 + $0x20] ss:$16 sps:$4 sm:$0xff]  }
 0xa07   :  { %v2278_v63 = vpop.f32.mrb[68].mxu0  ;;  %v2389_v1 = vpop.f32.mrb[68].mxu1 }
 0xa08   :  { %v7375_v2 = vpop.f32.mrb[69].mxu0  ;;  %v7395_v3 = vpop.f32.mrb[69].mxu1  ;;  %v2395_v32 = vadd.f32 %v2389_v1, %v9668_v30  ;;  %v2284_v33 = vadd.f32 %v2278_v63, %v9670_v31  ;;  %v8153_v63 = vld [vmem:[#allocation8 + $0xe8] ss:$16 sps:$4 sm:$0xff]   ;;  %v8154_v1 = vld [vmem:[#allocation8 + $0xec] ss:$16 sps:$4 sm:$0xff]  }
 0xa09   :  { %v2281_v26 = vpop.f32.mrb[70].mxu0  ;;  %v2392_v19 = vpop.f32.mrb[70].mxu1  ;;  %v8155_v2 = vld [vmem:[#allocation8] ss:$16 sps:$4 sm:$0xff]   ;;  %v8156_v3 = vld [vmem:[#allocation8 + $0x4] ss:$16 sps:$4 sm:$0xff]  }
 0xa0a   :  { %v7376_v28 = vpop.f32.mrb[71].mxu0  ;;  %v7396_v29 = vpop.f32.mrb[71].mxu1  ;;  %v5878_v34 = vmul.f32 -1.442695, %v2395_v32  ;;  %v5869_v35 = vmul.f32 -1.442695, %v2284_v33 }
 0xa0b   :  { %v8158_v26 = vld [vmem:[#allocation8 + $0x24] ss:$16 sps:$4 sm:$0xff]   ;;  %v8159_v19 = vld [vmem:[#allocation8 + $0x40] ss:$16 sps:$4 sm:$0xff]  }
 0xa0c   :  { %8475 = vpow2.f32 %v5878_v34  ;;  %v8161_v28 = vld [vmem:[#allocation8 + $0x60] ss:$16 sps:$4 sm:$0xff]   ;;  %v8162_v29 = vld [vmem:[#allocation8 + $0x64] ss:$16 sps:$4 sm:$0xff]  }
 0xa0d   :  { %8477 = vpow2.f32 %v5869_v35  ;;  %v8163_v32 = vld [vmem:[#allocation8 + $0x80] ss:$16 sps:$4 sm:$0xff]   ;;  %v8164_v33 = vld [vmem:[#allocation8 + $0x84] ss:$16 sps:$4 sm:$0xff]  }
 0xa0e   :  { %v8165_v34 = vld [vmem:[#allocation8 + $0xa0] ss:$16 sps:$4 sm:$0xff]   ;;  %v8166_v35 = vld [vmem:[#allocation8 + $0xa4] ss:$16 sps:$4 sm:$0xff]  }
 0xa16   :  { %v8476_v38 = vpop.eup %8475 }
 0xa17   :  { %v8478_v39 = vpop.eup %8477  ;;  %v2399_v42 = vadd.f32 1.0, %v8476_v38  ;;  %v8169_v38 = vld [vmem:[#allocation8 + $0xe0] ss:$16 sps:$4 sm:$0xff]  }
 0xa18   :  { %v2288_v43 = vadd.f32 1.0, %v8478_v39  ;;  %v8170_v39 = vld [vmem:[#allocation8 + $0xe4] ss:$16 sps:$4 sm:$0xff]  }
 0xa19   :  { %8479 = vrcp.f32 %v2399_v42 }
 0xa1a   :  { %8481 = vrcp.f32 %v2288_v43 }
 0xa23   :  { %v8480_v6 = vpop.eup %8479 }
 0xa24   :  { %v8482_v20 = vpop.eup %8481  ;;  %v2619_v9 = vmul.f32 0.0, %v8480_v6 }
 0xa27   :  { %v2500_v46 = vpop.f32.mrb[72].mxu0  ;;  %v2606_v52 = vpop.f32.mrb[72].mxu1 }
 0xa28   :  { %v2506_v10 = vadd.f32 %v2500_v46, %v9674_v44  ;;  %v2612_v11 = vadd.f32 %v2606_v52, %v9676_v45  ;;  %v7415_v55 = vpop.f32.mrb[73].mxu0  ;;  %v7435_v12 = vpop.f32.mrb[73].mxu1 }
 0xa29   :  { %v2503_v47 = vpop.f32.mrb[74].mxu0  ;;  %v2609_v48 = vpop.f32.mrb[74].mxu1 }
 0xa2a   :  { %8483 = vtanh.f32 %v2506_v10  ;;  %v5895_v49 = vmul.f32 -1.442695, %v2612_v11  ;;  %v7416_v50 = vpop.f32.mrb[75].mxu0  ;;  %v7436_v51 = vpop.f32.mrb[75].mxu1 }
 0xa2c   :  { %8485 = vpow2.f32 %v5895_v49 }
 0xa34   :  { %v8484_v7 = vpop.eup %8483 }
 0xa35   :  { %v2620_v14 = vmul.f32 %v8484_v7, %v8482_v20 }
 0xa36   :  { %v8486_v15 = vpop.eup %8485 }
 0xa37   :  { %v9680_v16 = vadd.f32 %v2620_v14, %v2619_v9  ;;  %v2616_v17 = vadd.f32 1.0, %v8486_v15 }
 0xa39   :  { %8487 = vtanh.f32 %v9680_v16 }
 0xa3a   :  { %8489 = vrcp.f32 %v2616_v17 }
 0xa43   :  { %v8488_v18 = vpop.eup %8487 }
 0xa44   :  { %v8490_v21 = vpop.eup %8489 }
 0xa45   :  { %v2623_v22 = vmul.f32 %v8490_v21, %v8488_v18 }
 0xa47   :  { %2624 = vst [vmem:[#allocation10] sm:$0xff] %v2623_v22  ;;  %v2625_v25 = vpack.c.bf16 %v2623_v22, %v2623_v22 }
 0xa49   :  { %7454 = vmatmul.mubr.bf16.vlgmr.msra.gmra.mrb[76].mxu0 %v2625_v25  ;;  %7474 = vmatmul.mubr.bf16.vlgmr.msra.gmra.mrb[76].mxu1 %v2625_v25 }
 0xa4a   :  { %7478 = vmatpush3.bf16.msra.mxu0 %v8139_v23  ;;  %7498 = vmatpush3.bf16.msra.mxu1 %v8140_v24 }
 0xa4b   :  { %7479 = vmatprep.subr.bf16.mxu0 %v8793_v0  ;;  %7499 = vmatprep.subr.bf16.mxu1 %v8793_v0 }
 0xa4c   :  { %7493 = vmatprep.mubr.msk.bf16.mxu0 %vm8794_vm0, %v8793_v0  ;;  %7513 = vmatprep.mubr.msk.bf16.mxu1 %vm8794_vm0, %v8793_v0 }
 0xa4e   :  { %7480 = vmatpush3.bf16.msra.mxu0 %v8141_v13  ;;  %7500 = vmatpush3.bf16.msra.mxu1 %v8142_v53 }
 0xa4f   :  { %7481 = vmatprep.subr.bf16.mxu0 %v8793_v0  ;;  %7501 = vmatprep.subr.bf16.mxu1 %v8793_v0 }
 0xa52   :  { %7482 = vmatpush3.bf16.msra.mxu0 %v8143_v54  ;;  %7502 = vmatpush3.bf16.msra.mxu1 %v8144_v56 }
 0xa53   :  { %7483 = vmatprep.subr.bf16.mxu0 %v8793_v0  ;;  %7503 = vmatprep.subr.bf16.mxu1 %v8793_v0 }
 0xa56   :  { %7484 = vmatpush3.bf16.msra.mxu0 %v8145_v57  ;;  %7504 = vmatpush3.bf16.msra.mxu1 %v8146_v58 }
 0xa57   :  { %7485 = vmatprep.subr.bf16.mxu0 %v8793_v0  ;;  %7505 = vmatprep.subr.bf16.mxu1 %v8793_v0 }
 0xa5a   :  { %7486 = vmatpush3.bf16.msra.mxu0 %v8147_v5  ;;  %7506 = vmatpush3.bf16.msra.mxu1 %v8148_v59 }
 0xa5b   :  { %7487 = vmatprep.subr.bf16.mxu0 %v8793_v0  ;;  %7507 = vmatprep.subr.bf16.mxu1 %v8793_v0 }
 0xa5e   :  { %7488 = vmatpush3.bf16.msra.mxu0 %v8149_v60  ;;  %7508 = vmatpush3.bf16.msra.mxu1 %v8150_v8 }
 0xa5f   :  { %7489 = vmatprep.subr.bf16.mxu0 %v8793_v0  ;;  %7509 = vmatprep.subr.bf16.mxu1 %v8793_v0 }
 0xa62   :  { %7490 = vmatpush3.bf16.msra.mxu0 %v8151_v61  ;;  %7510 = vmatpush3.bf16.msra.mxu1 %v8152_v62  ;;  %v8171_v61 = vld [vmem:[#allocation8 + $0x8] ss:$16 sps:$4 sm:$0xff]   ;;  %v8172_v62 = vld [vmem:[#allocation8 + $0xc] ss:$16 sps:$4 sm:$0xff]  }
 0xa63   :  { %7491 = vmatprep.subr.bf16.mxu0 %v8793_v0  ;;  %7511 = vmatprep.subr.bf16.mxu1 %v8793_v0 }
 0xa66   :  { %7492 = vmatpush3.bf16.msra.mxu0 %v8153_v63  ;;  %7512 = vmatpush3.bf16.msra.mxu1 %v8154_v1  ;;  %v8174_v1 = vld [vmem:[#allocation8 + $0x2c] ss:$16 sps:$4 sm:$0xff]  }
 0xa67   :  { %7517 = vmatprep.subr.bf16.mxu0 %v8793_v0  ;;  %7537 = vmatprep.subr.bf16.mxu1 %v8793_v0 }
 0xa69   :  { %7494 = vmatmul.mubr.bf16.vlgmr.msra.gmra.mrb[80].mxu0 %v2625_v25  ;;  %7514 = vmatmul.mubr.bf16.vlgmr.msra.gmra.mrb[80].mxu1 %v2625_v25 }
 0xa6a   :  { %7533 = vmatprep.mubr.msk.bf16.mxu0 %vm8794_vm0, %v8793_v0  ;;  %7553 = vmatprep.mubr.msk.bf16.mxu1 %vm8794_vm0, %v8793_v0 }
 0xa6b   :  { %7518 = vmatpush3.bf16.msra.mxu0 %v8155_v2  ;;  %7538 = vmatpush3.bf16.msra.mxu1 %v8156_v3  ;;  %v8175_v2 = vld [vmem:[#allocation8 + $0x48] ss:$16 sps:$4 sm:$0xff]   ;;  %v8176_v3 = vld [vmem:[#allocation8 + $0x4c] ss:$16 sps:$4 sm:$0xff]  }
 0xa6c   :  { %7519 = vmatprep.subr.bf16.mxu0 %v8793_v0  ;;  %7539 = vmatprep.subr.bf16.mxu1 %v8793_v0 }
 0xa6f   :  { %7520 = vmatpush3.bf16.msra.mxu0 %v8157_v4  ;;  %7540 = vmatpush3.bf16.msra.mxu1 %v8158_v26  ;;  %v8177_v4 = vld [vmem:[#allocation8 + $0x68] ss:$16 sps:$4 sm:$0xff]   ;;  %v8178_v26 = vld [vmem:[#allocation8 + $0x6c] ss:$16 sps:$4 sm:$0xff]  }
 0xa70   :  { %7521 = vmatprep.subr.bf16.mxu0 %v8793_v0  ;;  %7541 = vmatprep.subr.bf16.mxu1 %v8793_v0 }
 0xa73   :  { %7522 = vmatpush3.bf16.msra.mxu0 %v8159_v19  ;;  %7542 = vmatpush3.bf16.msra.mxu1 %v8160_v27  ;;  %v8179_v19 = vld [vmem:[#allocation8 + $0x88] ss:$16 sps:$4 sm:$0xff]   ;;  %v8180_v27 = vld [vmem:[#allocation8 + $0x8c] ss:$16 sps:$4 sm:$0xff]  }
 0xa74   :  { %7523 = vmatprep.subr.bf16.mxu0 %v8793_v0  ;;  %7543 = vmatprep.subr.bf16.mxu1 %v8793_v0 }
 0xa77   :  { %7524 = vmatpush3.bf16.msra.mxu0 %v8161_v28  ;;  %7544 = vmatpush3.bf16.msra.mxu1 %v8162_v29  ;;  %v8181_v28 = vld [vmem:[#allocation8 + $0xa8] ss:$16 sps:$4 sm:$0xff]   ;;  %v8182_v29 = vld [vmem:[#allocation8 + $0xac] ss:$16 sps:$4 sm:$0xff]  }
 0xa78   :  { %7525 = vmatprep.subr.bf16.mxu0 %v8793_v0  ;;  %7545 = vmatprep.subr.bf16.mxu1 %v8793_v0 }
 0xa7b   :  { %7526 = vmatpush3.bf16.msra.mxu0 %v8163_v32  ;;  %7546 = vmatpush3.bf16.msra.mxu1 %v8164_v33  ;;  %v8183_v32 = vld [vmem:[#allocation8 + $0xc8] ss:$16 sps:$4 sm:$0xff]   ;;  %v8184_v33 = vld [vmem:[#allocation8 + $0xcc] ss:$16 sps:$4 sm:$0xff]  }
 0xa7c   :  { %7527 = vmatprep.subr.bf16.mxu0 %v8793_v0  ;;  %7547 = vmatprep.subr.bf16.mxu1 %v8793_v0 }
 0xa7f   :  { %7528 = vmatpush3.bf16.msra.mxu0 %v8165_v34  ;;  %7548 = vmatpush3.bf16.msra.mxu1 %v8166_v35  ;;  %v8185_v34 = vld [vmem:[#allocation8 + $0xe8] ss:$16 sps:$4 sm:$0xff]   ;;  %v8186_v35 = vld [vmem:[#allocation8 + $0xec] ss:$16 sps:$4 sm:$0xff]  }
 0xa80   :  { %7529 = vmatprep.subr.bf16.mxu0 %v8793_v0  ;;  %7549 = vmatprep.subr.bf16.mxu1 %v8793_v0 }
 0xa83   :  { %7530 = vmatpush3.bf16.msra.mxu0 %v8167_v36  ;;  %7550 = vmatpush3.bf16.msra.mxu1 %v8168_v37  ;;  %v8187_v36 = vld [vmem:[#allocation8] ss:$16 sps:$4 sm:$0xff]   ;;  %v8188_v37 = vld [vmem:[#allocation8 + $0x4] ss:$16 sps:$4 sm:$0xff]  }
 0xa84   :  { %7531 = vmatprep.subr.bf16.mxu0 %v8793_v0  ;;  %7551 = vmatprep.subr.bf16.mxu1 %v8793_v0 }
 0xa87   :  { %7532 = vmatpush3.bf16.msra.mxu0 %v8169_v38  ;;  %7552 = vmatpush3.bf16.msra.mxu1 %v8170_v39  ;;  %v8189_v38 = vld [vmem:[#allocation8 + $0x20] ss:$16 sps:$4 sm:$0xff]   ;;  %v8190_v39 = vld [vmem:[#allocation8 + $0x24] ss:$16 sps:$4 sm:$0xff]  }
 0xa88   :  { %7557 = vmatprep.subr.bf16.mxu0 %v8793_v0  ;;  %7577 = vmatprep.subr.bf16.mxu1 %v8793_v0 }
 0xb1c   :  { %v2724_v40 = vpop.f32.mrb[76].mxu0  ;;  %v2835_v41 = vpop.f32.mrb[76].mxu1 }
 0xb1d   :  { %v7455_v42 = vpop.f32.mrb[77].mxu0  ;;  %v7475_v43 = vpop.f32.mrb[77].mxu1  ;;  %v2841_v55 = vadd.f32 %v2835_v41, %v9668_v30  ;;  %v2730_v12 = vadd.f32 %v2724_v40, %v9670_v31  ;;  %v8191_v40 = vld [vmem:[#allocation8 + $0x40] ss:$16 sps:$4 sm:$0xff]   ;;  %v8192_v41 = vld [vmem:[#allocation8 + $0x44] ss:$16 sps:$4 sm:$0xff]  }
 0xb1e   :  { %v2727_v46 = vpop.f32.mrb[78].mxu0  ;;  %v2838_v52 = vpop.f32.mrb[78].mxu1  ;;  %v8193_v42 = vld [vmem:[#allocation8 + $0x60] ss:$16 sps:$4 sm:$0xff]   ;;  %v8194_v43 = vld [vmem:[#allocation8 + $0x64] ss:$16 sps:$4 sm:$0xff]  }
 0xb1f   :  { %v7456_v10 = vpop.f32.mrb[79].mxu0  ;;  %v7476_v11 = vpop.f32.mrb[79].mxu1  ;;  %v5913_v47 = vmul.f32 -1.442695, %v2841_v55  ;;  %v5904_v48 = vmul.f32 -1.442695, %v2730_v12 }
 0xb20   :  { %v8195_v46 = vld [vmem:[#allocation8 + $0x80] ss:$16 sps:$4 sm:$0xff]   ;;  %v8196_v52 = vld [vmem:[#allocation8 + $0x84] ss:$16 sps:$4 sm:$0xff]  }
 0xb21   :  { %8491 = vpow2.f32 %v5913_v47  ;;  %v8197_v10 = vld [vmem:[#allocation8 + $0xa0] ss:$16 sps:$4 sm:$0xff]   ;;  %v8198_v11 = vld [vmem:[#allocation8 + $0xa4] ss:$16 sps:$4 sm:$0xff]  }
 0xb22   :  { %8493 = vpow2.f32 %v5904_v48  ;;  %v8199_v55 = vld [vmem:[#allocation8 + $0xc0] ss:$16 sps:$4 sm:$0xff]   ;;  %v8200_v12 = vld [vmem:[#allocation8 + $0xc4] ss:$16 sps:$4 sm:$0xff]  }
 0xb23   :  { %v8201_v47 = vld [vmem:[#allocation8 + $0xe0] ss:$16 sps:$4 sm:$0xff]   ;;  %v8202_v48 = vld [vmem:[#allocation8 + $0xe4] ss:$16 sps:$4 sm:$0xff]  }
 0xb2b   :  { %v8492_v49 = vpop.eup %8491 }
 0xb2c   :  { %v8494_v50 = vpop.eup %8493  ;;  %v2845_v51 = vadd.f32 1.0, %v8492_v49 }
 0xb2d   :  { %v2734_v6 = vadd.f32 1.0, %v8494_v50 }
 0xb2e   :  { %8495 = vrcp.f32 %v2845_v51 }
 0xb2f   :  { %8497 = vrcp.f32 %v2734_v6 }
 0xb38   :  { %v8496_v25 = vpop.eup %8495 }
 0xb39   :  { %v8498_v13 = vpop.eup %8497  ;;  %v3065_v54 = vmul.f32 %v8496_v25, %v9680_v16  ;;  %v8173_v16 = vld [vmem:[#allocation8 + $0x28] ss:$16 sps:$4 sm:$0xff]  }
 0xb3c   :  { %v2946_v20 = vpop.f32.mrb[80].mxu0  ;;  %v3052_v7 = vpop.f32.mrb[80].mxu1 }
 0xb3d   :  { %v2952_v9 = vadd.f32 %v2946_v20, %v9674_v44  ;;  %v3058_v14 = vadd.f32 %v3052_v7, %v9676_v45  ;;  %v7495_v15 = vpop.f32.mrb[81].mxu0  ;;  %v7515_v17 = vpop.f32.mrb[81].mxu1 }
 0xb3e   :  { %v2949_v18 = vpop.f32.mrb[82].mxu0  ;;  %v3055_v21 = vpop.f32.mrb[82].mxu1 }
 0xb3f   :  { %8499 = vtanh.f32 %v2952_v9  ;;  %v5930_v22 = vmul.f32 -1.442695, %v3058_v14  ;;  %v7496_v23 = vpop.f32.mrb[83].mxu0  ;;  %v7516_v24 = vpop.f32.mrb[83].mxu1 }
 0xb41   :  { %8501 = vpow2.f32 %v5930_v22 }
 0xb49   :  { %v8500_v53 = vpop.eup %8499 }
 0xb4a   :  { %v3066_v56 = vmul.f32 %v8500_v53, %v8498_v13 }
 0xb4b   :  { %v8502_v57 = vpop.eup %8501 }
 0xb4c   :  { %v9728_v58 = vadd.f32 %v3066_v56, %v3065_v54  ;;  %v3062_v5 = vadd.f32 1.0, %v8502_v57 }
 0xb4e   :  { %8503 = vtanh.f32 %v9728_v58 }
 0xb4f   :  { %8505 = vrcp.f32 %v3062_v5 }
 0xb58   :  { %v8504_v59 = vpop.eup %8503 }
 0xb59   :  { %v8506_v60 = vpop.eup %8505 }
 0xb5a   :  { %v3069_v8 = vmul.f32 %v8506_v60, %v8504_v59 }
 0xb5c   :  { %3071 = vst [vmem:[#allocation10 + $0x8] sm:$0xff] %v3069_v8  ;;  %v3072_v63 = vpack.c.bf16 %v3069_v8, %v3069_v8 }
 0xb5e   :  { %7534 = vmatmul.mubr.bf16.vlgmr.msra.gmra.mrb[84].mxu0 %v3072_v63  ;;  %7554 = vmatmul.mubr.bf16.vlgmr.msra.gmra.mrb[84].mxu1 %v3072_v63 }
 0xb5f   :  { %7558 = vmatpush3.bf16.msra.mxu0 %v8171_v61  ;;  %7578 = vmatpush3.bf16.msra.mxu1 %v8172_v62 }
 0xb60   :  { %7559 = vmatprep.subr.bf16.mxu0 %v8793_v0  ;;  %7579 = vmatprep.subr.bf16.mxu1 %v8793_v0 }
 0xb61   :  { %7573 = vmatprep.mubr.msk.bf16.mxu0 %vm8794_vm0, %v8793_v0  ;;  %7593 = vmatprep.mubr.msk.bf16.mxu1 %vm8794_vm0, %v8793_v0 }
 0xb63   :  { %7560 = vmatpush3.bf16.msra.mxu0 %v8173_v16  ;;  %7580 = vmatpush3.bf16.msra.mxu1 %v8174_v1 }
 0xb64   :  { %7561 = vmatprep.subr.bf16.mxu0 %v8793_v0  ;;  %7581 = vmatprep.subr.bf16.mxu1 %v8793_v0 }
 0xb67   :  { %7562 = vmatpush3.bf16.msra.mxu0 %v8175_v2  ;;  %7582 = vmatpush3.bf16.msra.mxu1 %v8176_v3 }
 0xb68   :  { %7563 = vmatprep.subr.bf16.mxu0 %v8793_v0  ;;  %7583 = vmatprep.subr.bf16.mxu1 %v8793_v0 }
 0xb6b   :  { %7564 = vmatpush3.bf16.msra.mxu0 %v8177_v4  ;;  %7584 = vmatpush3.bf16.msra.mxu1 %v8178_v26 }
 0xb6c   :  { %7565 = vmatprep.subr.bf16.mxu0 %v8793_v0  ;;  %7585 = vmatprep.subr.bf16.mxu1 %v8793_v0 }
 0xb6f   :  { %7566 = vmatpush3.bf16.msra.mxu0 %v8179_v19  ;;  %7586 = vmatpush3.bf16.msra.mxu1 %v8180_v27 }
 0xb70   :  { %7567 = vmatprep.subr.bf16.mxu0 %v8793_v0  ;;  %7587 = vmatprep.subr.bf16.mxu1 %v8793_v0 }
 0xb73   :  { %7568 = vmatpush3.bf16.msra.mxu0 %v8181_v28  ;;  %7588 = vmatpush3.bf16.msra.mxu1 %v8182_v29 }
 0xb74   :  { %7569 = vmatprep.subr.bf16.mxu0 %v8793_v0  ;;  %7589 = vmatprep.subr.bf16.mxu1 %v8793_v0 }
 0xb77   :  { %7570 = vmatpush3.bf16.msra.mxu0 %v8183_v32  ;;  %7590 = vmatpush3.bf16.msra.mxu1 %v8184_v33  ;;  %v8203_v32 = vld [vmem:[#allocation8 + $0x8] ss:$16 sps:$4 sm:$0xff]   ;;  %v8204_v33 = vld [vmem:[#allocation8 + $0xc] ss:$16 sps:$4 sm:$0xff]  }
 0xb78   :  { %7571 = vmatprep.subr.bf16.mxu0 %v8793_v0  ;;  %7591 = vmatprep.subr.bf16.mxu1 %v8793_v0 }
 0xb7b   :  { %7572 = vmatpush3.bf16.msra.mxu0 %v8185_v34  ;;  %7592 = vmatpush3.bf16.msra.mxu1 %v8186_v35  ;;  %v8206_v35 = vld [vmem:[#allocation8 + $0x2c] ss:$16 sps:$4 sm:$0xff]  }
 0xb7c   :  { %7597 = vmatprep.subr.bf16.mxu0 %v8793_v0  ;;  %7617 = vmatprep.subr.bf16.mxu1 %v8793_v0 }
 0xb7e   :  { %7574 = vmatmul.mubr.bf16.vlgmr.msra.gmra.mrb[88].mxu0 %v3072_v63  ;;  %7594 = vmatmul.mubr.bf16.vlgmr.msra.gmra.mrb[88].mxu1 %v3072_v63 }
 0xb7f   :  { %7613 = vmatprep.mubr.msk.bf16.mxu0 %vm8794_vm0, %v8793_v0  ;;  %7633 = vmatprep.mubr.msk.bf16.mxu1 %vm8794_vm0, %v8793_v0 }
 0xb80   :  { %7598 = vmatpush3.bf16.msra.mxu0 %v8187_v36  ;;  %7618 = vmatpush3.bf16.msra.mxu1 %v8188_v37  ;;  %v8207_v36 = vld [vmem:[#allocation8 + $0x48] ss:$16 sps:$4 sm:$0xff]   ;;  %v8208_v37 = vld [vmem:[#allocation8 + $0x4c] ss:$16 sps:$4 sm:$0xff]  }
 0xb81   :  { %7599 = vmatprep.subr.bf16.mxu0 %v8793_v0  ;;  %7619 = vmatprep.subr.bf16.mxu1 %v8793_v0 }
 0xb84   :  { %7600 = vmatpush3.bf16.msra.mxu0 %v8189_v38  ;;  %7620 = vmatpush3.bf16.msra.mxu1 %v8190_v39  ;;  %v8209_v38 = vld [vmem:[#allocation8 + $0x68] ss:$16 sps:$4 sm:$0xff]   ;;  %v8210_v39 = vld [vmem:[#allocation8 + $0x6c] ss:$16 sps:$4 sm:$0xff]  }
 0xb85   :  { %7601 = vmatprep.subr.bf16.mxu0 %v8793_v0  ;;  %7621 = vmatprep.subr.bf16.mxu1 %v8793_v0 }
 0xb88   :  { %7602 = vmatpush3.bf16.msra.mxu0 %v8191_v40  ;;  %7622 = vmatpush3.bf16.msra.mxu1 %v8192_v41  ;;  %v8211_v40 = vld [vmem:[#allocation8 + $0x88] ss:$16 sps:$4 sm:$0xff]   ;;  %v8212_v41 = vld [vmem:[#allocation8 + $0x8c] ss:$16 sps:$4 sm:$0xff]  }
 0xb89   :  { %7603 = vmatprep.subr.bf16.mxu0 %v8793_v0  ;;  %7623 = vmatprep.subr.bf16.mxu1 %v8793_v0 }
 0xb8c   :  { %7604 = vmatpush3.bf16.msra.mxu0 %v8193_v42  ;;  %7624 = vmatpush3.bf16.msra.mxu1 %v8194_v43  ;;  %v8213_v42 = vld [vmem:[#allocation8 + $0xa8] ss:$16 sps:$4 sm:$0xff]   ;;  %v8214_v43 = vld [vmem:[#allocation8 + $0xac] ss:$16 sps:$4 sm:$0xff]  }
 0xb8d   :  { %7605 = vmatprep.subr.bf16.mxu0 %v8793_v0  ;;  %7625 = vmatprep.subr.bf16.mxu1 %v8793_v0 }
 0xb90   :  { %7606 = vmatpush3.bf16.msra.mxu0 %v8195_v46  ;;  %7626 = vmatpush3.bf16.msra.mxu1 %v8196_v52  ;;  %v8215_v46 = vld [vmem:[#allocation8 + $0xc8] ss:$16 sps:$4 sm:$0xff]   ;;  %v8216_v52 = vld [vmem:[#allocation8 + $0xcc] ss:$16 sps:$4 sm:$0xff]  }
 0xb91   :  { %7607 = vmatprep.subr.bf16.mxu0 %v8793_v0  ;;  %7627 = vmatprep.subr.bf16.mxu1 %v8793_v0 }
 0xb94   :  { %7608 = vmatpush3.bf16.msra.mxu0 %v8197_v10  ;;  %7628 = vmatpush3.bf16.msra.mxu1 %v8198_v11  ;;  %v8217_v10 = vld [vmem:[#allocation8 + $0xe8] ss:$16 sps:$4 sm:$0xff]   ;;  %v8218_v11 = vld [vmem:[#allocation8 + $0xec] ss:$16 sps:$4 sm:$0xff]  }
 0xb95   :  { %7609 = vmatprep.subr.bf16.mxu0 %v8793_v0  ;;  %7629 = vmatprep.subr.bf16.mxu1 %v8793_v0 }
 0xb98   :  { %7610 = vmatpush3.bf16.msra.mxu0 %v8199_v55  ;;  %7630 = vmatpush3.bf16.msra.mxu1 %v8200_v12  ;;  %v8219_v55 = vld [vmem:[#allocation8] ss:$16 sps:$4 sm:$0xff]   ;;  %v8220_v12 = vld [vmem:[#allocation8 + $0x4] ss:$16 sps:$4 sm:$0xff]  }
 0xb99   :  { %7611 = vmatprep.subr.bf16.mxu0 %v8793_v0  ;;  %7631 = vmatprep.subr.bf16.mxu1 %v8793_v0 }
 0xb9c   :  { %7612 = vmatpush3.bf16.msra.mxu0 %v8201_v47  ;;  %7632 = vmatpush3.bf16.msra.mxu1 %v8202_v48  ;;  %v8221_v47 = vld [vmem:[#allocation8 + $0x20] ss:$16 sps:$4 sm:$0xff]   ;;  %v8222_v48 = vld [vmem:[#allocation8 + $0x24] ss:$16 sps:$4 sm:$0xff]  }
 0xb9d   :  { %7637 = vmatprep.subr.bf16.mxu0 %v8793_v0  ;;  %7657 = vmatprep.subr.bf16.mxu1 %v8793_v0 }
 0xc31   :  { %v3171_v49 = vpop.f32.mrb[84].mxu0  ;;  %v3282_v50 = vpop.f32.mrb[84].mxu1 }
 0xc32   :  { %v7535_v51 = vpop.f32.mrb[85].mxu0  ;;  %v7555_v6 = vpop.f32.mrb[85].mxu1  ;;  %v3288_v15 = vadd.f32 %v3282_v50, %v9668_v30  ;;  %v3177_v17 = vadd.f32 %v3171_v49, %v9670_v31  ;;  %v8223_v49 = vld [vmem:[#allocation8 + $0x40] ss:$16 sps:$4 sm:$0xff]   ;;  %v8224_v50 = vld [vmem:[#allocation8 + $0x44] ss:$16 sps:$4 sm:$0xff]  }
 0xc33   :  { %v3174_v20 = vpop.f32.mrb[86].mxu0  ;;  %v3285_v7 = vpop.f32.mrb[86].mxu1  ;;  %v8225_v51 = vld [vmem:[#allocation8 + $0x60] ss:$16 sps:$4 sm:$0xff]   ;;  %v8226_v6 = vld [vmem:[#allocation8 + $0x64] ss:$16 sps:$4 sm:$0xff]  }
 0xc34   :  { %v7536_v9 = vpop.f32.mrb[87].mxu0  ;;  %v7556_v14 = vpop.f32.mrb[87].mxu1  ;;  %v5948_v18 = vmul.f32 -1.442695, %v3288_v15  ;;  %v5939_v21 = vmul.f32 -1.442695, %v3177_v17 }
 0xc35   :  { %v8227_v20 = vld [vmem:[#allocation8 + $0x80] ss:$16 sps:$4 sm:$0xff]   ;;  %v8228_v7 = vld [vmem:[#allocation8 + $0x84] ss:$16 sps:$4 sm:$0xff]  }
 0xc36   :  { %8507 = vpow2.f32 %v5948_v18  ;;  %v8229_v9 = vld [vmem:[#allocation8 + $0xa0] ss:$16 sps:$4 sm:$0xff]   ;;  %v8230_v14 = vld [vmem:[#allocation8 + $0xa4] ss:$16 sps:$4 sm:$0xff]  }
 0xc37   :  { %8509 = vpow2.f32 %v5939_v21  ;;  %v8231_v15 = vld [vmem:[#allocation8 + $0xc0] ss:$16 sps:$4 sm:$0xff]   ;;  %v8232_v17 = vld [vmem:[#allocation8 + $0xc4] ss:$16 sps:$4 sm:$0xff]  }
 0xc38   :  { %v8233_v18 = vld [vmem:[#allocation8 + $0xe0] ss:$16 sps:$4 sm:$0xff]   ;;  %v8234_v21 = vld [vmem:[#allocation8 + $0xe4] ss:$16 sps:$4 sm:$0xff]  }
 0xc40   :  { %v8508_v22 = vpop.eup %8507 }
 0xc41   :  { %v8510_v23 = vpop.eup %8509  ;;  %v3292_v24 = vadd.f32 1.0, %v8508_v22 }
 0xc42   :  { %v3181_v25 = vadd.f32 1.0, %v8510_v23 }
 0xc43   :  { %8511 = vrcp.f32 %v3292_v24 }
 0xc44   :  { %8513 = vrcp.f32 %v3181_v25 }
 0xc4d   :  { %v8512_v63 = vpop.eup %8511 }
 0xc4e   :  { %v8514_v16 = vpop.eup %8513  ;;  %v3512_v2 = vmul.f32 %v8512_v63, %v9728_v58  ;;  %v8205_v58 = vld [vmem:[#allocation8 + $0x28] ss:$16 sps:$4 sm:$0xff]  }
 0xc51   :  { %v3393_v13 = vpop.f32.mrb[88].mxu0  ;;  %v3499_v53 = vpop.f32.mrb[88].mxu1 }
 0xc52   :  { %v3399_v54 = vadd.f32 %v3393_v13, %v9674_v44  ;;  %v3505_v56 = vadd.f32 %v3499_v53, %v9676_v45  ;;  %v7575_v57 = vpop.f32.mrb[89].mxu0  ;;  %v7595_v5 = vpop.f32.mrb[89].mxu1 }
 0xc53   :  { %v3396_v59 = vpop.f32.mrb[90].mxu0  ;;  %v3502_v60 = vpop.f32.mrb[90].mxu1 }
 0xc54   :  { %8515 = vtanh.f32 %v3399_v54  ;;  %v5965_v8 = vmul.f32 -1.442695, %v3505_v56  ;;  %v7576_v61 = vpop.f32.mrb[91].mxu0  ;;  %v7596_v62 = vpop.f32.mrb[91].mxu1 }
 0xc56   :  { %8517 = vpow2.f32 %v5965_v8 }
 0xc5e   :  { %v8516_v1 = vpop.eup %8515 }
 0xc5f   :  { %v3513_v3 = vmul.f32 %v8516_v1, %v8514_v16 }
 0xc60   :  { %v8518_v4 = vpop.eup %8517 }
 0xc61   :  { %v9776_v26 = vadd.f32 %v3513_v3, %v3512_v2  ;;  %v3509_v19 = vadd.f32 1.0, %v8518_v4 }
 0xc63   :  { %8519 = vtanh.f32 %v9776_v26 }
 0xc64   :  { %8521 = vrcp.f32 %v3509_v19 }
 0xc6d   :  { %v8520_v27 = vpop.eup %8519 }
 0xc6e   :  { %v8522_v28 = vpop.eup %8521 }
 0xc6f   :  { %v3516_v29 = vmul.f32 %v8522_v28, %v8520_v27 }
 0xc71   :  { %3518 = vst [vmem:[#allocation10 + $0x10] sm:$0xff] %v3516_v29  ;;  %v3519_v34 = vpack.c.bf16 %v3516_v29, %v3516_v29 }
 0xc73   :  { %7614 = vmatmul.mubr.bf16.vlgmr.msra.gmra.mrb[92].mxu0 %v3519_v34  ;;  %7634 = vmatmul.mubr.bf16.vlgmr.msra.gmra.mrb[92].mxu1 %v3519_v34 }
 0xc74   :  { %7638 = vmatpush3.bf16.msra.mxu0 %v8203_v32  ;;  %7658 = vmatpush3.bf16.msra.mxu1 %v8204_v33 }
 0xc75   :  { %7639 = vmatprep.subr.bf16.mxu0 %v8793_v0  ;;  %7659 = vmatprep.subr.bf16.mxu1 %v8793_v0 }
 0xc76   :  { %7653 = vmatprep.mubr.msk.bf16.mxu0 %vm8794_vm0, %v8793_v0  ;;  %7673 = vmatprep.mubr.msk.bf16.mxu1 %vm8794_vm0, %v8793_v0 }
 0xc78   :  { %7640 = vmatpush3.bf16.msra.mxu0 %v8205_v58  ;;  %7660 = vmatpush3.bf16.msra.mxu1 %v8206_v35 }
 0xc79   :  { %7641 = vmatprep.subr.bf16.mxu0 %v8793_v0  ;;  %7661 = vmatprep.subr.bf16.mxu1 %v8793_v0 }
 0xc7c   :  { %7642 = vmatpush3.bf16.msra.mxu0 %v8207_v36  ;;  %7662 = vmatpush3.bf16.msra.mxu1 %v8208_v37 }
 0xc7d   :  { %7643 = vmatprep.subr.bf16.mxu0 %v8793_v0  ;;  %7663 = vmatprep.subr.bf16.mxu1 %v8793_v0 }
 0xc80   :  { %7644 = vmatpush3.bf16.msra.mxu0 %v8209_v38  ;;  %7664 = vmatpush3.bf16.msra.mxu1 %v8210_v39 }
 0xc81   :  { %7645 = vmatprep.subr.bf16.mxu0 %v8793_v0  ;;  %7665 = vmatprep.subr.bf16.mxu1 %v8793_v0 }
 0xc84   :  { %7646 = vmatpush3.bf16.msra.mxu0 %v8211_v40  ;;  %7666 = vmatpush3.bf16.msra.mxu1 %v8212_v41 }
 0xc85   :  { %7647 = vmatprep.subr.bf16.mxu0 %v8793_v0  ;;  %7667 = vmatprep.subr.bf16.mxu1 %v8793_v0 }
 0xc88   :  { %7648 = vmatpush3.bf16.msra.mxu0 %v8213_v42  ;;  %7668 = vmatpush3.bf16.msra.mxu1 %v8214_v43 }
 0xc89   :  { %7649 = vmatprep.subr.bf16.mxu0 %v8793_v0  ;;  %7669 = vmatprep.subr.bf16.mxu1 %v8793_v0 }
 0xc8c   :  { %7650 = vmatpush3.bf16.msra.mxu0 %v8215_v46  ;;  %7670 = vmatpush3.bf16.msra.mxu1 %v8216_v52  ;;  %v8235_v46 = vld [vmem:[#allocation8 + $0x8] ss:$16 sps:$4 sm:$0xff]   ;;  %v8236_v52 = vld [vmem:[#allocation8 + $0xc] ss:$16 sps:$4 sm:$0xff]  }
 0xc8d   :  { %7651 = vmatprep.subr.bf16.mxu0 %v8793_v0  ;;  %7671 = vmatprep.subr.bf16.mxu1 %v8793_v0 }
 0xc90   :  { %7652 = vmatpush3.bf16.msra.mxu0 %v8217_v10  ;;  %7672 = vmatpush3.bf16.msra.mxu1 %v8218_v11  ;;  %v8238_v11 = vld [vmem:[#allocation8 + $0x2c] ss:$16 sps:$4 sm:$0xff]  }
 0xc91   :  { %7677 = vmatprep.subr.bf16.mxu0 %v8793_v0  ;;  %7697 = vmatprep.subr.bf16.mxu1 %v8793_v0 }
 0xc93   :  { %7654 = vmatmul.mubr.bf16.vlgmr.msra.gmra.mrb[96].mxu0 %v3519_v34  ;;  %7674 = vmatmul.mubr.bf16.vlgmr.msra.gmra.mrb[96].mxu1 %v3519_v34 }
 0xc94   :  { %7693 = vmatprep.mubr.msk.bf16.mxu0 %vm8794_vm0, %v8793_v0  ;;  %7713 = vmatprep.mubr.msk.bf16.mxu1 %vm8794_vm0, %v8793_v0 }
 0xc95   :  { %7678 = vmatpush3.bf16.msra.mxu0 %v8219_v55  ;;  %7698 = vmatpush3.bf16.msra.mxu1 %v8220_v12  ;;  %v8239_v55 = vld [vmem:[#allocation8 + $0x48] ss:$16 sps:$4 sm:$0xff]   ;;  %v8240_v12 = vld [vmem:[#allocation8 + $0x4c] ss:$16 sps:$4 sm:$0xff]  }
 0xc96   :  { %7679 = vmatprep.subr.bf16.mxu0 %v8793_v0  ;;  %7699 = vmatprep.subr.bf16.mxu1 %v8793_v0 }
 0xc99   :  { %7680 = vmatpush3.bf16.msra.mxu0 %v8221_v47  ;;  %7700 = vmatpush3.bf16.msra.mxu1 %v8222_v48  ;;  %v8241_v47 = vld [vmem:[#allocation8 + $0x68] ss:$16 sps:$4 sm:$0xff]   ;;  %v8242_v48 = vld [vmem:[#allocation8 + $0x6c] ss:$16 sps:$4 sm:$0xff]  }
 0xc9a   :  { %7681 = vmatprep.subr.bf16.mxu0 %v8793_v0  ;;  %7701 = vmatprep.subr.bf16.mxu1 %v8793_v0 }
 0xc9d   :  { %7682 = vmatpush3.bf16.msra.mxu0 %v8223_v49  ;;  %7702 = vmatpush3.bf16.msra.mxu1 %v8224_v50  ;;  %v8243_v49 = vld [vmem:[#allocation8 + $0x88] ss:$16 sps:$4 sm:$0xff]   ;;  %v8244_v50 = vld [vmem:[#allocation8 + $0x8c] ss:$16 sps:$4 sm:$0xff]  }
 0xc9e   :  { %7683 = vmatprep.subr.bf16.mxu0 %v8793_v0  ;;  %7703 = vmatprep.subr.bf16.mxu1 %v8793_v0 }
 0xca1   :  { %7684 = vmatpush3.bf16.msra.mxu0 %v8225_v51  ;;  %7704 = vmatpush3.bf16.msra.mxu1 %v8226_v6  ;;  %v8245_v51 = vld [vmem:[#allocation8 + $0xa8] ss:$16 sps:$4 sm:$0xff]   ;;  %v8246_v6 = vld [vmem:[#allocation8 + $0xac] ss:$16 sps:$4 sm:$0xff]  }
 0xca2   :  { %7685 = vmatprep.subr.bf16.mxu0 %v8793_v0  ;;  %7705 = vmatprep.subr.bf16.mxu1 %v8793_v0 }
 0xca5   :  { %7686 = vmatpush3.bf16.msra.mxu0 %v8227_v20  ;;  %7706 = vmatpush3.bf16.msra.mxu1 %v8228_v7  ;;  %v8247_v20 = vld [vmem:[#allocation8 + $0xc8] ss:$16 sps:$4 sm:$0xff]   ;;  %v8248_v7 = vld [vmem:[#allocation8 + $0xcc] ss:$16 sps:$4 sm:$0xff]  }
 0xca6   :  { %7687 = vmatprep.subr.bf16.mxu0 %v8793_v0  ;;  %7707 = vmatprep.subr.bf16.mxu1 %v8793_v0 }
 0xca9   :  { %7688 = vmatpush3.bf16.msra.mxu0 %v8229_v9  ;;  %7708 = vmatpush3.bf16.msra.mxu1 %v8230_v14  ;;  %v8249_v9 = vld [vmem:[#allocation8 + $0xe8] ss:$16 sps:$4 sm:$0xff]   ;;  %v8250_v14 = vld [vmem:[#allocation8 + $0xec] ss:$16 sps:$4 sm:$0xff]  }
 0xcaa   :  { %7689 = vmatprep.subr.bf16.mxu0 %v8793_v0  ;;  %7709 = vmatprep.subr.bf16.mxu1 %v8793_v0 }
 0xcad   :  { %7690 = vmatpush3.bf16.msra.mxu0 %v8231_v15  ;;  %7710 = vmatpush3.bf16.msra.mxu1 %v8232_v17  ;;  %v8251_v15 = vld [vmem:[#allocation8] ss:$16 sps:$4 sm:$0xff]   ;;  %v8252_v17 = vld [vmem:[#allocation8 + $0x4] ss:$16 sps:$4 sm:$0xff]  }
 0xcae   :  { %7691 = vmatprep.subr.bf16.mxu0 %v8793_v0  ;;  %7711 = vmatprep.subr.bf16.mxu1 %v8793_v0 }
 0xcb1   :  { %7692 = vmatpush3.bf16.msra.mxu0 %v8233_v18  ;;  %7712 = vmatpush3.bf16.msra.mxu1 %v8234_v21  ;;  %v8253_v18 = vld [vmem:[#allocation8 + $0x20] ss:$16 sps:$4 sm:$0xff]   ;;  %v8254_v21 = vld [vmem:[#allocation8 + $0x24] ss:$16 sps:$4 sm:$0xff]  }
 0xcb2   :  { %7717 = vmatprep.subr.bf16.mxu0 %v8793_v0  ;;  %7737 = vmatprep.subr.bf16.mxu1 %v8793_v0 }
 0xd46   :  { %v3618_v22 = vpop.f32.mrb[92].mxu0  ;;  %v3729_v23 = vpop.f32.mrb[92].mxu1 }
 0xd47   :  { %v7615_v24 = vpop.f32.mrb[93].mxu0  ;;  %v7635_v25 = vpop.f32.mrb[93].mxu1  ;;  %v3735_v57 = vadd.f32 %v3729_v23, %v9668_v30  ;;  %v3624_v5 = vadd.f32 %v3618_v22, %v9670_v31  ;;  %v8255_v22 = vld [vmem:[#allocation8 + $0x40] ss:$16 sps:$4 sm:$0xff]   ;;  %v8256_v23 = vld [vmem:[#allocation8 + $0x44] ss:$16 sps:$4 sm:$0xff]  }
 0xd48   :  { %v3621_v13 = vpop.f32.mrb[94].mxu0  ;;  %v3732_v53 = vpop.f32.mrb[94].mxu1  ;;  %v8257_v24 = vld [vmem:[#allocation8 + $0x60] ss:$16 sps:$4 sm:$0xff]   ;;  %v8258_v25 = vld [vmem:[#allocation8 + $0x64] ss:$16 sps:$4 sm:$0xff]  }
 0xd49   :  { %v7616_v54 = vpop.f32.mrb[95].mxu0  ;;  %v7636_v56 = vpop.f32.mrb[95].mxu1  ;;  %v5983_v59 = vmul.f32 -1.442695, %v3735_v57  ;;  %v5974_v60 = vmul.f32 -1.442695, %v3624_v5 }
 0xd4a   :  { %v8259_v13 = vld [vmem:[#allocation8 + $0x80] ss:$16 sps:$4 sm:$0xff]   ;;  %v8260_v53 = vld [vmem:[#allocation8 + $0x84] ss:$16 sps:$4 sm:$0xff]  }
 0xd4b   :  { %8523 = vpow2.f32 %v5983_v59  ;;  %v8261_v54 = vld [vmem:[#allocation8 + $0xa0] ss:$16 sps:$4 sm:$0xff]   ;;  %v8262_v56 = vld [vmem:[#allocation8 + $0xa4] ss:$16 sps:$4 sm:$0xff]  }
 0xd4c   :  { %8525 = vpow2.f32 %v5974_v60  ;;  %v8263_v57 = vld [vmem:[#allocation8 + $0xc0] ss:$16 sps:$4 sm:$0xff]   ;;  %v8264_v5 = vld [vmem:[#allocation8 + $0xc4] ss:$16 sps:$4 sm:$0xff]  }
 0xd4d   :  { %v8265_v59 = vld [vmem:[#allocation8 + $0xe0] ss:$16 sps:$4 sm:$0xff]   ;;  %v8266_v60 = vld [vmem:[#allocation8 + $0xe4] ss:$16 sps:$4 sm:$0xff]  }
 0xd55   :  { %v8524_v8 = vpop.eup %8523 }
 0xd56   :  { %v8526_v61 = vpop.eup %8525  ;;  %v3739_v62 = vadd.f32 1.0, %v8524_v8 }
 0xd57   :  { %v3628_v63 = vadd.f32 1.0, %v8526_v61 }
 0xd58   :  { %8527 = vrcp.f32 %v3739_v62 }
 0xd59   :  { %8529 = vrcp.f32 %v3628_v63 }
 0xd62   :  { %v8528_v34 = vpop.eup %8527 }
 0xd63   :  { %v8530_v58 = vpop.eup %8529  ;;  %v3959_v36 = vmul.f32 %v8528_v34, %v9776_v26  ;;  %v8237_v26 = vld [vmem:[#allocation8 + $0x28] ss:$16 sps:$4 sm:$0xff]  }
 0xd66   :  { %v3840_v16 = vpop.f32.mrb[96].mxu0  ;;  %v3946_v1 = vpop.f32.mrb[96].mxu1 }
 0xd67   :  { %v3846_v2 = vadd.f32 %v3840_v16, %v9674_v44  ;;  %v3952_v3 = vadd.f32 %v3946_v1, %v9676_v45  ;;  %v7655_v4 = vpop.f32.mrb[97].mxu0  ;;  %v7675_v19 = vpop.f32.mrb[97].mxu1 }
 0xd68   :  { %v3843_v27 = vpop.f32.mrb[98].mxu0  ;;  %v3949_v28 = vpop.f32.mrb[98].mxu1 }
 0xd69   :  { %8531 = vtanh.f32 %v3846_v2  ;;  %v6000_v29 = vmul.f32 -1.442695, %v3952_v3  ;;  %v7656_v32 = vpop.f32.mrb[99].mxu0  ;;  %v7676_v33 = vpop.f32.mrb[99].mxu1 }
 0xd6b   :  { %8533 = vpow2.f32 %v6000_v29 }
 0xd73   :  { %v8532_v35 = vpop.eup %8531 }
 0xd74   :  { %v3960_v37 = vmul.f32 %v8532_v35, %v8530_v58 }
 0xd75   :  { %v8534_v38 = vpop.eup %8533 }
 0xd76   :  { %v9824_v39 = vadd.f32 %v3960_v37, %v3959_v36  ;;  %v3956_v40 = vadd.f32 1.0, %v8534_v38 }
 0xd78   :  { %8535 = vtanh.f32 %v9824_v39 }
 0xd79   :  { %8537 = vrcp.f32 %v3956_v40 }
 0xd82   :  { %v8536_v41 = vpop.eup %8535 }
 0xd83   :  { %v8538_v42 = vpop.eup %8537 }
 0xd84   :  { %v3963_v43 = vmul.f32 %v8538_v42, %v8536_v41 }
 0xd86   :  { %3965 = vst [vmem:[#allocation10 + $0x18] sm:$0xff] %v3963_v43  ;;  %v3966_v10 = vpack.c.bf16 %v3963_v43, %v3963_v43 }
 0xd88   :  { %7694 = vmatmul.mubr.bf16.vlgmr.msra.gmra.mrb[100].mxu0 %v3966_v10  ;;  %7714 = vmatmul.mubr.bf16.vlgmr.msra.gmra.mrb[100].mxu1 %v3966_v10 }
 0xd89   :  { %7718 = vmatpush3.bf16.msra.mxu0 %v8235_v46  ;;  %7738 = vmatpush3.bf16.msra.mxu1 %v8236_v52 }
 0xd8a   :  { %7719 = vmatprep.subr.bf16.mxu0 %v8793_v0  ;;  %7739 = vmatprep.subr.bf16.mxu1 %v8793_v0 }
 0xd8b   :  { %7733 = vmatprep.mubr.msk.bf16.mxu0 %vm8794_vm0, %v8793_v0  ;;  %7753 = vmatprep.mubr.msk.bf16.mxu1 %vm8794_vm0, %v8793_v0 }
 0xd8d   :  { %7720 = vmatpush3.bf16.msra.mxu0 %v8237_v26  ;;  %7740 = vmatpush3.bf16.msra.mxu1 %v8238_v11 }
 0xd8e   :  { %7721 = vmatprep.subr.bf16.mxu0 %v8793_v0  ;;  %7741 = vmatprep.subr.bf16.mxu1 %v8793_v0 }
 0xd91   :  { %7722 = vmatpush3.bf16.msra.mxu0 %v8239_v55  ;;  %7742 = vmatpush3.bf16.msra.mxu1 %v8240_v12 }
 0xd92   :  { %7723 = vmatprep.subr.bf16.mxu0 %v8793_v0  ;;  %7743 = vmatprep.subr.bf16.mxu1 %v8793_v0 }
 0xd95   :  { %7724 = vmatpush3.bf16.msra.mxu0 %v8241_v47  ;;  %7744 = vmatpush3.bf16.msra.mxu1 %v8242_v48 }
 0xd96   :  { %7725 = vmatprep.subr.bf16.mxu0 %v8793_v0  ;;  %7745 = vmatprep.subr.bf16.mxu1 %v8793_v0 }
 0xd99   :  { %7726 = vmatpush3.bf16.msra.mxu0 %v8243_v49  ;;  %7746 = vmatpush3.bf16.msra.mxu1 %v8244_v50 }
 0xd9a   :  { %7727 = vmatprep.subr.bf16.mxu0 %v8793_v0  ;;  %7747 = vmatprep.subr.bf16.mxu1 %v8793_v0 }
 0xd9d   :  { %7728 = vmatpush3.bf16.msra.mxu0 %v8245_v51  ;;  %7748 = vmatpush3.bf16.msra.mxu1 %v8246_v6 }
 0xd9e   :  { %7729 = vmatprep.subr.bf16.mxu0 %v8793_v0  ;;  %7749 = vmatprep.subr.bf16.mxu1 %v8793_v0 }
 0xda1   :  { %7730 = vmatpush3.bf16.msra.mxu0 %v8247_v20  ;;  %7750 = vmatpush3.bf16.msra.mxu1 %v8248_v7  ;;  %v8267_v20 = vld [vmem:[#allocation8 + $0x8] ss:$16 sps:$4 sm:$0xff]   ;;  %v8268_v7 = vld [vmem:[#allocation8 + $0xc] ss:$16 sps:$4 sm:$0xff]  }
 0xda2   :  { %7731 = vmatprep.subr.bf16.mxu0 %v8793_v0  ;;  %7751 = vmatprep.subr.bf16.mxu1 %v8793_v0 }
 0xda5   :  { %7732 = vmatpush3.bf16.msra.mxu0 %v8249_v9  ;;  %7752 = vmatpush3.bf16.msra.mxu1 %v8250_v14  ;;  %v8270_v14 = vld [vmem:[#allocation8 + $0x2c] ss:$16 sps:$4 sm:$0xff]  }
 0xda6   :  { %7757 = vmatprep.subr.bf16.mxu0 %v8793_v0  ;;  %7777 = vmatprep.subr.bf16.mxu1 %v8793_v0 }
 0xda8   :  { %7734 = vmatmul.mubr.bf16.vlgmr.msra.gmra.mrb[104].mxu0 %v3966_v10  ;;  %7754 = vmatmul.mubr.bf16.vlgmr.msra.gmra.mrb[104].mxu1 %v3966_v10 }
 0xda9   :  { %7773 = vmatprep.mubr.msk.bf16.mxu0 %vm8794_vm0, %v8793_v0  ;;  %7793 = vmatprep.mubr.msk.bf16.mxu1 %vm8794_vm0, %v8793_v0 }
 0xdaa   :  { %7758 = vmatpush3.bf16.msra.mxu0 %v8251_v15  ;;  %7778 = vmatpush3.bf16.msra.mxu1 %v8252_v17  ;;  %v8271_v15 = vld [vmem:[#allocation8 + $0x48] ss:$16 sps:$4 sm:$0xff]   ;;  %v8272_v17 = vld [vmem:[#allocation8 + $0x4c] ss:$16 sps:$4 sm:$0xff]  }
 0xdab   :  { %7759 = vmatprep.subr.bf16.mxu0 %v8793_v0  ;;  %7779 = vmatprep.subr.bf16.mxu1 %v8793_v0 }
 0xdae   :  { %7760 = vmatpush3.bf16.msra.mxu0 %v8253_v18  ;;  %7780 = vmatpush3.bf16.msra.mxu1 %v8254_v21  ;;  %v8273_v18 = vld [vmem:[#allocation8 + $0x68] ss:$16 sps:$4 sm:$0xff]   ;;  %v8274_v21 = vld [vmem:[#allocation8 + $0x6c] ss:$16 sps:$4 sm:$0xff]  }
 0xdaf   :  { %7761 = vmatprep.subr.bf16.mxu0 %v8793_v0  ;;  %7781 = vmatprep.subr.bf16.mxu1 %v8793_v0 }
 0xdb2   :  { %7762 = vmatpush3.bf16.msra.mxu0 %v8255_v22  ;;  %7782 = vmatpush3.bf16.msra.mxu1 %v8256_v23  ;;  %v8275_v22 = vld [vmem:[#allocation8 + $0x88] ss:$16 sps:$4 sm:$0xff]   ;;  %v8276_v23 = vld [vmem:[#allocation8 + $0x8c] ss:$16 sps:$4 sm:$0xff]  }
 0xdb3   :  { %7763 = vmatprep.subr.bf16.mxu0 %v8793_v0  ;;  %7783 = vmatprep.subr.bf16.mxu1 %v8793_v0 }
 0xdb6   :  { %7764 = vmatpush3.bf16.msra.mxu0 %v8257_v24  ;;  %7784 = vmatpush3.bf16.msra.mxu1 %v8258_v25  ;;  %v8277_v24 = vld [vmem:[#allocation8 + $0xa8] ss:$16 sps:$4 sm:$0xff]   ;;  %v8278_v25 = vld [vmem:[#allocation8 + $0xac] ss:$16 sps:$4 sm:$0xff]  }
 0xdb7   :  { %7765 = vmatprep.subr.bf16.mxu0 %v8793_v0  ;;  %7785 = vmatprep.subr.bf16.mxu1 %v8793_v0 }
 0xdba   :  { %7766 = vmatpush3.bf16.msra.mxu0 %v8259_v13  ;;  %7786 = vmatpush3.bf16.msra.mxu1 %v8260_v53  ;;  %v8279_v13 = vld [vmem:[#allocation8 + $0xc8] ss:$16 sps:$4 sm:$0xff]   ;;  %v8280_v53 = vld [vmem:[#allocation8 + $0xcc] ss:$16 sps:$4 sm:$0xff]  }
 0xdbb   :  { %7767 = vmatprep.subr.bf16.mxu0 %v8793_v0  ;;  %7787 = vmatprep.subr.bf16.mxu1 %v8793_v0 }
 0xdbe   :  { %7768 = vmatpush3.bf16.msra.mxu0 %v8261_v54  ;;  %7788 = vmatpush3.bf16.msra.mxu1 %v8262_v56  ;;  %v8281_v54 = vld [vmem:[#allocation8 + $0xe8] ss:$16 sps:$4 sm:$0xff]   ;;  %v8282_v56 = vld [vmem:[#allocation8 + $0xec] ss:$16 sps:$4 sm:$0xff]  }
 0xdbf   :  { %7769 = vmatprep.subr.bf16.mxu0 %v8793_v0  ;;  %7789 = vmatprep.subr.bf16.mxu1 %v8793_v0 }
 0xdc2   :  { %7770 = vmatpush3.bf16.msra.mxu0 %v8263_v57  ;;  %7790 = vmatpush3.bf16.msra.mxu1 %v8264_v5  ;;  %v8283_v57 = vld [vmem:[#allocation8] ss:$16 sps:$4 sm:$0xff]   ;;  %v8284_v5 = vld [vmem:[#allocation8 + $0x4] ss:$16 sps:$4 sm:$0xff]  }
 0xdc3   :  { %7771 = vmatprep.subr.bf16.mxu0 %v8793_v0  ;;  %7791 = vmatprep.subr.bf16.mxu1 %v8793_v0 }
 0xdc6   :  { %7772 = vmatpush3.bf16.msra.mxu0 %v8265_v59  ;;  %7792 = vmatpush3.bf16.msra.mxu1 %v8266_v60  ;;  %v8285_v59 = vld [vmem:[#allocation8 + $0x20] ss:$16 sps:$4 sm:$0xff]   ;;  %v8286_v60 = vld [vmem:[#allocation8 + $0x24] ss:$16 sps:$4 sm:$0xff]  }
 0xdc7   :  { %7797 = vmatprep.subr.bf16.mxu0 %v8793_v0  ;;  %7817 = vmatprep.subr.bf16.mxu1 %v8793_v0 }
 0xe5b   :  { %v4065_v8 = vpop.f32.mrb[100].mxu0  ;;  %v4176_v61 = vpop.f32.mrb[100].mxu1 }
 0xe5c   :  { %v7695_v62 = vpop.f32.mrb[101].mxu0  ;;  %v7715_v63 = vpop.f32.mrb[101].mxu1  ;;  %v4182_v4 = vadd.f32 %v4176_v61, %v9668_v30  ;;  %v4071_v19 = vadd.f32 %v4065_v8, %v9670_v31  ;;  %v8287_v8 = vld [vmem:[#allocation8 + $0x40] ss:$16 sps:$4 sm:$0xff]   ;;  %v8288_v61 = vld [vmem:[#allocation8 + $0x44] ss:$16 sps:$4 sm:$0xff]  }
 0xe5d   :  { %v4068_v16 = vpop.f32.mrb[102].mxu0  ;;  %v4179_v1 = vpop.f32.mrb[102].mxu1  ;;  %v8289_v62 = vld [vmem:[#allocation8 + $0x60] ss:$16 sps:$4 sm:$0xff]   ;;  %v8290_v63 = vld [vmem:[#allocation8 + $0x64] ss:$16 sps:$4 sm:$0xff]  }
 0xe5e   :  { %v7696_v2 = vpop.f32.mrb[103].mxu0  ;;  %v7716_v3 = vpop.f32.mrb[103].mxu1  ;;  %v6018_v27 = vmul.f32 -1.442695, %v4182_v4  ;;  %v6009_v28 = vmul.f32 -1.442695, %v4071_v19 }
 0xe5f   :  { %v8291_v16 = vld [vmem:[#allocation8 + $0x80] ss:$16 sps:$4 sm:$0xff]   ;;  %v8292_v1 = vld [vmem:[#allocation8 + $0x84] ss:$16 sps:$4 sm:$0xff]  }
 0xe60   :  { %8539 = vpow2.f32 %v6018_v27  ;;  %v8293_v2 = vld [vmem:[#allocation8 + $0xa0] ss:$16 sps:$4 sm:$0xff]   ;;  %v8294_v3 = vld [vmem:[#allocation8 + $0xa4] ss:$16 sps:$4 sm:$0xff]  }
 0xe61   :  { %8541 = vpow2.f32 %v6009_v28  ;;  %v8295_v4 = vld [vmem:[#allocation8 + $0xc0] ss:$16 sps:$4 sm:$0xff]   ;;  %v8296_v19 = vld [vmem:[#allocation8 + $0xc4] ss:$16 sps:$4 sm:$0xff]  }
 0xe62   :  { %v8297_v27 = vld [vmem:[#allocation8 + $0xe0] ss:$16 sps:$4 sm:$0xff]   ;;  %v8298_v28 = vld [vmem:[#allocation8 + $0xe4] ss:$16 sps:$4 sm:$0xff]  }
 0xe6a   :  { %v8540_v29 = vpop.eup %8539 }
 0xe6b   :  { %v8542_v32 = vpop.eup %8541  ;;  %v4186_v33 = vadd.f32 1.0, %v8540_v29 }
 0xe6c   :  { %v4075_v34 = vadd.f32 1.0, %v8542_v32 }
 0xe6d   :  { %8543 = vrcp.f32 %v4186_v33 }
 0xe6e   :  { %8545 = vrcp.f32 %v4075_v34 }
 0xe77   :  { %v8544_v10 = vpop.eup %8543 }
 0xe78   :  { %v8546_v26 = vpop.eup %8545  ;;  %v4406_v55 = vmul.f32 %v8544_v10, %v9824_v39  ;;  %v8269_v39 = vld [vmem:[#allocation8 + $0x28] ss:$16 sps:$4 sm:$0xff]  }
 0xe7b   :  { %v4287_v58 = vpop.f32.mrb[104].mxu0  ;;  %v4393_v35 = vpop.f32.mrb[104].mxu1 }
 0xe7c   :  { %v4293_v36 = vadd.f32 %v4287_v58, %v9674_v44  ;;  %v4399_v37 = vadd.f32 %v4393_v35, %v9676_v45  ;;  %v7735_v38 = vpop.f32.mrb[105].mxu0  ;;  %v7755_v40 = vpop.f32.mrb[105].mxu1 }
 0xe7d   :  { %v4290_v41 = vpop.f32.mrb[106].mxu0  ;;  %v4396_v42 = vpop.f32.mrb[106].mxu1 }
 0xe7e   :  { %8547 = vtanh.f32 %v4293_v36  ;;  %v6035_v43 = vmul.f32 -1.442695, %v4399_v37  ;;  %v7736_v46 = vpop.f32.mrb[107].mxu0  ;;  %v7756_v52 = vpop.f32.mrb[107].mxu1 }
 0xe80   :  { %8549 = vpow2.f32 %v6035_v43 }
 0xe88   :  { %v8548_v11 = vpop.eup %8547 }
 0xe89   :  { %v4407_v12 = vmul.f32 %v8548_v11, %v8546_v26 }
 0xe8a   :  { %v8550_v47 = vpop.eup %8549 }
 0xe8b   :  { %v9872_v48 = vadd.f32 %v4407_v12, %v4406_v55  ;;  %v4403_v49 = vadd.f32 1.0, %v8550_v47 }
 0xe8d   :  { %8551 = vtanh.f32 %v9872_v48 }
 0xe8e   :  { %8553 = vrcp.f32 %v4403_v49 }
 0xe97   :  { %v8552_v50 = vpop.eup %8551 }
 0xe98   :  { %v8554_v51 = vpop.eup %8553 }
 0xe99   :  { %v4410_v6 = vmul.f32 %v8554_v51, %v8552_v50 }
 0xe9b   :  { %4412 = vst [vmem:[#allocation10 + $0x20] sm:$0xff] %v4410_v6  ;;  %v4413_v9 = vpack.c.bf16 %v4410_v6, %v4410_v6 }
 0xe9d   :  { %7774 = vmatmul.mubr.bf16.vlgmr.msra.gmra.mrb[108].mxu0 %v4413_v9  ;;  %7794 = vmatmul.mubr.bf16.vlgmr.msra.gmra.mrb[108].mxu1 %v4413_v9 }
 0xe9e   :  { %7798 = vmatpush3.bf16.msra.mxu0 %v8267_v20  ;;  %7818 = vmatpush3.bf16.msra.mxu1 %v8268_v7 }
 0xe9f   :  { %7799 = vmatprep.subr.bf16.mxu0 %v8793_v0  ;;  %7819 = vmatprep.subr.bf16.mxu1 %v8793_v0 }
 0xea0   :  { %7813 = vmatprep.mubr.msk.bf16.mxu0 %vm8794_vm0, %v8793_v0  ;;  %7833 = vmatprep.mubr.msk.bf16.mxu1 %vm8794_vm0, %v8793_v0 }
 0xea2   :  { %7800 = vmatpush3.bf16.msra.mxu0 %v8269_v39  ;;  %7820 = vmatpush3.bf16.msra.mxu1 %v8270_v14 }
 0xea3   :  { %7801 = vmatprep.subr.bf16.mxu0 %v8793_v0  ;;  %7821 = vmatprep.subr.bf16.mxu1 %v8793_v0 }
 0xea6   :  { %7802 = vmatpush3.bf16.msra.mxu0 %v8271_v15  ;;  %7822 = vmatpush3.bf16.msra.mxu1 %v8272_v17 }
 0xea7   :  { %7803 = vmatprep.subr.bf16.mxu0 %v8793_v0  ;;  %7823 = vmatprep.subr.bf16.mxu1 %v8793_v0 }
 0xeaa   :  { %7804 = vmatpush3.bf16.msra.mxu0 %v8273_v18  ;;  %7824 = vmatpush3.bf16.msra.mxu1 %v8274_v21 }
 0xeab   :  { %7805 = vmatprep.subr.bf16.mxu0 %v8793_v0  ;;  %7825 = vmatprep.subr.bf16.mxu1 %v8793_v0 }
 0xeae   :  { %7806 = vmatpush3.bf16.msra.mxu0 %v8275_v22  ;;  %7826 = vmatpush3.bf16.msra.mxu1 %v8276_v23 }
 0xeaf   :  { %7807 = vmatprep.subr.bf16.mxu0 %v8793_v0  ;;  %7827 = vmatprep.subr.bf16.mxu1 %v8793_v0 }
 0xeb2   :  { %7808 = vmatpush3.bf16.msra.mxu0 %v8277_v24  ;;  %7828 = vmatpush3.bf16.msra.mxu1 %v8278_v25 }
 0xeb3   :  { %7809 = vmatprep.subr.bf16.mxu0 %v8793_v0  ;;  %7829 = vmatprep.subr.bf16.mxu1 %v8793_v0 }
 0xeb6   :  { %7810 = vmatpush3.bf16.msra.mxu0 %v8279_v13  ;;  %7830 = vmatpush3.bf16.msra.mxu1 %v8280_v53  ;;  %v8299_v13 = vld [vmem:[#allocation8 + $0x8] ss:$16 sps:$4 sm:$0xff]   ;;  %v8300_v53 = vld [vmem:[#allocation8 + $0xc] ss:$16 sps:$4 sm:$0xff]  }
 0xeb7   :  { %7811 = vmatprep.subr.bf16.mxu0 %v8793_v0  ;;  %7831 = vmatprep.subr.bf16.mxu1 %v8793_v0 }
 0xeba   :  { %7812 = vmatpush3.bf16.msra.mxu0 %v8281_v54  ;;  %7832 = vmatpush3.bf16.msra.mxu1 %v8282_v56  ;;  %v8302_v56 = vld [vmem:[#allocation8 + $0x2c] ss:$16 sps:$4 sm:$0xff]  }
 0xebb   :  { %7837 = vmatprep.subr.bf16.mxu0 %v8793_v0  ;;  %7857 = vmatprep.subr.bf16.mxu1 %v8793_v0 }
 0xebd   :  { %7814 = vmatmul.mubr.bf16.vlgmr.msra.gmra.mrb[112].mxu0 %v4413_v9  ;;  %7834 = vmatmul.mubr.bf16.vlgmr.msra.gmra.mrb[112].mxu1 %v4413_v9 }
 0xebe   :  { %7853 = vmatprep.mubr.msk.bf16.mxu0 %vm8794_vm0, %v8793_v0  ;;  %7873 = vmatprep.mubr.msk.bf16.mxu1 %vm8794_vm0, %v8793_v0 }
 0xebf   :  { %7838 = vmatpush3.bf16.msra.mxu0 %v8283_v57  ;;  %7858 = vmatpush3.bf16.msra.mxu1 %v8284_v5  ;;  %v8303_v57 = vld [vmem:[#allocation8 + $0x48] ss:$16 sps:$4 sm:$0xff]   ;;  %v8304_v5 = vld [vmem:[#allocation8 + $0x4c] ss:$16 sps:$4 sm:$0xff]  }
 0xec0   :  { %7839 = vmatprep.subr.bf16.mxu0 %v8793_v0  ;;  %7859 = vmatprep.subr.bf16.mxu1 %v8793_v0 }
 0xec3   :  { %7840 = vmatpush3.bf16.msra.mxu0 %v8285_v59  ;;  %7860 = vmatpush3.bf16.msra.mxu1 %v8286_v60  ;;  %v8305_v59 = vld [vmem:[#allocation8 + $0x68] ss:$16 sps:$4 sm:$0xff]   ;;  %v8306_v60 = vld [vmem:[#allocation8 + $0x6c] ss:$16 sps:$4 sm:$0xff]  }
 0xec4   :  { %7841 = vmatprep.subr.bf16.mxu0 %v8793_v0  ;;  %7861 = vmatprep.subr.bf16.mxu1 %v8793_v0 }
 0xec7   :  { %7842 = vmatpush3.bf16.msra.mxu0 %v8287_v8  ;;  %7862 = vmatpush3.bf16.msra.mxu1 %v8288_v61  ;;  %v8307_v8 = vld [vmem:[#allocation8 + $0x88] ss:$16 sps:$4 sm:$0xff]   ;;  %v8308_v61 = vld [vmem:[#allocation8 + $0x8c] ss:$16 sps:$4 sm:$0xff]  }
 0xec8   :  { %7843 = vmatprep.subr.bf16.mxu0 %v8793_v0  ;;  %7863 = vmatprep.subr.bf16.mxu1 %v8793_v0 }
 0xecb   :  { %7844 = vmatpush3.bf16.msra.mxu0 %v8289_v62  ;;  %7864 = vmatpush3.bf16.msra.mxu1 %v8290_v63  ;;  %v8309_v62 = vld [vmem:[#allocation8 + $0xa8] ss:$16 sps:$4 sm:$0xff]   ;;  %v8310_v63 = vld [vmem:[#allocation8 + $0xac] ss:$16 sps:$4 sm:$0xff]  }
 0xecc   :  { %7845 = vmatprep.subr.bf16.mxu0 %v8793_v0  ;;  %7865 = vmatprep.subr.bf16.mxu1 %v8793_v0 }
 0xecf   :  { %7846 = vmatpush3.bf16.msra.mxu0 %v8291_v16  ;;  %7866 = vmatpush3.bf16.msra.mxu1 %v8292_v1  ;;  %v8311_v16 = vld [vmem:[#allocation8 + $0xc8] ss:$16 sps:$4 sm:$0xff]   ;;  %v8312_v1 = vld [vmem:[#allocation8 + $0xcc] ss:$16 sps:$4 sm:$0xff]  }
 0xed0   :  { %7847 = vmatprep.subr.bf16.mxu0 %v8793_v0  ;;  %7867 = vmatprep.subr.bf16.mxu1 %v8793_v0 }
 0xed3   :  { %7848 = vmatpush3.bf16.msra.mxu0 %v8293_v2  ;;  %7868 = vmatpush3.bf16.msra.mxu1 %v8294_v3  ;;  %v8313_v2 = vld [vmem:[#allocation8 + $0xe8] ss:$16 sps:$4 sm:$0xff]   ;;  %v8314_v3 = vld [vmem:[#allocation8 + $0xec] ss:$16 sps:$4 sm:$0xff]  }
 0xed4   :  { %7849 = vmatprep.subr.bf16.mxu0 %v8793_v0  ;;  %7869 = vmatprep.subr.bf16.mxu1 %v8793_v0 }
 0xed7   :  { %7850 = vmatpush3.bf16.msra.mxu0 %v8295_v4  ;;  %7870 = vmatpush3.bf16.msra.mxu1 %v8296_v19  ;;  %v8315_v4 = vld [vmem:[#allocation8] ss:$16 sps:$4 sm:$0xff]   ;;  %v8316_v19 = vld [vmem:[#allocation8 + $0x4] ss:$16 sps:$4 sm:$0xff]  }
 0xed8   :  { %7851 = vmatprep.subr.bf16.mxu0 %v8793_v0  ;;  %7871 = vmatprep.subr.bf16.mxu1 %v8793_v0 }
 0xedb   :  { %7852 = vmatpush3.bf16.msra.mxu0 %v8297_v27  ;;  %7872 = vmatpush3.bf16.msra.mxu1 %v8298_v28  ;;  %v8317_v27 = vld [vmem:[#allocation8 + $0x20] ss:$16 sps:$4 sm:$0xff]   ;;  %v8318_v28 = vld [vmem:[#allocation8 + $0x24] ss:$16 sps:$4 sm:$0xff]  }
 0xedc   :  { %7877 = vmatprep.subr.bf16.mxu0 %v8793_v0  ;;  %7897 = vmatprep.subr.bf16.mxu1 %v8793_v0 }
 0xf70   :  { %v4512_v29 = vpop.f32.mrb[108].mxu0  ;;  %v4623_v32 = vpop.f32.mrb[108].mxu1 }
 0xf71   :  { %v7775_v33 = vpop.f32.mrb[109].mxu0  ;;  %v7795_v34 = vpop.f32.mrb[109].mxu1  ;;  %v4629_v38 = vadd.f32 %v4623_v32, %v9668_v30  ;;  %v4518_v40 = vadd.f32 %v4512_v29, %v9670_v31  ;;  %v8319_v29 = vld [vmem:[#allocation8 + $0x40] ss:$16 sps:$4 sm:$0xff]   ;;  %v8320_v32 = vld [vmem:[#allocation8 + $0x44] ss:$16 sps:$4 sm:$0xff]  }
 0xf72   :  { %v4515_v58 = vpop.f32.mrb[110].mxu0  ;;  %v4626_v35 = vpop.f32.mrb[110].mxu1  ;;  %v8321_v33 = vld [vmem:[#allocation8 + $0x60] ss:$16 sps:$4 sm:$0xff]   ;;  %v8322_v34 = vld [vmem:[#allocation8 + $0x64] ss:$16 sps:$4 sm:$0xff]  }
 0xf73   :  { %v7776_v36 = vpop.f32.mrb[111].mxu0  ;;  %v7796_v37 = vpop.f32.mrb[111].mxu1  ;;  %v6053_v41 = vmul.f32 -1.442695, %v4629_v38  ;;  %v6044_v42 = vmul.f32 -1.442695, %v4518_v40 }
 0xf74   :  { %v8323_v58 = vld [vmem:[#allocation8 + $0x80] ss:$16 sps:$4 sm:$0xff]   ;;  %v8324_v35 = vld [vmem:[#allocation8 + $0x84] ss:$16 sps:$4 sm:$0xff]  }
 0xf75   :  { %8555 = vpow2.f32 %v6053_v41  ;;  %v8325_v36 = vld [vmem:[#allocation8 + $0xa0] ss:$16 sps:$4 sm:$0xff]   ;;  %v8326_v37 = vld [vmem:[#allocation8 + $0xa4] ss:$16 sps:$4 sm:$0xff]  }
 0xf76   :  { %8557 = vpow2.f32 %v6044_v42  ;;  %v8327_v38 = vld [vmem:[#allocation8 + $0xc0] ss:$16 sps:$4 sm:$0xff]   ;;  %v8328_v40 = vld [vmem:[#allocation8 + $0xc4] ss:$16 sps:$4 sm:$0xff]  }
 0xf77   :  { %v8329_v41 = vld [vmem:[#allocation8 + $0xe0] ss:$16 sps:$4 sm:$0xff]   ;;  %v8330_v42 = vld [vmem:[#allocation8 + $0xe4] ss:$16 sps:$4 sm:$0xff]  }
 0xf7f   :  { %v8556_v43 = vpop.eup %8555 }
 0xf80   :  { %v8558_v46 = vpop.eup %8557  ;;  %v4633_v52 = vadd.f32 1.0, %v8556_v43 }
 0xf81   :  { %v4522_v10 = vadd.f32 1.0, %v8558_v46 }
 0xf82   :  { %8559 = vrcp.f32 %v4633_v52 }
 0xf83   :  { %8561 = vrcp.f32 %v4522_v10 }
 0xf8c   :  { %v8560_v9 = vpop.eup %8559 }
 0xf8d   :  { %v8562_v39 = vpop.eup %8561  ;;  %v4853_v15 = vmul.f32 %v8560_v9, %v9872_v48  ;;  %v8301_v48 = vld [vmem:[#allocation8 + $0x28] ss:$16 sps:$4 sm:$0xff]  }
 0xf90   :  { %v4734_v26 = vpop.f32.mrb[112].mxu0  ;;  %v4840_v11 = vpop.f32.mrb[112].mxu1 }
 0xf91   :  { %v4740_v55 = vadd.f32 %v4734_v26, %v9674_v44  ;;  %v4846_v12 = vadd.f32 %v4840_v11, %v9676_v45  ;;  %v7815_v47 = vpop.f32.mrb[113].mxu0  ;;  %v7835_v49 = vpop.f32.mrb[113].mxu1 }
 0xf92   :  { %v4737_v50 = vpop.f32.mrb[114].mxu0  ;;  %v4843_v51 = vpop.f32.mrb[114].mxu1 }
 0xf93   :  { %8563 = vtanh.f32 %v4740_v55  ;;  %v6070_v6 = vmul.f32 -1.442695, %v4846_v12  ;;  %v7816_v20 = vpop.f32.mrb[115].mxu0  ;;  %v7836_v7 = vpop.f32.mrb[115].mxu1 }
 0xf95   :  { %8565 = vpow2.f32 %v6070_v6 }
 0xf9d   :  { %v8564_v14 = vpop.eup %8563 }
 0xf9e   :  { %v4854_v17 = vmul.f32 %v8564_v14, %v8562_v39 }
 0xf9f   :  { %v8566_v18 = vpop.eup %8565 }
 0xfa0   :  { %v9920_v21 = vadd.f32 %v4854_v17, %v4853_v15  ;;  %v4850_v22 = vadd.f32 1.0, %v8566_v18 }
 0xfa2   :  { %8567 = vtanh.f32 %v9920_v21 }
 0xfa3   :  { %8569 = vrcp.f32 %v4850_v22 }
 0xfac   :  { %v8568_v23 = vpop.eup %8567 }
 0xfad   :  { %v8570_v24 = vpop.eup %8569 }
 0xfae   :  { %v4857_v25 = vmul.f32 %v8570_v24, %v8568_v23 }
 0xfb0   :  { %4859 = vst [vmem:[#allocation10 + $0x28] sm:$0xff] %v4857_v25  ;;  %v4860_v54 = vpack.c.bf16 %v4857_v25, %v4857_v25 }
 0xfb2   :  { %7854 = vmatmul.mubr.bf16.vlgmr.msra.gmra.mrb[116].mxu0 %v4860_v54  ;;  %7874 = vmatmul.mubr.bf16.vlgmr.msra.gmra.mrb[116].mxu1 %v4860_v54 }
 0xfb3   :  { %7878 = vmatpush3.bf16.msra.mxu0 %v8299_v13  ;;  %7898 = vmatpush3.bf16.msra.mxu1 %v8300_v53 }
 0xfb4   :  { %7879 = vmatprep.subr.bf16.mxu0 %v8793_v0  ;;  %7899 = vmatprep.subr.bf16.mxu1 %v8793_v0 }
 0xfb5   :  { %7893 = vmatprep.mubr.msk.bf16.mxu0 %vm8794_vm0, %v8793_v0  ;;  %7913 = vmatprep.mubr.msk.bf16.mxu1 %vm8794_vm0, %v8793_v0 }
 0xfb7   :  { %7880 = vmatpush3.bf16.msra.mxu0 %v8301_v48  ;;  %7900 = vmatpush3.bf16.msra.mxu1 %v8302_v56 }
 0xfb8   :  { %7881 = vmatprep.subr.bf16.mxu0 %v8793_v0  ;;  %7901 = vmatprep.subr.bf16.mxu1 %v8793_v0 }
 0xfbb   :  { %7882 = vmatpush3.bf16.msra.mxu0 %v8303_v57  ;;  %7902 = vmatpush3.bf16.msra.mxu1 %v8304_v5 }
 0xfbc   :  { %7883 = vmatprep.subr.bf16.mxu0 %v8793_v0  ;;  %7903 = vmatprep.subr.bf16.mxu1 %v8793_v0 }
 0xfbf   :  { %7884 = vmatpush3.bf16.msra.mxu0 %v8305_v59  ;;  %7904 = vmatpush3.bf16.msra.mxu1 %v8306_v60 }
 0xfc0   :  { %7885 = vmatprep.subr.bf16.mxu0 %v8793_v0  ;;  %7905 = vmatprep.subr.bf16.mxu1 %v8793_v0 }
 0xfc3   :  { %7886 = vmatpush3.bf16.msra.mxu0 %v8307_v8  ;;  %7906 = vmatpush3.bf16.msra.mxu1 %v8308_v61 }
 0xfc4   :  { %7887 = vmatprep.subr.bf16.mxu0 %v8793_v0  ;;  %7907 = vmatprep.subr.bf16.mxu1 %v8793_v0 }
 0xfc7   :  { %7888 = vmatpush3.bf16.msra.mxu0 %v8309_v62  ;;  %7908 = vmatpush3.bf16.msra.mxu1 %v8310_v63 }
 0xfc8   :  { %7889 = vmatprep.subr.bf16.mxu0 %v8793_v0  ;;  %7909 = vmatprep.subr.bf16.mxu1 %v8793_v0 }
 0xfcb   :  { %7890 = vmatpush3.bf16.msra.mxu0 %v8311_v16  ;;  %7910 = vmatpush3.bf16.msra.mxu1 %v8312_v1  ;;  %v8331_v16 = vld [vmem:[#allocation8 + $0x8] ss:$16 sps:$4 sm:$0xff]   ;;  %v8332_v1 = vld [vmem:[#allocation8 + $0xc] ss:$16 sps:$4 sm:$0xff]  }
 0xfcc   :  { %7891 = vmatprep.subr.bf16.mxu0 %v8793_v0  ;;  %7911 = vmatprep.subr.bf16.mxu1 %v8793_v0 }
 0xfcf   :  { %7892 = vmatpush3.bf16.msra.mxu0 %v8313_v2  ;;  %7912 = vmatpush3.bf16.msra.mxu1 %v8314_v3  ;;  %v8334_v3 = vld [vmem:[#allocation8 + $0x2c] ss:$16 sps:$4 sm:$0xff]  }
 0xfd0   :  { %7917 = vmatprep.subr.bf16.mxu0 %v8793_v0  ;;  %7937 = vmatprep.subr.bf16.mxu1 %v8793_v0 }
 0xfd2   :  { %7894 = vmatmul.mubr.bf16.vlgmr.msra.gmra.mrb[120].mxu0 %v4860_v54  ;;  %7914 = vmatmul.mubr.bf16.vlgmr.msra.gmra.mrb[120].mxu1 %v4860_v54 }
 0xfd3   :  { %7933 = vmatprep.mubr.msk.bf16.mxu0 %vm8794_vm0, %v8793_v0  ;;  %7953 = vmatprep.mubr.msk.bf16.mxu1 %vm8794_vm0, %v8793_v0 }
 0xfd4   :  { %7918 = vmatpush3.bf16.msra.mxu0 %v8315_v4  ;;  %7938 = vmatpush3.bf16.msra.mxu1 %v8316_v19  ;;  %v8335_v4 = vld [vmem:[#allocation8 + $0x48] ss:$16 sps:$4 sm:$0xff]   ;;  %v8336_v19 = vld [vmem:[#allocation8 + $0x4c] ss:$16 sps:$4 sm:$0xff]  }
 0xfd5   :  { %7919 = vmatprep.subr.bf16.mxu0 %v8793_v0  ;;  %7939 = vmatprep.subr.bf16.mxu1 %v8793_v0 }
 0xfd8   :  { %7920 = vmatpush3.bf16.msra.mxu0 %v8317_v27  ;;  %7940 = vmatpush3.bf16.msra.mxu1 %v8318_v28  ;;  %v8337_v27 = vld [vmem:[#allocation8 + $0x68] ss:$16 sps:$4 sm:$0xff]   ;;  %v8338_v28 = vld [vmem:[#allocation8 + $0x6c] ss:$16 sps:$4 sm:$0xff]  }
 0xfd9   :  { %7921 = vmatprep.subr.bf16.mxu0 %v8793_v0  ;;  %7941 = vmatprep.subr.bf16.mxu1 %v8793_v0 }
 0xfdc   :  { %7922 = vmatpush3.bf16.msra.mxu0 %v8319_v29  ;;  %7942 = vmatpush3.bf16.msra.mxu1 %v8320_v32  ;;  %v8339_v29 = vld [vmem:[#allocation8 + $0x88] ss:$16 sps:$4 sm:$0xff]   ;;  %v8340_v32 = vld [vmem:[#allocation8 + $0x8c] ss:$16 sps:$4 sm:$0xff]  }
 0xfdd   :  { %7923 = vmatprep.subr.bf16.mxu0 %v8793_v0  ;;  %7943 = vmatprep.subr.bf16.mxu1 %v8793_v0 }
 0xfe0   :  { %7924 = vmatpush3.bf16.msra.mxu0 %v8321_v33  ;;  %7944 = vmatpush3.bf16.msra.mxu1 %v8322_v34  ;;  %v8341_v33 = vld [vmem:[#allocation8 + $0xa8] ss:$16 sps:$4 sm:$0xff]   ;;  %v8342_v34 = vld [vmem:[#allocation8 + $0xac] ss:$16 sps:$4 sm:$0xff]  }
 0xfe1   :  { %7925 = vmatprep.subr.bf16.mxu0 %v8793_v0  ;;  %7945 = vmatprep.subr.bf16.mxu1 %v8793_v0 }
 0xfe4   :  { %7926 = vmatpush3.bf16.msra.mxu0 %v8323_v58  ;;  %7946 = vmatpush3.bf16.msra.mxu1 %v8324_v35  ;;  %v8343_v58 = vld [vmem:[#allocation8 + $0xc8] ss:$16 sps:$4 sm:$0xff]   ;;  %v8344_v35 = vld [vmem:[#allocation8 + $0xcc] ss:$16 sps:$4 sm:$0xff]  }
 0xfe5   :  { %7927 = vmatprep.subr.bf16.mxu0 %v8793_v0  ;;  %7947 = vmatprep.subr.bf16.mxu1 %v8793_v0 }
 0xfe8   :  { %7928 = vmatpush3.bf16.msra.mxu0 %v8325_v36  ;;  %7948 = vmatpush3.bf16.msra.mxu1 %v8326_v37  ;;  %v8345_v36 = vld [vmem:[#allocation8 + $0xe8] ss:$16 sps:$4 sm:$0xff]   ;;  %v8346_v37 = vld [vmem:[#allocation8 + $0xec] ss:$16 sps:$4 sm:$0xff]  }
 0xfe9   :  { %7929 = vmatprep.subr.bf16.mxu0 %v8793_v0  ;;  %7949 = vmatprep.subr.bf16.mxu1 %v8793_v0 }
 0xfec   :  { %7930 = vmatpush3.bf16.msra.mxu0 %v8327_v38  ;;  %7950 = vmatpush3.bf16.msra.mxu1 %v8328_v40 }
 0xfed   :  { %7931 = vmatprep.subr.bf16.mxu0 %v8793_v0  ;;  %7951 = vmatprep.subr.bf16.mxu1 %v8793_v0 }
 0xff0   :  { %7932 = vmatpush3.bf16.msra.mxu0 %v8329_v41  ;;  %7952 = vmatpush3.bf16.msra.mxu1 %v8330_v42 }
 0xff1   :  { %7957 = vmatprep.subr.bf16.mxu0 %v8793_v0  ;;  %7977 = vmatprep.subr.bf16.mxu1 %v8793_v0 }
0x1085   :  { %v4959_v43 = vpop.f32.mrb[116].mxu0  ;;  %v5070_v46 = vpop.f32.mrb[116].mxu1 }
0x1086   :  { %v7855_v52 = vpop.f32.mrb[117].mxu0  ;;  %v7875_v10 = vpop.f32.mrb[117].mxu1  ;;  %v5076_v47 = vadd.f32 %v5070_v46, %v9668_v30  ;;  %v4965_v49 = vadd.f32 %v4959_v43, %v9670_v31 }
0x1087   :  { %v4962_v26 = vpop.f32.mrb[118].mxu0  ;;  %v5073_v11 = vpop.f32.mrb[118].mxu1 }
0x1088   :  { %v7856_v55 = vpop.f32.mrb[119].mxu0  ;;  %v7876_v12 = vpop.f32.mrb[119].mxu1  ;;  %v6088_v50 = vmul.f32 -1.442695, %v5076_v47  ;;  %v6079_v51 = vmul.f32 -1.442695, %v4965_v49 }
0x108a   :  { %8571 = vpow2.f32 %v6088_v50 }
0x108b   :  { %8573 = vpow2.f32 %v6079_v51 }
0x1094   :  { %v8572_v6 = vpop.eup %8571 }
0x1095   :  { %v8574_v20 = vpop.eup %8573  ;;  %v5080_v7 = vadd.f32 1.0, %v8572_v6 }
0x1096   :  { %v4969_v9 = vadd.f32 1.0, %v8574_v20 }
0x1097   :  { %8575 = vrcp.f32 %v5080_v7 }
0x1098   :  { %8577 = vrcp.f32 %v4969_v9 }
0x10a1   :  { %v8576_v54 = vpop.eup %8575 }
0x10a2   :  { %v8578_v48 = vpop.eup %8577  ;;  %v5300_v57 = vmul.f32 %v8576_v54, %v9920_v21  ;;  %v8333_v21 = vld [vmem:[#allocation8 + $0x28] ss:$16 sps:$4 sm:$0xff]  }
0x10a5   :  { %v5181_v39 = vpop.f32.mrb[120].mxu0  ;;  %v5287_v14 = vpop.f32.mrb[120].mxu1 }
0x10a6   :  { %v5187_v15 = vadd.f32 %v5181_v39, %v9674_v44  ;;  %v5293_v17 = vadd.f32 %v5287_v14, %v9676_v45  ;;  %v7895_v18 = vpop.f32.mrb[121].mxu0  ;;  %v7915_v22 = vpop.f32.mrb[121].mxu1 }
0x10a7   :  { %v5184_v23 = vpop.f32.mrb[122].mxu0  ;;  %v5290_v24 = vpop.f32.mrb[122].mxu1 }
0x10a8   :  { %8579 = vtanh.f32 %v5187_v15  ;;  %v6105_v25 = vmul.f32 -1.442695, %v5293_v17  ;;  %v7896_v13 = vpop.f32.mrb[123].mxu0  ;;  %v7916_v53 = vpop.f32.mrb[123].mxu1 }
0x10aa   :  { %8581 = vpow2.f32 %v6105_v25 }
0x10b2   :  { %v8580_v56 = vpop.eup %8579 }
0x10b3   :  { %v5301_v5 = vmul.f32 %v8580_v56, %v8578_v48 }
0x10b4   :  { %v8582_v59 = vpop.eup %8581 }
0x10b5   :  { %v9968_v60 = vadd.f32 %v5301_v5, %v5300_v57  ;;  %v5297_v8 = vadd.f32 1.0, %v8582_v59 }
0x10b7   :  { %8583 = vtanh.f32 %v9968_v60 }
0x10b8   :  { %8585 = vrcp.f32 %v5297_v8 }
0x10c1   :  { %v8584_v61 = vpop.eup %8583 }
0x10c2   :  { %v8586_v62 = vpop.eup %8585 }
0x10c3   :  { %v5304_v63 = vmul.f32 %v8586_v62, %v8584_v61 }
0x10c5   :  { %5306 = vst [vmem:[#allocation10 + $0x30] sm:$0xff] %v5304_v63  ;;  %v5307_v2 = vpack.c.bf16 %v5304_v63, %v5304_v63 }
0x10c7   :  { %7934 = vmatmul.mubr.bf16.vlgmr.msra.gmra.mrb[124].mxu0 %v5307_v2  ;;  %7954 = vmatmul.mubr.bf16.vlgmr.msra.gmra.mrb[124].mxu1 %v5307_v2 }
0x10c8   :  { %7958 = vmatpush3.bf16.msra.mxu0 %v8331_v16  ;;  %7978 = vmatpush3.bf16.msra.mxu1 %v8332_v1 }
0x10c9   :  { %7959 = vmatprep.subr.bf16.mxu0 %v8793_v0  ;;  %7979 = vmatprep.subr.bf16.mxu1 %v8793_v0 }
0x10ca   :  { %7973 = vmatprep.mubr.msk.bf16.mxu0 %vm8794_vm0, %v8793_v0  ;;  %7993 = vmatprep.mubr.msk.bf16.mxu1 %vm8794_vm0, %v8793_v0 }
0x10cc   :  { %7960 = vmatpush3.bf16.msra.mxu0 %v8333_v21  ;;  %7980 = vmatpush3.bf16.msra.mxu1 %v8334_v3 }
0x10cd   :  { %7961 = vmatprep.subr.bf16.mxu0 %v8793_v0  ;;  %7981 = vmatprep.subr.bf16.mxu1 %v8793_v0 }
0x10d0   :  { %7962 = vmatpush3.bf16.msra.mxu0 %v8335_v4  ;;  %7982 = vmatpush3.bf16.msra.mxu1 %v8336_v19 }
0x10d1   :  { %7963 = vmatprep.subr.bf16.mxu0 %v8793_v0  ;;  %7983 = vmatprep.subr.bf16.mxu1 %v8793_v0 }
0x10d4   :  { %7964 = vmatpush3.bf16.msra.mxu0 %v8337_v27  ;;  %7984 = vmatpush3.bf16.msra.mxu1 %v8338_v28 }
0x10d5   :  { %7965 = vmatprep.subr.bf16.mxu0 %v8793_v0  ;;  %7985 = vmatprep.subr.bf16.mxu1 %v8793_v0 }
0x10d8   :  { %7966 = vmatpush3.bf16.msra.mxu0 %v8339_v29  ;;  %7986 = vmatpush3.bf16.msra.mxu1 %v8340_v32 }
0x10d9   :  { %7967 = vmatprep.subr.bf16.mxu0 %v8793_v0  ;;  %7987 = vmatprep.subr.bf16.mxu1 %v8793_v0 }
0x10dc   :  { %7968 = vmatpush3.bf16.msra.mxu0 %v8341_v33  ;;  %7988 = vmatpush3.bf16.msra.mxu1 %v8342_v34 }
0x10dd   :  { %7969 = vmatprep.subr.bf16.mxu0 %v8793_v0  ;;  %7989 = vmatprep.subr.bf16.mxu1 %v8793_v0 }
0x10e0   :  { %7970 = vmatpush3.bf16.msra.mxu0 %v8343_v58  ;;  %7990 = vmatpush3.bf16.msra.mxu1 %v8344_v35 }
0x10e1   :  { %7971 = vmatprep.subr.bf16.mxu0 %v8793_v0  ;;  %7991 = vmatprep.subr.bf16.mxu1 %v8793_v0 }
0x10e4   :  { %7972 = vmatpush3.bf16.msra.mxu0 %v8345_v36  ;;  %7992 = vmatpush3.bf16.msra.mxu1 %v8346_v37 }
0x10e7   :  { %7974 = vmatmul.mubr.bf16.vlgmr.msra.gmra.mrb[128].mxu0 %v5307_v2  ;;  %7994 = vmatmul.mubr.bf16.vlgmr.msra.gmra.mrb[128].mxu1 %v5307_v2 }
0x119a   :  { %v5406_v38 = vpop.f32.mrb[124].mxu0  ;;  %v5517_v40 = vpop.f32.mrb[124].mxu1 }
0x119b   :  { %v7935_v41 = vpop.f32.mrb[125].mxu0  ;;  %v7955_v42 = vpop.f32.mrb[125].mxu1  ;;  %v5523_v26 = vadd.f32 %v5517_v40, %v9668_v30  ;;  %v5412_v11 = vadd.f32 %v5406_v38, %v9670_v31 }
0x119c   :  { %v5409_v43 = vpop.f32.mrb[126].mxu0  ;;  %v5520_v46 = vpop.f32.mrb[126].mxu1 }
0x119d   :  { %v7936_v52 = vpop.f32.mrb[127].mxu0  ;;  %v7956_v10 = vpop.f32.mrb[127].mxu1  ;;  %v6123_v55 = vmul.f32 -1.442695, %v5523_v26  ;;  %v6114_v12 = vmul.f32 -1.442695, %v5412_v11 }
0x119f   :  { %8587 = vpow2.f32 %v6123_v55 }
0x11a0   :  { %8589 = vpow2.f32 %v6114_v12 }
0x11a9   :  { %v8588_v0 = vpop.eup %8587 }
0x11aa   :  { %v8590_v47 = vpop.eup %8589  ;;  %v5527_v49 = vadd.f32 1.0, %v8588_v0 }
0x11ab   :  { %v5416_v50 = vadd.f32 1.0, %v8590_v47 }
0x11ac   :  { %8591 = vrcp.f32 %v5527_v49 }
0x11ad   :  { %8593 = vrcp.f32 %v5416_v50 }
0x11b6   :  { %v8592_v18 = vpop.eup %8591 }
0x11b7   :  { %v8594_v22 = vpop.eup %8593  ;;  %v5747_v24 = vmul.f32 %v8592_v18, %v9968_v60 }
0x11ba   :  { %v5628_v51 = vpop.f32.mrb[128].mxu0  ;;  %v5734_v6 = vpop.f32.mrb[128].mxu1 }
0x11bb   :  { %v5634_v20 = vadd.f32 %v5628_v51, %v9674_v44  ;;  %v5740_v7 = vadd.f32 %v5734_v6, %v9676_v45  ;;  %v7975_v9 = vpop.f32.mrb[129].mxu0  ;;  %v7995_v39 = vpop.f32.mrb[129].mxu1 }
0x11bc   :  { %v5631_v30 = vpop.f32.mrb[130].mxu0  ;;  %v5737_v31 = vpop.f32.mrb[130].mxu1 }
0x11bd   :  { %8595 = vtanh.f32 %v5634_v20  ;;  %v6140_v14 = vmul.f32 -1.442695, %v5740_v7  ;;  %v7976_v15 = vpop.f32.mrb[131].mxu0  ;;  %v7996_v17 = vpop.f32.mrb[131].mxu1 }
0x11bf   :  { %8597 = vpow2.f32 %v6140_v14 }
0x11c7   :  { %v8596_v23 = vpop.eup %8595 }
0x11c8   :  { %v5748_v25 = vmul.f32 %v8596_v23, %v8594_v22 }
0x11c9   :  { %v8598_v13 = vpop.eup %8597 }
0x11ca   :  { %v5749_v44 = vadd.f32 %v5748_v25, %v5747_v24  ;;  %v5744_v53 = vadd.f32 1.0, %v8598_v13 }
0x11cc   :  { %8599 = vtanh.f32 %v5749_v44 }
0x11cd   :  { %8601 = vrcp.f32 %v5744_v53 }
0x11d6   :  { %v8600_v45 = vpop.eup %8599 }
0x11d7   :  { %v8602_v54 = vpop.eup %8601 }
0x11d8   :  { %v5751_v48 = vmul.f32 %v8602_v54, %v8600_v45 }
0x11da   :  { %5753 = vst [vmem:[#allocation10 + $0x38] sm:$0xff] %v5751_v48 }
0x11db   :  { %8766 = shalt.err (!%p8763_p8)
}
0x11dc   :  { %s8767_s21 = scalar_lea.hbm %s10011_s5, 1024 }
0x11dd   :  { %p8768_p9 = scmp.ne.s32.totalorder %s10011_s5, %s8767_s21  ;;  %p8771_p10 = scmp.lt.u32.totalorder %s8767_s21, %s10011_s5 }
0x11df   :  { %p8773_p11 = pnand %p8771_p10, %p8768_p9 }
0x11e1   :  { %8776 = shalt.err (!%p8773_p11)
}
0x11e2   :  { %s8797_s26 = smov 128   ;;  %s8798_s27 = smov 8  }
0x11e3   :  { %5765 = dma.vmem_to_hbm [thread:$0]  %s5760_s29, 1024, %s10011_s5, [#allocation4], %s8797_s26, %s8797_s26, %s8798_s27  }
0x11e4   :  { %8783 = dma.done.wait [#allocation4], 1024  }
0x11e5   :  { %8784 = vsyncadd [#allocation4], 4294966272 }
0x11e6   :  { %5769 = vsyncpa [#allocation3], 1 }
0x11e7   :  { %5770 = vsyncpa [#allocation6], 1 }
0x11e8   :  { %5771 = vsyncpa [#allocation9], 1 }
0x11e9   :  { %5772 = vsyncpa [#allocation4], 1 }

</bundles_post_ra>
